<compile_context>
chip_gen: v6e
topology: v6e:2x2x1
jax: 0.10.0
libtpu: 0.0.40
codegen_flags: <defaults>
</compile_context>

<pallas_src>
import functools

import jax
import jax.numpy as jnp
from jax.experimental import pallas as pl
from jax.experimental.pallas import tpu as pltpu

ENVIRONMENT_DIM = 999
ROBOT_DIM = 8
STATE_DIM = ENVIRONMENT_DIM + ROBOT_DIM     # 1007
STATE_DIM_PAD = 1024                        # contraction dim padded to 128-multiple
ACTION_DIM = 2
H1 = 1024
H2 = 512
NUM_HEADS = 2                               # the two independent Q heads
MAX_BATCH_BLOCK = 256                       # batch tile for large B


def _critic_kernel(
    s_ref, a_ref,
    w1_ref, s1_ref, b1_ref,
    w2s_ref, s2_ref, w2a_ref, b2a_ref,
    w3_ref, b3_ref,
    q_ref,
):
    """Grid = (head, batch_block). One step == one Q head on one batch tile."""
    s = s_ref[...]                            # (Bb, STATE_DIM_PAD) bf16
    a = a_ref[...]                            # (Bb, ACTION_DIM)    f32

    # ---- layer 1: int8 weight -> bf16 widen (VPU), MXU matmul, f32 acc,
    #      per-output-channel dequant scale applied to the small result.
    w1 = w1_ref[...].astype(jnp.bfloat16)                         # (1024, 1024)
    h = jnp.dot(s, w1, preferred_element_type=jnp.float32)        # (Bb, 1024)
    h = jnp.maximum(h * s1_ref[...] + b1_ref[...], 0.0)

    # ---- K=2 action branch on the VPU (broadcast multiply-add), not the MXU.
    w2a = w2a_ref[...]                                            # (2, H2) f32
    act = a[:, 0:1] * w2a[0:1, :] + a[:, 1:2] * w2a[1:2, :]       # (Bb, H2)

    # ---- layer 2 (state branch): int8 weight, bf16 activation, f32 acc.
    w2s = w2s_ref[...].astype(jnp.bfloat16)                       # (1024, 512)
    z = jnp.dot(h.astype(jnp.bfloat16), w2s,
                preferred_element_type=jnp.float32)               # (Bb, 512)
    z = jnp.maximum(z * s2_ref[...] + act + b2a_ref[...], 0.0)

    # ---- layer 3: single output column -> VPU multiply + lane reduction
    #      instead of an MXU push that uses 1 of 256 result columns.
    q_ref[...] = jnp.sum(z * w3_ref[...], axis=-1, keepdims=True) + b3_ref[...]


def _quantize_per_out_channel(w_t):
    """w_t: (K, N) f32 -> (int8 weights (K,N), f32 scale (1,N)). Symmetric."""
    amax = jnp.max(jnp.abs(w_t), axis=0, keepdims=True)           # (1, N)
    scale = jnp.maximum(amax, 1e-30) / 127.0
    q = jnp.clip(jnp.round(w_t / scale), -127.0, 127.0).astype(jnp.int8)
    return q, scale.astype(jnp.float32)


def prepare_critic_params(p):
    """One-time glue: transpose to (in, out), zero-pad the state dim
    1007 -> 1024, int8-quantize the two large matrices per head with
    per-output-channel scales, stack the two heads on a leading axis."""
    def pad_t(w):  # (out, STATE_DIM) -> (STATE_DIM_PAD, out), zero-padded rows
        return jnp.pad(w.T, ((0, STATE_DIM_PAD - STATE_DIM), (0, 0)))

    w1_q, w1_s = _quantize_per_out_channel(pad_t(p["w1"]))
    w4_q, w4_s = _quantize_per_out_channel(pad_t(p["w4"]))
    w2s_q, w2s_s = _quantize_per_out_channel(p["w2s"].T)
    w5s_q, w5s_s = _quantize_per_out_channel(p["w5s"].T)

    return {
        "w1":  jnp.stack([w1_q, w4_q]),                                # (2,1024,1024) int8
        "s1":  jnp.stack([w1_s, w4_s]),                                # (2,1,1024)    f32
        "b1":  jnp.stack([p["b1"][None, :], p["b4"][None, :]]),        # (2,1,1024)    f32
        "w2s": jnp.stack([w2s_q, w5s_q]),                              # (2,1024,512)  int8
        "s2":  jnp.stack([w2s_s, w5s_s]),                              # (2,1,512)     f32
        "w2a": jnp.stack([p["w2a"].T, p["w5a"].T]),                    # (2,2,512)     f32
        "b2a": jnp.stack([p["b2a"][None, :], p["b5a"][None, :]]),      # (2,1,512)     f32
        "w3":  jnp.stack([p["w3"], p["w6"]]),                          # (2,1,512)     f32 (row form)
        "b3":  jnp.stack([p["b3"][None, :], p["b6"][None, :]]),        # (2,1,1)       f32
    }


@functools.partial(jax.jit, static_argnames=("core_parallel",))
def critic_forward(s, a, prep, *, core_parallel=True):
    """s: (B, STATE_DIM) f32, a: (B, ACTION_DIM) f32 -> (q1, q2), each (B,1) f32."""
    B = s.shape[0]
    if B <= MAX_BATCH_BLOCK:
        block_b = B
        b_pad = B
    else:
        block_b = MAX_BATCH_BLOCK
        b_pad = ((B + block_b - 1) // block_b) * block_b
    num_b_blocks = b_pad // block_b

    s_pad = jnp.pad(
        s.astype(jnp.float32),
        ((0, b_pad - B), (0, STATE_DIM_PAD - STATE_DIM)),
    ).astype(jnp.bfloat16)
    a_pad = jnp.pad(a.astype(jnp.float32), ((0, b_pad - B), (0, 0)))

    args = (s_pad, a_pad, prep["w1"], prep["s1"], prep["b1"],
            prep["w2s"], prep["s2"], prep["w2a"], prep["b2a"],
            prep["w3"], prep["b3"])

    bytes_accessed = (sum(int(x.size) * x.dtype.itemsize for x in args)
                      + NUM_HEADS * b_pad * 4)
    flops = 2 * NUM_HEADS * b_pad * (
        STATE_DIM_PAD * H1 + H1 * H2 + ACTION_DIM * H2 + H2)

    in_specs = [
        # activations: same block for both heads, tiled along batch
        pl.BlockSpec((block_b, STATE_DIM_PAD), lambda h, b: (b, 0)),
        pl.BlockSpec((block_b, ACTION_DIM), lambda h, b: (b, 0)),
        # per-head weights: leading stacked axis selected by head index,
        # independent of the batch index -> not re-DMA'd across batch steps
        pl.BlockSpec((None, STATE_DIM_PAD, H1), lambda h, b: (h, 0, 0)),
        pl.BlockSpec((None, 1, H1), lambda h, b: (h, 0, 0)),
        pl.BlockSpec((None, 1, H1), lambda h, b: (h, 0, 0)),
        pl.BlockSpec((None, H1, H2), lambda h, b: (h, 0, 0)),
        pl.BlockSpec((None, 1, H2), lambda h, b: (h, 0, 0)),
        pl.BlockSpec((None, ACTION_DIM, H2), lambda h, b: (h, 0, 0)),
        pl.BlockSpec((None, 1, H2), lambda h, b: (h, 0, 0)),
        pl.BlockSpec((None, 1, H2), lambda h, b: (h, 0, 0)),
        pl.BlockSpec((None, 1, 1), lambda h, b: (h, 0, 0)),
    ]
    out_spec = pl.BlockSpec((None, block_b, 1), lambda h, b: (h, b, 0))

    if core_parallel:
        # v7x: one Q head per TensorCore -> each core streams only its own
        # ~1.5 MiB int8 weight set.  Batch axis stays a pipelined inner loop.
        dims = (pltpu.CORE_PARALLEL, pltpu.ARBITRARY)
    else:
        dims = (pltpu.PARALLEL, pltpu.ARBITRARY)

    q = pl.pallas_call(
        _critic_kernel,
        out_shape=jax.ShapeDtypeStruct((NUM_HEADS, b_pad, 1), jnp.float32),
        grid=(NUM_HEADS, num_b_blocks),
        in_specs=in_specs,
        out_specs=out_spec,
        compiler_params=pltpu.CompilerParams(
            dimension_semantics=dims,
            vmem_limit_bytes=32 << 20,          # fits v5e/v6e/v7x budgets
        ),
        cost_estimate=pl.CostEstimate(
            flops=flops, transcendentals=0, bytes_accessed=bytes_accessed),
    )(*args)
    return q[0, :B], q[1, :B]


def init_params(key, state_dim, action_dim):
    """Deterministic nn.Linear-style init: U(-1/sqrt(fan_in), 1/sqrt(fan_in))."""
    def linear(k, out_f, in_f):
        kw, kb = jax.random.split(k)
        bound = 1.0 / jnp.sqrt(jnp.float32(in_f))
        w = jax.random.uniform(kw, (out_f, in_f), jnp.float32, -bound, bound)
        b = jax.random.uniform(kb, (out_f,), jnp.float32, -bound, bound)
        return w, b

    ks = jax.random.split(key, 8)
    p = {}
    p["w1"], p["b1"] = linear(ks[0], H1, state_dim)
    p["w2s"], p["b2s"] = linear(ks[1], H2, H1)          # b2s unused (matches PyTorch)
    p["w2a"], p["b2a"] = linear(ks[2], H2, action_dim)
    p["w3"], p["b3"] = linear(ks[3], 1, H2)
    p["w4"], p["b4"] = linear(ks[4], H1, state_dim)
    p["w5s"], p["b5s"] = linear(ks[5], H2, H1)          # b5s unused (matches PyTorch)
    p["w5a"], p["b5a"] = linear(ks[6], H2, action_dim)
    p["w6"], p["b6"] = linear(ks[7], 1, H2)
    return p


def critic_reference(s, a, p):
    """Pure-JAX f32 reference mirroring the PyTorch forward exactly."""
    s1 = jax.nn.relu(s @ p["w1"].T + p["b1"])
    z1 = jax.nn.relu(s1 @ p["w2s"].T + a @ p["w2a"].T + p["b2a"])
    q1 = z1 @ p["w3"].T + p["b3"]
    s2 = jax.nn.relu(s @ p["w4"].T + p["b4"])
    z2 = jax.nn.relu(s2 @ p["w5s"].T + a @ p["w5a"].T + p["b5a"])
    q2 = z2 @ p["w6"].T + p["b6"]
    return q1, q2


if __name__ == "__main__":
    key = jax.random.PRNGKey(0)
    k_p, k_s, k_a = jax.random.split(key, 3)

    batch = 2
    params = init_params(k_p, STATE_DIM, ACTION_DIM)
    prep = prepare_critic_params(params)          # one-time weight preparation
    s = jax.random.normal(k_s, (batch, STATE_DIM), jnp.float32)
    a = jax.random.uniform(k_a, (batch, ACTION_DIM), jnp.float32, -1.0, 1.0)

    try:
        q1, q2 = critic_forward(s, a, prep, core_parallel=True)
        q1 = jax.block_until_ready(q1)
    except Exception:
        # Conservative fallback if CORE_PARALLEL sharding is unavailable on
        # this runtime/generation; numerics are identical.
        q1, q2 = critic_forward(s, a, prep, core_parallel=False)
        q1 = jax.block_until_ready(q1)
    q2 = jax.block_until_ready(q2)

    q1_ref, q2_ref = critic_reference(s, a, params)
    # Tolerance accounts for int8 per-channel weights + bf16 activation
    # streaming (all matmuls still accumulate in f32 on the MXU).
    assert q1.shape == (batch, 1) and q2.shape == (batch, 1)
    assert jnp.allclose(q1, q1_ref, atol=5e-2, rtol=5e-2)
    assert jnp.allclose(q2, q2_ref, atol=5e-2, rtol=5e-2)

    print("KERNEL_OK")
</pallas_src>

<mosaic_0001>
module attributes {stable_mosaic.version = 11 : i64} {
  func.func @_critic_kernel(%arg0: i32, %arg1: i32, %arg2: memref<2x1024xbf16, #tpu.memory_space<vmem>>, %arg3: memref<2x2xf32, #tpu.memory_space<vmem>>, %arg4: memref<1x1024x1024xi8, #tpu.memory_space<vmem>>, %arg5: memref<1x1x1024xf32, #tpu.memory_space<vmem>>, %arg6: memref<1x1x1024xf32, #tpu.memory_space<vmem>>, %arg7: memref<1x1024x512xi8, #tpu.memory_space<vmem>>, %arg8: memref<1x1x512xf32, #tpu.memory_space<vmem>>, %arg9: memref<1x2x512xf32, #tpu.memory_space<vmem>>, %arg10: memref<1x1x512xf32, #tpu.memory_space<vmem>>, %arg11: memref<1x1x512xf32, #tpu.memory_space<vmem>>, %arg12: memref<1x1x1xf32, #tpu.memory_space<vmem>>, %arg13: memref<1x2x1xf32, #tpu.memory_space<vmem>>) attributes {dimension_semantics = [#tpu.dimension_semantics<core_parallel>, #tpu.dimension_semantics<arbitrary>], iteration_bounds = array<i64: 2, 1>, scalar_prefetch = 0 : i64, scratch_operands = 0 : i64, tpu.core_type = #tpu.core_type<tc>, window_params = [{transform_indices = @transform_0, window_bounds = array<i64: 2, 1024>}, {transform_indices = @transform_1, window_bounds = array<i64: 2, 2>}, {transform_indices = @transform_2, window_bounds = array<i64: 1, 1024, 1024>}, {transform_indices = @transform_3, window_bounds = array<i64: 1, 1, 1024>}, {transform_indices = @transform_4, window_bounds = array<i64: 1, 1, 1024>}, {transform_indices = @transform_5, window_bounds = array<i64: 1, 1024, 512>}, {transform_indices = @transform_6, window_bounds = array<i64: 1, 1, 512>}, {transform_indices = @transform_7, window_bounds = array<i64: 1, 2, 512>}, {transform_indices = @transform_8, window_bounds = array<i64: 1, 1, 512>}, {transform_indices = @transform_9, window_bounds = array<i64: 1, 1, 512>}, {transform_indices = @transform_10, window_bounds = array<i64: 1, 1, 1>}, {transform_indices = @transform_11, window_bounds = array<i64: 1, 2, 1>}]} {
    %c0 = arith.constant 0 : index
    %c0_0 = arith.constant 0 : index
    %0 = vector.load %arg2[%c0, %c0_0] : memref<2x1024xbf16, #tpu.memory_space<vmem>>, vector<2x1024xbf16>
    %c0_1 = arith.constant 0 : index
    %c0_2 = arith.constant 0 : index
    %1 = vector.load %arg3[%c0_1, %c0_2] : memref<2x2xf32, #tpu.memory_space<vmem>>, vector<2x2xf32>
    %c0_3 = arith.constant 0 : index
    %c0_4 = arith.constant 0 : index
    %c0_5 = arith.constant 0 : index
    %2 = vector.load %arg4[%c0_3, %c0_4, %c0_5] : memref<1x1024x1024xi8, #tpu.memory_space<vmem>>, vector<1x1024x1024xi8>
    %3 = vector.shape_cast %2 : vector<1x1024x1024xi8> to vector<1024x1024xi8>
    %4 = arith.sitofp %3 : vector<1024x1024xi8> to vector<1024x1024xbf16>
    %cst = arith.constant dense<0.000000e+00> : vector<2x1024xf32>
    %5 = tpu.matmul %0, %4, %cst {dimension_numbers = #tpu.dot_dimension_numbers<[1], [0], [0], [1], [0, 0, 1, 1], [], []>} : vector<2x1024xbf16>, vector<1024x1024xbf16>, vector<2x1024xf32> -> vector<2x1024xf32>
    %c0_6 = arith.constant 0 : index
    %c0_7 = arith.constant 0 : index
    %c0_8 = arith.constant 0 : index
    %6 = vector.load %arg5[%c0_6, %c0_7, %c0_8] : memref<1x1x1024xf32, #tpu.memory_space<vmem>>, vector<1x1x1024xf32>
    %7 = vector.shape_cast %6 : vector<1x1x1024xf32> to vector<1x1024xf32>
    %8 = vector.broadcast %7 : vector<1x1024xf32> to vector<2x1024xf32>
    %9 = arith.mulf %5, %8 : vector<2x1024xf32>
    %c0_9 = arith.constant 0 : index
    %c0_10 = arith.constant 0 : index
    %c0_11 = arith.constant 0 : index
    %10 = vector.load %arg6[%c0_9, %c0_10, %c0_11] : memref<1x1x1024xf32, #tpu.memory_space<vmem>>, vector<1x1x1024xf32>
    %11 = vector.shape_cast %10 : vector<1x1x1024xf32> to vector<1x1024xf32>
    %12 = vector.broadcast %11 : vector<1x1024xf32> to vector<2x1024xf32>
    %13 = arith.addf %9, %12 : vector<2x1024xf32>
    %cst_12 = arith.constant 0.000000e+00 : f32
    %14 = vector.broadcast %cst_12 : f32 to vector<2x1024xf32>
    %15 = arith.maximumf %13, %14 : vector<2x1024xf32>
    %c0_13 = arith.constant 0 : index
    %c0_14 = arith.constant 0 : index
    %c0_15 = arith.constant 0 : index
    %16 = vector.load %arg9[%c0_13, %c0_14, %c0_15] : memref<1x2x512xf32, #tpu.memory_space<vmem>>, vector<1x2x512xf32>
    %17 = vector.shape_cast %16 : vector<1x2x512xf32> to vector<2x512xf32>
    %18 = vector.extract_strided_slice %1 {offsets = [0, 0], sizes = [2, 1], strides = [1, 1]} : vector<2x2xf32> to vector<2x1xf32>
    %19 = vector.extract_strided_slice %17 {offsets = [0, 0], sizes = [1, 512], strides = [1, 1]} : vector<2x512xf32> to vector<1x512xf32>
    %20 = vector.broadcast %18 : vector<2x1xf32> to vector<2x512xf32>
    %21 = vector.broadcast %19 : vector<1x512xf32> to vector<2x512xf32>
    %22 = arith.mulf %20, %21 : vector<2x512xf32>
    %23 = vector.extract_strided_slice %1 {offsets = [0, 1], sizes = [2, 1], strides = [1, 1]} : vector<2x2xf32> to vector<2x1xf32>
    %24 = vector.extract_strided_slice %17 {offsets = [1, 0], sizes = [1, 512], strides = [1, 1]} : vector<2x512xf32> to vector<1x512xf32>
    %25 = vector.broadcast %23 : vector<2x1xf32> to vector<2x512xf32>
    %26 = vector.broadcast %24 : vector<1x512xf32> to vector<2x512xf32>
    %27 = arith.mulf %25, %26 : vector<2x512xf32>
    %28 = arith.addf %22, %27 : vector<2x512xf32>
    %c0_16 = arith.constant 0 : index
    %c0_17 = arith.constant 0 : index
    %c0_18 = arith.constant 0 : index
    %29 = vector.load %arg7[%c0_16, %c0_17, %c0_18] : memref<1x1024x512xi8, #tpu.memory_space<vmem>>, vector<1x1024x512xi8>
    %30 = vector.shape_cast %29 : vector<1x1024x512xi8> to vector<1024x512xi8>
    %31 = arith.sitofp %30 : vector<1024x512xi8> to vector<1024x512xbf16>
    %32 = arith.truncf %15 : vector<2x1024xf32> to vector<2x1024xbf16>
    %cst_19 = arith.constant dense<0.000000e+00> : vector<2x512xf32>
    %33 = tpu.matmul %32, %31, %cst_19 {dimension_numbers = #tpu.dot_dimension_numbers<[1], [0], [0], [1], [0, 0, 1, 1], [], []>} : vector<2x1024xbf16>, vector<1024x512xbf16>, vector<2x512xf32> -> vector<2x512xf32>
    %c0_20 = arith.constant 0 : index
    %c0_21 = arith.constant 0 : index
    %c0_22 = arith.constant 0 : index
    %34 = vector.load %arg8[%c0_20, %c0_21, %c0_22] : memref<1x1x512xf32, #tpu.memory_space<vmem>>, vector<1x1x512xf32>
    %35 = vector.shape_cast %34 : vector<1x1x512xf32> to vector<1x512xf32>
    %36 = vector.broadcast %35 : vector<1x512xf32> to vector<2x512xf32>
    %37 = arith.mulf %33, %36 : vector<2x512xf32>
    %38 = arith.addf %37, %28 : vector<2x512xf32>
    %c0_23 = arith.constant 0 : index
    %c0_24 = arith.constant 0 : index
    %c0_25 = arith.constant 0 : index
    %39 = vector.load %arg10[%c0_23, %c0_24, %c0_25] : memref<1x1x512xf32, #tpu.memory_space<vmem>>, vector<1x1x512xf32>
    %40 = vector.shape_cast %39 : vector<1x1x512xf32> to vector<1x512xf32>
    %41 = vector.broadcast %40 : vector<1x512xf32> to vector<2x512xf32>
    %42 = arith.addf %38, %41 : vector<2x512xf32>
    %cst_26 = arith.constant 0.000000e+00 : f32
    %43 = vector.broadcast %cst_26 : f32 to vector<2x512xf32>
    %44 = arith.maximumf %42, %43 : vector<2x512xf32>
    %c0_27 = arith.constant 0 : index
    %c0_28 = arith.constant 0 : index
    %c0_29 = arith.constant 0 : index
    %45 = vector.load %arg11[%c0_27, %c0_28, %c0_29] : memref<1x1x512xf32, #tpu.memory_space<vmem>>, vector<1x1x512xf32>
    %46 = vector.shape_cast %45 : vector<1x1x512xf32> to vector<1x512xf32>
    %47 = vector.broadcast %46 : vector<1x512xf32> to vector<2x512xf32>
    %48 = arith.mulf %44, %47 : vector<2x512xf32>
    %cst_30 = arith.constant dense<0.000000e+00> : vector<2xf32>
    %49 = vector.multi_reduction <add>, %48, %cst_30 [1] : vector<2x512xf32> to vector<2xf32>
    %50 = vector.shape_cast %49 : vector<2xf32> to vector<2x1xf32>
    %c0_31 = arith.constant 0 : index
    %c0_32 = arith.constant 0 : index
    %c0_33 = arith.constant 0 : index
    %51 = vector.load %arg12[%c0_31, %c0_32, %c0_33] : memref<1x1x1xf32, #tpu.memory_space<vmem>>, vector<1x1x1xf32>
    %52 = vector.shape_cast %51 : vector<1x1x1xf32> to vector<1x1xf32>
    %53 = vector.broadcast %52 : vector<1x1xf32> to vector<2x1xf32>
    %54 = arith.addf %50, %53 : vector<2x1xf32>
    %c0_34 = arith.constant 0 : index
    %c0_35 = arith.constant 0 : index
    %c0_36 = arith.constant 0 : index
    %55 = vector.load %arg13[%c0_34, %c0_35, %c0_36] : memref<1x2x1xf32, #tpu.memory_space<vmem>>, vector<1x2x1xf32>
    %56 = vector.shape_cast %55 : vector<1x2x1xf32> to vector<2x1xf32>
    %57 = vector.shape_cast %54 : vector<2x1xf32> to vector<1x2x1xf32>
    tpu.vector_store %arg13[%c0_34, %c0_35, %c0_36], %57 {strides = array<i32>} : memref<1x2x1xf32, #tpu.memory_space<vmem>>, vector<1x2x1xf32>,
    return
  }
  func.func @transform_0(%arg0: i32, %arg1: i32) -> (i32, i32) {
    %c0_i32 = arith.constant 0 : i32
    %c0_i32_0 = arith.constant 0 : i32
    return %arg1, %c0_i32 : i32, i32
  }
  func.func @transform_1(%arg0: i32, %arg1: i32) -> (i32, i32) {
    %c0_i32 = arith.constant 0 : i32
    %c0_i32_0 = arith.constant 0 : i32
    return %arg1, %c0_i32 : i32, i32
  }
  func.func @transform_2(%arg0: i32, %arg1: i32) -> (i32, i32, i32) {
    %c0_i32 = arith.constant 0 : i32
    %c0_i32_0 = arith.constant 0 : i32
    %c0_i32_1 = arith.constant 0 : i32
    return %arg0, %c0_i32, %c0_i32_0 : i32, i32, i32
  }
  func.func @transform_3(%arg0: i32, %arg1: i32) -> (i32, i32, i32) {
    %c0_i32 = arith.constant 0 : i32
    %c0_i32_0 = arith.constant 0 : i32
    %c0_i32_1 = arith.constant 0 : i32
    return %arg0, %c0_i32, %c0_i32_0 : i32, i32, i32
  }
  func.func @transform_4(%arg0: i32, %arg1: i32) -> (i32, i32, i32) {
    %c0_i32 = arith.constant 0 : i32
    %c0_i32_0 = arith.constant 0 : i32
    %c0_i32_1 = arith.constant 0 : i32
    return %arg0, %c0_i32, %c0_i32_0 : i32, i32, i32
  }
  func.func @transform_5(%arg0: i32, %arg1: i32) -> (i32, i32, i32) {
    %c0_i32 = arith.constant 0 : i32
    %c0_i32_0 = arith.constant 0 : i32
    %c0_i32_1 = arith.constant 0 : i32
    return %arg0, %c0_i32, %c0_i32_0 : i32, i32, i32
  }
  func.func @transform_6(%arg0: i32, %arg1: i32) -> (i32, i32, i32) {
    %c0_i32 = arith.constant 0 : i32
    %c0_i32_0 = arith.constant 0 : i32
    %c0_i32_1 = arith.constant 0 : i32
    return %arg0, %c0_i32, %c0_i32_0 : i32, i32, i32
  }
  func.func @transform_7(%arg0: i32, %arg1: i32) -> (i32, i32, i32) {
    %c0_i32 = arith.constant 0 : i32
    %c0_i32_0 = arith.constant 0 : i32
    %c0_i32_1 = arith.constant 0 : i32
    return %arg0, %c0_i32, %c0_i32_0 : i32, i32, i32
  }
  func.func @transform_8(%arg0: i32, %arg1: i32) -> (i32, i32, i32) {
    %c0_i32 = arith.constant 0 : i32
    %c0_i32_0 = arith.constant 0 : i32
    %c0_i32_1 = arith.constant 0 : i32
    return %arg0, %c0_i32, %c0_i32_0 : i32, i32, i32
  }
  func.func @transform_9(%arg0: i32, %arg1: i32) -> (i32, i32, i32) {
    %c0_i32 = arith.constant 0 : i32
    %c0_i32_0 = arith.constant 0 : i32
    %c0_i32_1 = arith.constant 0 : i32
    return %arg0, %c0_i32, %c0_i32_0 : i32, i32, i32
  }
  func.func @transform_10(%arg0: i32, %arg1: i32) -> (i32, i32, i32) {
    %c0_i32 = arith.constant 0 : i32
    %c0_i32_0 = arith.constant 0 : i32
    %c0_i32_1 = arith.constant 0 : i32
    return %arg0, %c0_i32, %c0_i32_0 : i32, i32, i32
  }
  func.func @transform_11(%arg0: i32, %arg1: i32) -> (i32, i32, i32) {
    %c0_i32 = arith.constant 0 : i32
    %c0_i32_0 = arith.constant 0 : i32
    return %arg0, %arg1, %c0_i32 : i32, i32, i32
  }
}

module attributes {stable_mosaic.version = 11 : i64} {
  func.func @_critic_kernel(%arg0: i32, %arg1: i32, %arg2: memref<2x1024xbf16, #tpu.memory_space<vmem>>, %arg3: memref<2x2xf32, #tpu.memory_space<vmem>>, %arg4: memref<1x1024x1024xi8, #tpu.memory_space<vmem>>, %arg5: memref<1x1x1024xf32, #tpu.memory_space<vmem>>, %arg6: memref<1x1x1024xf32, #tpu.memory_space<vmem>>, %arg7: memref<1x1024x512xi8, #tpu.memory_space<vmem>>, %arg8: memref<1x1x512xf32, #tpu.memory_space<vmem>>, %arg9: memref<1x2x512xf32, #tpu.memory_space<vmem>>, %arg10: memref<1x1x512xf32, #tpu.memory_space<vmem>>, %arg11: memref<1x1x512xf32, #tpu.memory_space<vmem>>, %arg12: memref<1x1x1xf32, #tpu.memory_space<vmem>>, %arg13: memref<1x2x1xf32, #tpu.memory_space<vmem>>) attributes {dimension_semantics = [#tpu.dimension_semantics<parallel>, #tpu.dimension_semantics<arbitrary>], iteration_bounds = array<i64: 2, 1>, scalar_prefetch = 0 : i64, scratch_operands = 0 : i64, tpu.core_type = #tpu.core_type<tc>, window_params = [{transform_indices = @transform_0, window_bounds = array<i64: 2, 1024>}, {transform_indices = @transform_1, window_bounds = array<i64: 2, 2>}, {transform_indices = @transform_2, window_bounds = array<i64: 1, 1024, 1024>}, {transform_indices = @transform_3, window_bounds = array<i64: 1, 1, 1024>}, {transform_indices = @transform_4, window_bounds = array<i64: 1, 1, 1024>}, {transform_indices = @transform_5, window_bounds = array<i64: 1, 1024, 512>}, {transform_indices = @transform_6, window_bounds = array<i64: 1, 1, 512>}, {transform_indices = @transform_7, window_bounds = array<i64: 1, 2, 512>}, {transform_indices = @transform_8, window_bounds = array<i64: 1, 1, 512>}, {transform_indices = @transform_9, window_bounds = array<i64: 1, 1, 512>}, {transform_indices = @transform_10, window_bounds = array<i64: 1, 1, 1>}, {transform_indices = @transform_11, window_bounds = array<i64: 1, 2, 1>}]} {
    %c0 = arith.constant 0 : index
    %c0_0 = arith.constant 0 : index
    %0 = vector.load %arg2[%c0, %c0_0] : memref<2x1024xbf16, #tpu.memory_space<vmem>>, vector<2x1024xbf16>
    %c0_1 = arith.constant 0 : index
    %c0_2 = arith.constant 0 : index
    %1 = vector.load %arg3[%c0_1, %c0_2] : memref<2x2xf32, #tpu.memory_space<vmem>>, vector<2x2xf32>
    %c0_3 = arith.constant 0 : index
    %c0_4 = arith.constant 0 : index
    %c0_5 = arith.constant 0 : index
    %2 = vector.load %arg4[%c0_3, %c0_4, %c0_5] : memref<1x1024x1024xi8, #tpu.memory_space<vmem>>, vector<1x1024x1024xi8>
    %3 = vector.shape_cast %2 : vector<1x1024x1024xi8> to vector<1024x1024xi8>
    %4 = arith.sitofp %3 : vector<1024x1024xi8> to vector<1024x1024xbf16>
    %cst = arith.constant dense<0.000000e+00> : vector<2x1024xf32>
    %5 = tpu.matmul %0, %4, %cst {dimension_numbers = #tpu.dot_dimension_numbers<[1], [0], [0], [1], [0, 0, 1, 1], [], []>} : vector<2x1024xbf16>, vector<1024x1024xbf16>, vector<2x1024xf32> -> vector<2x1024xf32>
    %c0_6 = arith.constant 0 : index
    %c0_7 = arith.constant 0 : index
    %c0_8 = arith.constant 0 : index
    %6 = vector.load %arg5[%c0_6, %c0_7, %c0_8] : memref<1x1x1024xf32, #tpu.memory_space<vmem>>, vector<1x1x1024xf32>
    %7 = vector.shape_cast %6 : vector<1x1x1024xf32> to vector<1x1024xf32>
    %8 = vector.broadcast %7 : vector<1x1024xf32> to vector<2x1024xf32>
    %9 = arith.mulf %5, %8 : vector<2x1024xf32>
    %c0_9 = arith.constant 0 : index
    %c0_10 = arith.constant 0 : index
    %c0_11 = arith.constant 0 : index
    %10 = vector.load %arg6[%c0_9, %c0_10, %c0_11] : memref<1x1x1024xf32, #tpu.memory_space<vmem>>, vector<1x1x1024xf32>
    %11 = vector.shape_cast %10 : vector<1x1x1024xf32> to vector<1x1024xf32>
    %12 = vector.broadcast %11 : vector<1x1024xf32> to vector<2x1024xf32>
    %13 = arith.addf %9, %12 : vector<2x1024xf32>
    %cst_12 = arith.constant 0.000000e+00 : f32
    %14 = vector.broadcast %cst_12 : f32 to vector<2x1024xf32>
    %15 = arith.maximumf %13, %14 : vector<2x1024xf32>
    %c0_13 = arith.constant 0 : index
    %c0_14 = arith.constant 0 : index
    %c0_15 = arith.constant 0 : index
    %16 = vector.load %arg9[%c0_13, %c0_14, %c0_15] : memref<1x2x512xf32, #tpu.memory_space<vmem>>, vector<1x2x512xf32>
    %17 = vector.shape_cast %16 : vector<1x2x512xf32> to vector<2x512xf32>
    %18 = vector.extract_strided_slice %1 {offsets = [0, 0], sizes = [2, 1], strides = [1, 1]} : vector<2x2xf32> to vector<2x1xf32>
    %19 = vector.extract_strided_slice %17 {offsets = [0, 0], sizes = [1, 512], strides = [1, 1]} : vector<2x512xf32> to vector<1x512xf32>
    %20 = vector.broadcast %18 : vector<2x1xf32> to vector<2x512xf32>
    %21 = vector.broadcast %19 : vector<1x512xf32> to vector<2x512xf32>
    %22 = arith.mulf %20, %21 : vector<2x512xf32>
    %23 = vector.extract_strided_slice %1 {offsets = [0, 1], sizes = [2, 1], strides = [1, 1]} : vector<2x2xf32> to vector<2x1xf32>
    %24 = vector.extract_strided_slice %17 {offsets = [1, 0], sizes = [1, 512], strides = [1, 1]} : vector<2x512xf32> to vector<1x512xf32>
    %25 = vector.broadcast %23 : vector<2x1xf32> to vector<2x512xf32>
    %26 = vector.broadcast %24 : vector<1x512xf32> to vector<2x512xf32>
    %27 = arith.mulf %25, %26 : vector<2x512xf32>
    %28 = arith.addf %22, %27 : vector<2x512xf32>
    %c0_16 = arith.constant 0 : index
    %c0_17 = arith.constant 0 : index
    %c0_18 = arith.constant 0 : index
    %29 = vector.load %arg7[%c0_16, %c0_17, %c0_18] : memref<1x1024x512xi8, #tpu.memory_space<vmem>>, vector<1x1024x512xi8>
    %30 = vector.shape_cast %29 : vector<1x1024x512xi8> to vector<1024x512xi8>
    %31 = arith.sitofp %30 : vector<1024x512xi8> to vector<1024x512xbf16>
    %32 = arith.truncf %15 : vector<2x1024xf32> to vector<2x1024xbf16>
    %cst_19 = arith.constant dense<0.000000e+00> : vector<2x512xf32>
    %33 = tpu.matmul %32, %31, %cst_19 {dimension_numbers = #tpu.dot_dimension_numbers<[1], [0], [0], [1], [0, 0, 1, 1], [], []>} : vector<2x1024xbf16>, vector<1024x512xbf16>, vector<2x512xf32> -> vector<2x512xf32>
    %c0_20 = arith.constant 0 : index
    %c0_21 = arith.constant 0 : index
    %c0_22 = arith.constant 0 : index
    %34 = vector.load %arg8[%c0_20, %c0_21, %c0_22] : memref<1x1x512xf32, #tpu.memory_space<vmem>>, vector<1x1x512xf32>
    %35 = vector.shape_cast %34 : vector<1x1x512xf32> to vector<1x512xf32>
    %36 = vector.broadcast %35 : vector<1x512xf32> to vector<2x512xf32>
    %37 = arith.mulf %33, %36 : vector<2x512xf32>
    %38 = arith.addf %37, %28 : vector<2x512xf32>
    %c0_23 = arith.constant 0 : index
    %c0_24 = arith.constant 0 : index
    %c0_25 = arith.constant 0 : index
    %39 = vector.load %arg10[%c0_23, %c0_24, %c0_25] : memref<1x1x512xf32, #tpu.memory_space<vmem>>, vector<1x1x512xf32>
    %40 = vector.shape_cast %39 : vector<1x1x512xf32> to vector<1x512xf32>
    %41 = vector.broadcast %40 : vector<1x512xf32> to vector<2x512xf32>
    %42 = arith.addf %38, %41 : vector<2x512xf32>
    %cst_26 = arith.constant 0.000000e+00 : f32
    %43 = vector.broadcast %cst_26 : f32 to vector<2x512xf32>
    %44 = arith.maximumf %42, %43 : vector<2x512xf32>
    %c0_27 = arith.constant 0 : index
    %c0_28 = arith.constant 0 : index
    %c0_29 = arith.constant 0 : index
    %45 = vector.load %arg11[%c0_27, %c0_28, %c0_29] : memref<1x1x512xf32, #tpu.memory_space<vmem>>, vector<1x1x512xf32>
    %46 = vector.shape_cast %45 : vector<1x1x512xf32> to vector<1x512xf32>
    %47 = vector.broadcast %46 : vector<1x512xf32> to vector<2x512xf32>
    %48 = arith.mulf %44, %47 : vector<2x512xf32>
    %cst_30 = arith.constant dense<0.000000e+00> : vector<2xf32>
    %49 = vector.multi_reduction <add>, %48, %cst_30 [1] : vector<2x512xf32> to vector<2xf32>
    %50 = vector.shape_cast %49 : vector<2xf32> to vector<2x1xf32>
    %c0_31 = arith.constant 0 : index
    %c0_32 = arith.constant 0 : index
    %c0_33 = arith.constant 0 : index
    %51 = vector.load %arg12[%c0_31, %c0_32, %c0_33] : memref<1x1x1xf32, #tpu.memory_space<vmem>>, vector<1x1x1xf32>
    %52 = vector.shape_cast %51 : vector<1x1x1xf32> to vector<1x1xf32>
    %53 = vector.broadcast %52 : vector<1x1xf32> to vector<2x1xf32>
    %54 = arith.addf %50, %53 : vector<2x1xf32>
    %c0_34 = arith.constant 0 : index
    %c0_35 = arith.constant 0 : index
    %c0_36 = arith.constant 0 : index
    %55 = vector.load %arg13[%c0_34, %c0_35, %c0_36] : memref<1x2x1xf32, #tpu.memory_space<vmem>>, vector<1x2x1xf32>
    %56 = vector.shape_cast %55 : vector<1x2x1xf32> to vector<2x1xf32>
    %57 = vector.shape_cast %54 : vector<2x1xf32> to vector<1x2x1xf32>
    tpu.vector_store %arg13[%c0_34, %c0_35, %c0_36], %57 {strides = array<i32>} : memref<1x2x1xf32, #tpu.memory_space<vmem>>, vector<1x2x1xf32>,
    return
  }
  func.func @transform_0(%arg0: i32, %arg1: i32) -> (i32, i32) {
    %c0_i32 = arith.constant 0 : i32
    %c0_i32_0 = arith.constant 0 : i32
    return %arg1, %c0_i32 : i32, i32
  }
  func.func @transform_1(%arg0: i32, %arg1: i32) -> (i32, i32) {
    %c0_i32 = arith.constant 0 : i32
    %c0_i32_0 = arith.constant 0 : i32
    return %arg1, %c0_i32 : i32, i32
  }
  func.func @transform_2(%arg0: i32, %arg1: i32) -> (i32, i32, i32) {
    %c0_i32 = arith.constant 0 : i32
    %c0_i32_0 = arith.constant 0 : i32
    %c0_i32_1 = arith.constant 0 : i32
    return %arg0, %c0_i32, %c0_i32_0 : i32, i32, i32
  }
  func.func @transform_3(%arg0: i32, %arg1: i32) -> (i32, i32, i32) {
    %c0_i32 = arith.constant 0 : i32
    %c0_i32_0 = arith.constant 0 : i32
    %c0_i32_1 = arith.constant 0 : i32
    return %arg0, %c0_i32, %c0_i32_0 : i32, i32, i32
  }
  func.func @transform_4(%arg0: i32, %arg1: i32) -> (i32, i32, i32) {
    %c0_i32 = arith.constant 0 : i32
    %c0_i32_0 = arith.constant 0 : i32
    %c0_i32_1 = arith.constant 0 : i32
    return %arg0, %c0_i32, %c0_i32_0 : i32, i32, i32
  }
  func.func @transform_5(%arg0: i32, %arg1: i32) -> (i32, i32, i32) {
    %c0_i32 = arith.constant 0 : i32
    %c0_i32_0 = arith.constant 0 : i32
    %c0_i32_1 = arith.constant 0 : i32
    return %arg0, %c0_i32, %c0_i32_0 : i32, i32, i32
  }
  func.func @transform_6(%arg0: i32, %arg1: i32) -> (i32, i32, i32) {
    %c0_i32 = arith.constant 0 : i32
    %c0_i32_0 = arith.constant 0 : i32
    %c0_i32_1 = arith.constant 0 : i32
    return %arg0, %c0_i32, %c0_i32_0 : i32, i32, i32
  }
  func.func @transform_7(%arg0: i32, %arg1: i32) -> (i32, i32, i32) {
    %c0_i32 = arith.constant 0 : i32
    %c0_i32_0 = arith.constant 0 : i32
    %c0_i32_1 = arith.constant 0 : i32
    return %arg0, %c0_i32, %c0_i32_0 : i32, i32, i32
  }
  func.func @transform_8(%arg0: i32, %arg1: i32) -> (i32, i32, i32) {
    %c0_i32 = arith.constant 0 : i32
    %c0_i32_0 = arith.constant 0 : i32
    %c0_i32_1 = arith.constant 0 : i32
    return %arg0, %c0_i32, %c0_i32_0 : i32, i32, i32
  }
  func.func @transform_9(%arg0: i32, %arg1: i32) -> (i32, i32, i32) {
    %c0_i32 = arith.constant 0 : i32
    %c0_i32_0 = arith.constant 0 : i32
    %c0_i32_1 = arith.constant 0 : i32
    return %arg0, %c0_i32, %c0_i32_0 : i32, i32, i32
  }
  func.func @transform_10(%arg0: i32, %arg1: i32) -> (i32, i32, i32) {
    %c0_i32 = arith.constant 0 : i32
    %c0_i32_0 = arith.constant 0 : i32
    %c0_i32_1 = arith.constant 0 : i32
    return %arg0, %c0_i32, %c0_i32_0 : i32, i32, i32
  }
  func.func @transform_11(%arg0: i32, %arg1: i32) -> (i32, i32, i32) {
    %c0_i32 = arith.constant 0 : i32
    %c0_i32_0 = arith.constant 0 : i32
    return %arg0, %arg1, %c0_i32 : i32, i32, i32
  }
}

</mosaic_0001>

<bundles_post_ra>
// kernel: critic_forward.1
= control target key start
LH: loop header
LB: loop body
LE: loop exit
PB: predicated region body
PF: predicated region fallthrough
CT: control target
= control target key end

     0   :  { %s5060_s0 = inlined_call_operand.vmem [shape: bf16[2,1024], index: 0, kind: input, shape index: {}]   ;;  %s5061_s1 = inlined_call_operand.hbm [shape: f32[2,2], index: 1, kind: input, shape index: {}]   ;;  %s5062_s2 = inlined_call_operand.hbm [shape: s8[2,1024,1024], index: 2, kind: input, shape index: {}]   ;;  %s5063_s3 = inlined_call_operand.hbm [shape: f32[2,1,1024], index: 3, kind: input, shape index: {}]   ;;  %s5064_s4 = inlined_call_operand.hbm [shape: f32[2,1,1024], index: 4, kind: input, shape index: {}]   ;;  %s5065_s5 = inlined_call_operand.hbm [shape: s8[2,1024,512], index: 5, kind: input, shape index: {}]   ;;  %s5066_s6 = inlined_call_operand.hbm [shape: f32[2,1,512], index: 6, kind: input, shape index: {}]   ;;  %s5067_s7 = inlined_call_operand.hbm [shape: f32[2,2,512], index: 7, kind: input, shape index: {}]   ;;  %s5068_s8 = inlined_call_operand.hbm [shape: f32[2,1,512], index: 8, kind: input, shape index: {}]   ;;  %s5069_s9 = inlined_call_operand.hbm [shape: f32[2,1,512], index: 9, kind: input, shape index: {}]   ;;  %s5070_s10 = inlined_call_operand.vmem [shape: f32[2,1,1], index: 10, kind: input, shape index: {}]   ;;  %s5071_s11 = inlined_call_operand.vmem [shape: f32[2,2,1], index: 11, kind: output, shape index: {}]  }
   0x1   :  { %5084 = sst [smem:[#allocation25_spill]] %s5060_s0 }
   0x2   :  { %5085 = sst [smem:[#allocation26_spill]] %s5061_s1 }
   0x3   :  { %5086 = sst [smem:[#allocation27_spill]] %s5062_s2 }
   0x4   :  { %5087 = sst [smem:[#allocation28_spill]] %s5063_s3 }
   0x5   :  { %5088 = sst [smem:[#allocation29_spill]] %s5064_s4 }
   0x6   :  { %5089 = sst [smem:[#allocation30_spill]] %s5065_s5 }
   0x7   :  { %5090 = sst [smem:[#allocation31_spill]] %s5066_s6 }
   0x8   :  { %5091 = sst [smem:[#allocation32_spill]] %s5068_s8 }
   0x9   :  { %5092 = sst [smem:[#allocation33_spill]] %s5069_s9 }
   0xa   :  { %5093 = sst [smem:[#allocation34_spill]] %s5070_s10 }
   0xb   :  { %5094 = sst [smem:[#allocation35_spill]] %s5071_s11 }
   0xc   :  { %16 = vsyncpa [#allocation3], 0 }
   0xd   :  { %17 = vsyncpa [#allocation5], 0 }
   0xe   :  { %19 = vsyncpa [#allocation5 + $0x1], 0 }
   0xf   :  { %20 = vsyncpa [#allocation8], 0 }
  0x10   :  { %22 = vsyncpa [#allocation8 + $0x1], 0 }
  0x11   :  { %23 = vsyncpa [#allocation11], 0 }
  0x12   :  { %25 = vsyncpa [#allocation11 + $0x1], 0 }
  0x13   :  { %26 = vsyncpa [#allocation14], 0 }
  0x14   :  { %28 = vsyncpa [#allocation14 + $0x1], 0  ;;  %s4074_s17 = smov 0   ;;  %s4076_s18 = smov 0  }
  0x15   :  { %s4078_s19 = smov 0   ;;  %s4080_s20 = smov 0  }
  0x16   :  { %s4082_s21 = smov 0   ;;  %s4084_s22 = smov 0  }
  0x17 LB: > { %5095 = sst [smem:[#allocation21_spill]] %s3984_s19  ;;  %s46_s23 = sadd.s32 1, %s3992_s21  ;;  %s3996_s22 = sphi %s4084_s22, %s34_s22   ;;  %s3992_s21 = sphi %s4082_s21, %s5130_s21   ;;  %s3988_s20 = sphi %s4080_s20, %s5129_s20   ;;  %s3984_s19 = sphi %s4078_s19, %s5125_s19   ;;  %s3980_s18 = sphi %s4076_s18, %s5128_s18   ;;  %s3976_s17 = sphi %s4074_s17, %s5127_s17  }
  0x18   : > { %5096 = sst [smem:[#allocation22_spill]] %s3988_s20  ;;  %s105_s24 = sadd.s32 1, %s3984_s19 }
  0x19   : > { %p48_p0 = scmp.ge.s32.totalorder %s46_s23, 2  ;;  %p112_p1 = scmp.ne.s32.totalorder %s3984_s19, %s3980_s18 }
  0x1a   : > { %p113_p2 = scmp.eq.s32.totalorder %s3996_s22, 0  ;;  %p3617_p4 = scmp.lt.s32.totalorder %s3996_s22, 2 }
  0x1b   : > { %s5132_s23 = smov (%p48_p0, %s46_s23), 0  ;;  %s4115_s26 = sand.u32 1, %s3996_s22  }
  0x1c   : > { %5097 = sst [smem:[#allocation23_spill]] %s5132_s23  ;;  %p114_p3 = por %p113_p2, %p112_p1 }
  0x1d   : > { %s102_s25 = ssub.s32 %s3992_s21, %s5132_s23  ;;  %s4118_s27 = sand.u32 1, %s3984_s19  }
  0x1e   : > { %p103_p5 = scmp.eq.s32.totalorder %s102_s25, 0  ;;  %s3559_s28 = sshll.u32 %s3992_s21, 15 }
  0x1f   : > { %s3521_s30 = sshll.u32 %s4118_s27, 11  ;;  %s5099_s2 = sld [smem:[#allocation27_spill]] }
  0x20   : > { %s4122_s29 = scalar_select %p103_p5, %s3984_s19, %s105_s24  }
  0x21   : > { %p4128_p6 = pnand %p3617_p4, %p114_p3  ;;  %s402_s16 = scalar_lea.vmem [#allocation4], %s3521_s30 }
  0x22   : > { %5098 = sst [smem:[#allocation24_spill]] %s4122_s29  ;;  %s409_s23 = sshll.u32 %s402_s16, 4  ;;  %s410_s23 = int_to_ptr.vmem [resolvable:$true] %s409_s23 }
  0x23   : > { %s4133_s25 = sshll.u32 %s4118_s27, 3  ;;  %s5076_s11 = scalar_lea.sflag [#allocation5], %s4115_s26 }
  0x24   : > { %p4138_p7 = pneg %p4128_p6  ;;  %s3693_s29 = scalar_lea.vmem %s410_s23, 32768 }
  0x25   : > { %s408_s14 = scalar_lea.hbm %s5099_s2, %s3559_s28  ;;  %p3694_p8 = scmp.ne.s32.totalorder %s410_s23, %s3693_s29 }
  0x26   : > { %s3998_s28 = smov [#allocation4]  }
  0x27   : > { %p3696_p9 = pnand %p3694_p8, %p4138_p7  ;;  %s3698_s12 = sshll.u32 %s3998_s28, 4  ;;  %s3699_s12 = int_to_ptr.vmem [resolvable:$false] %s3698_s12 }
  0x28   : > { %s3700_s30 = scalar_lea.vmem %s3699_s12, 65536  ;;  %p3701_p11 = scmp.lt.s32.totalorder %s410_s23, %s3699_s12 }
  0x29   : > { %p3697_p10 = pneg %p3696_p9  ;;  %p3702_p12 = scmp.lt.s32.totalorder %s3700_s30, %s3693_s29 }
  0x2b   : > { %p3703_p13 = por %p3702_p12, %p3701_p11 }
  0x2d   : > { %p3704_p0 = pnand %p3703_p13, %p3697_p10 }
  0x2f   : > { %3707 = shalt.err (!%p3704_p0)
}
  0x30   : > { %s3999_s13 = smov 1024   ;;  %s4000_s16 = smov 64  }
  0x31   : > { %3594 = dma.hbm_to_vmem [thread:$0]  (!%p4128_p6), %s408_s14, 32768, %s410_s23, %s5076_s11, %s3999_s13, %s3999_s13, %s4000_s16  }
  0x32   : > { %s4149_s28 = sshll.u32 %s3992_s21, 7  ;;  %s5102_s4 = sld [smem:[#allocation29_spill]] }
  0x33   : > { %s442_s2 = scalar_lea.vmem [#allocation7], %s4133_s25  ;;  %s4157_s10 = sshll.u32 %s4118_s27, 2 }
  0x34   : > { %s450_s19 = sshll.u32 %s442_s2, 4  ;;  %s5077_s20 = scalar_lea.sflag [#allocation8], %s4115_s26  ;;  %s451_s19 = int_to_ptr.vmem [resolvable:$true] %s450_s19 }
  0x35   : > { %s3721_s0 = scalar_lea.vmem %s451_s19, 128  ;;  %s4001_s9 = smov [#allocation7]  }
  0x36   : > { %p3722_p1 = scmp.ne.s32.totalorder %s451_s19, %s3721_s0  ;;  %s3726_s23 = sshll.u32 %s4001_s9, 4  ;;  %s3727_s23 = int_to_ptr.vmem [resolvable:$false] %s3726_s23 }
  0x37   : > { %s3728_s14 = scalar_lea.vmem %s3727_s23, 256  ;;  %p3729_p4 = scmp.lt.s32.totalorder %s451_s19, %s3727_s23 }
  0x38   : > { %s448_s30 = scalar_lea.hbm %s5102_s4, %s4149_s28  ;;  %p3724_p2 = pnand %p3722_p1, %p4138_p7 }
  0x39   : > { %p3730_p5 = scmp.lt.s32.totalorder %s3728_s14, %s3721_s0 }
  0x3a   : > { %p3725_p3 = pneg %p3724_p2 }
  0x3b   : > { %p3731_p8 = por %p3730_p5, %p3729_p4 }
  0x3d   : > { %p3732_p9 = pnand %p3731_p8, %p3725_p3 }
  0x3f   : > { %3735 = shalt.err (!%p3732_p9)
}
  0x40   : > { %3600 = dma.hbm_to_vmem [thread:$0]  (!%p4128_p6), %s448_s30, 128, %s451_s19, %s5077_s20  }
  0x41   : > { %s4167_s2 = sshll.u32 %s3992_s21, 6  ;;  %s5103_s6 = sld [smem:[#allocation31_spill]] }
  0x42   : > { %s482_s0 = scalar_lea.vmem [#allocation10], %s4157_s10  ;;  %s5080_s29 = scalar_lea.sflag [#allocation11], %s4115_s26 }
  0x43   : > { %s490_s12 = sshll.u32 %s482_s0, 4  ;;  %s4002_s14 = smov [#allocation10]   ;;  %s491_s12 = int_to_ptr.vmem [resolvable:$true] %s490_s12 }
  0x44   : > { %s3749_s23 = scalar_lea.vmem %s491_s12, 64  ;;  %s3754_s11 = sshll.u32 %s4002_s14, 4  ;;  %s3755_s11 = int_to_ptr.vmem [resolvable:$false] %s3754_s11 }
  0x45   : > { %p3750_p10 = scmp.ne.s32.totalorder %s491_s12, %s3749_s23  ;;  %s3756_s19 = scalar_lea.vmem %s3755_s11, 128 }
  0x46   : > { %p3757_p13 = scmp.lt.s32.totalorder %s491_s12, %s3755_s11  ;;  %p3758_p0 = scmp.lt.s32.totalorder %s3756_s19, %s3749_s23 }
  0x47   : > { %s488_s16 = scalar_lea.hbm %s5103_s6, %s4167_s2  ;;  %p3752_p11 = pnand %p3750_p10, %p4138_p7 }
  0x48   : > { %p3759_p1 = por %p3758_p0, %p3757_p13 }
  0x49   : > { %p3753_p12 = pneg %p3752_p11 }
  0x4b   : > { %p3760_p2 = pnand %p3759_p1, %p3753_p12 }
  0x4d   : > { %3763 = shalt.err (!%p3760_p2)
}
  0x4e   : > { %3606 = dma.hbm_to_vmem [thread:$0]  (!%p4128_p6), %s488_s16, 64, %s491_s12, %s5080_s29  }
  0x4f   : > { %s5104_s8 = sld [smem:[#allocation32_spill]]  ;;  %s520_s0 = scalar_lea.vmem [#allocation13], %s4157_s10 }
  0x50   : > { %s528_s14 = sshll.u32 %s520_s0, 4  ;;  %s5079_s11 = scalar_lea.sflag [#allocation14], %s4115_s26  ;;  %s529_s14 = int_to_ptr.vmem [resolvable:$true] %s528_s14 }
  0x51   : > { %s3777_s23 = scalar_lea.vmem %s529_s14, 64  ;;  %s4003_s19 = smov [#allocation13]  }
  0x52   : > { %p3778_p3 = scmp.ne.s32.totalorder %s529_s14, %s3777_s23  ;;  %s3782_s20 = sshll.u32 %s4003_s19, 4  ;;  %s3783_s20 = int_to_ptr.vmem [resolvable:$false] %s3782_s20 }
  0x53   : > { %s3784_s4 = scalar_lea.vmem %s3783_s20, 128  ;;  %p3785_p8 = scmp.lt.s32.totalorder %s529_s14, %s3783_s20 }
  0x54   : > { %p3780_p4 = pnand %p3778_p3, %p4138_p7  ;;  %p3786_p9 = scmp.lt.s32.totalorder %s3784_s4, %s3777_s23 }
  0x55   : > { %s526_s13 = scalar_lea.hbm %s5104_s8, %s4167_s2 }
  0x56   : > { %p3781_p5 = pneg %p3780_p4  ;;  %p3787_p10 = por %p3786_p9, %p3785_p8 }
  0x58   : > { %p3788_p11 = pnand %p3787_p10, %p3781_p5 }
  0x5a   : > { %3791 = shalt.err (!%p3788_p11)
}
  0x5b   : > { %3612 = dma.hbm_to_vmem [thread:$0]  (!%p4128_p6), %s526_s13, 64, %s529_s14, %s5079_s11  }
  0x5c   : > { %s5078_s16 = sadd.s32 4294967295, %s3996_s22   ;;  %p118_p12 = scmp.ne.s32.totalorder %s3980_s18, %s3976_s17 }
  0x5d   : > { %p4198_p13 = scmp.eq.s32.totalorder %s5078_s16, 0  ;;  %p3517_p0 = scmp.ge.s32.totalorder %s3996_s22, 1 }
  0x5e   : > { %p365_p1 = scmp.lt.s32.totalorder %s3996_s22, 3  ;;  %s4004_s17 = smov [#allocation2]  }
  0x5f   : > { %s5105_s4 = scalar_select %p4198_p13, 1, 0 }
  0x60   : > { %p4206_p2 = por %p4198_p13, %p118_p12  ;;  %p4210_p3 = pnand %p3517_p0, %p365_p1 }
  0x61   : > { %s387_s30 = sshll.u32 %s4004_s17, 4  ;;  %s5108_s3 = sld [smem:[#allocation28_spill]]  ;;  %s4214_s30 = int_to_ptr.vmem [resolvable:$true] %s387_s30 }
  0x62   : > { %s5106_s20 = scalar_select %p4206_p2, 1, 0 }
  0x63   : > { %p3587_p4 = pneg %p4210_p3  ;;  %s423_s14 = scalar_lea.vmem [#allocation6], %s4133_s25 }
  0x64   : > { %s431_s23 = sshll.u32 %s423_s14, 4  ;;  %s3530_s19 = sshll.u32 %s4118_s27, 10  ;;  %s432_s23 = int_to_ptr.vmem [resolvable:$true] %s431_s23 }
  0x65   : > { %p4226_p5 = pnand %p3587_p4, %p4198_p13  ;;  %s3805_s11 = scalar_lea.vmem %s432_s23, 128 }
  0x66   : > { %p3806_p8 = scmp.ne.s32.totalorder %s432_s23, %s3805_s11  ;;  %s4005_s17 = smov [#allocation6]  }
  0x67   : > { %s429_s0 = scalar_lea.hbm %s5108_s3, %s4149_s28  ;;  %s3810_s29 = sshll.u32 %s4005_s17, 4  ;;  %s3811_s29 = int_to_ptr.vmem [resolvable:$false] %s3810_s29 }
  0x68   : > { %p3808_p9 = pnand %p3806_p8, %p4138_p7  ;;  %s3812_s6 = scalar_lea.vmem %s3811_s29, 256 }
  0x69   : > { %p3813_p11 = scmp.lt.s32.totalorder %s432_s23, %s3811_s29  ;;  %p3814_p12 = scmp.lt.s32.totalorder %s3812_s6, %s3805_s11 }
  0x6a   : > { %p3809_p10 = pneg %p3808_p9 }
  0x6b   : > { %p3815_p0 = por %p3814_p12, %p3813_p11 }
  0x6d   : > { %p3816_p1 = pnand %p3815_p0, %p3809_p10 }
  0x6f   : > { %3819 = shalt.err (!%p3816_p1)
}
  0x70   : > { %s5110_s27 = scalar_lea.sflag [#allocation5], %s4115_s26  ;;  %p3822_p4 = pneg %p4226_p5 }
  0x71   : > { %3597 = dma.hbm_to_vmem [thread:$0]  (!%p4128_p6), %s429_s0, 128, %s432_s23, %s5110_s27  }
  0x72   : > { %s3831_s9 = scalar_lea.vmem %s4214_s30, 32  ;;  %p3839_p13 = scmp.lt.s32.totalorder %s4214_s30, %s4214_s30 }
  0x73   : > { %p3832_p8 = scmp.ne.s32.totalorder %s4214_s30, %s3831_s9  ;;  %p3840_p11 = scmp.lt.s32.totalorder %s3831_s9, %s3831_s9 }
  0x75   : > { %p3834_p9 = pnand %p3832_p8, %p3822_p4  ;;  %p3841_p10 = por %p3840_p11, %p3839_p13 }
  0x77   : > { %p3835_p2 = pneg %p3834_p9 }
  0x79   : > { %p3842_p12 = pnand %p3841_p10, %p3835_p2 }
  0x7b   : > { %3845 = shalt.err (!%p3842_p12)
}
  0x7c   : > { %s5111_s1 = sld [smem:[#allocation26_spill]]  ;;  %s3562_s11 = sshll.u32 %s3992_s21, 14 }
  0x7d   : > { %s461_s13 = scalar_lea.vmem [#allocation9], %s3530_s19  ;;  %s5112_s5 = sld [smem:[#allocation30_spill]] }
  0x7e   : > { %s468_s0 = sshll.u32 %s461_s13, 4  ;;  %s4006_s16 = smov [#allocation9]   ;;  %s469_s0 = int_to_ptr.vmem [resolvable:$true] %s468_s0 }
  0x7f   : > { %s3859_s27 = scalar_lea.vmem %s469_s0, 16384  ;;  %s3864_s9 = sshll.u32 %s4006_s16, 4  ;;  %s3865_s9 = int_to_ptr.vmem [resolvable:$false] %s3864_s9 }
  0x80   : > { %p3860_p13 = scmp.ne.s32.totalorder %s469_s0, %s3859_s27  ;;  %s3866_s6 = scalar_lea.vmem %s3865_s9, 32768 }
  0x81   : > { %p3867_p1 = scmp.lt.s32.totalorder %s469_s0, %s3865_s9  ;;  %p3868_p4 = scmp.lt.s32.totalorder %s3866_s6, %s3859_s27 }
  0x82   : > { %3590 = dma.hbm_to_vmem [thread:$0]  (!%p4226_p5), %s5111_s1, 32, %s4214_s30, [#allocation3]  }
  0x83   : > { %s467_s17 = scalar_lea.hbm %s5112_s5, %s3562_s11  ;;  %p3862_p2 = pnand %p3860_p13, %p4138_p7 }
  0x84   : > { %p3869_p5 = por %p3868_p4, %p3867_p1 }
  0x85   : > { %p3863_p0 = pneg %p3862_p2 }
  0x87   : > { %p3870_p8 = pnand %p3869_p5, %p3863_p0 }
  0x89   : > { %3873 = shalt.err (!%p3870_p8)
}
  0x8a   : > { %s4007_s30 = smov 512   ;;  %s4008_s19 = smov 32  }
  0x8b   : > { %s5113_s29 = scalar_lea.sflag [#allocation8], %s4115_s26  ;;  %s507_s14 = scalar_lea.hbm %s5067_s7, %s4149_s28 }
  0x8c   : > { %3603 = dma.hbm_to_vmem [thread:$0]  (!%p4128_p6), %s467_s17, 16384, %s469_s0, %s5113_s29, %s4007_s30, %s4007_s30, %s4008_s19  }
  0x8d   : > { %s501_s23 = scalar_lea.vmem [#allocation12], %s4133_s25  ;;  %s5114_s6 = sld [smem:[#allocation33_spill]] }
  0x8e   : > { %s509_s27 = sshll.u32 %s501_s23, 4  ;;  %s4009_s5 = smov [#allocation12]   ;;  %s510_s27 = int_to_ptr.vmem [resolvable:$true] %s509_s27 }
  0x8f   : > { %s3887_s3 = scalar_lea.vmem %s510_s27, 128  ;;  %s3892_s8 = sshll.u32 %s4009_s5, 4  ;;  %s3893_s8 = int_to_ptr.vmem [resolvable:$false] %s3892_s8 }
  0x90   : > { %p3888_p9 = scmp.ne.s32.totalorder %s510_s27, %s3887_s3  ;;  %s3894_s0 = scalar_lea.vmem %s3893_s8, 256 }
  0x91   : > { %p3895_p12 = scmp.lt.s32.totalorder %s510_s27, %s3893_s8  ;;  %p3896_p13 = scmp.lt.s32.totalorder %s3894_s0, %s3887_s3 }
  0x92   : > { %p3890_p11 = pnand %p3888_p9, %p4138_p7 }
  0x93   : > { %s545_s1 = scalar_lea.hbm %s5114_s6, %s4167_s2  ;;  %p3897_p2 = por %p3896_p13, %p3895_p12 }
  0x94   : > { %p3891_p10 = pneg %p3890_p11 }
  0x96   : > { %p3898_p0 = pnand %p3897_p2, %p3891_p10 }
  0x98   : > { %3901 = shalt.err (!%p3898_p0)
}
  0x99   : > { %s5115_s25 = scalar_lea.sflag [#allocation11], %s4115_s26  ;;  %s539_s28 = scalar_lea.vmem [#allocation15], %s4157_s10 }
  0x9a   : > { %3609 = dma.hbm_to_vmem [thread:$0]  (!%p4128_p6), %s507_s14, 128, %s510_s27, %s5115_s25  }
  0x9b   : > { %s547_s17 = sshll.u32 %s539_s28, 4  ;;  %s4010_s5 = smov [#allocation15]   ;;  %s548_s17 = int_to_ptr.vmem [resolvable:$true] %s547_s17 }
  0x9c   : > { %s3915_s30 = scalar_lea.vmem %s548_s17, 64  ;;  %s3920_s3 = sshll.u32 %s4010_s5, 4  ;;  %s3921_s3 = int_to_ptr.vmem [resolvable:$false] %s3920_s3 }
  0x9d   : > { %p3916_p1 = scmp.ne.s32.totalorder %s548_s17, %s3915_s30  ;;  %s3922_s8 = scalar_lea.vmem %s3921_s3, 128 }
  0x9e   : > { %p3923_p8 = scmp.lt.s32.totalorder %s548_s17, %s3921_s3  ;;  %p3924_p9 = scmp.lt.s32.totalorder %s3922_s8, %s3915_s30 }
  0x9f   : > { %p3918_p4 = pnand %p3916_p1, %p4138_p7 }
  0xa0   : > { %p3925_p11 = por %p3924_p9, %p3923_p8 }
  0xa1   : > { %p3919_p5 = pneg %p3918_p4 }
  0xa3   : > { %p3926_p10 = pnand %p3925_p11, %p3919_p5 }
  0xa5   : > { %3929 = shalt.err (!%p3926_p10)
}
  0xa6   : > { %s5116_s10 = scalar_lea.sflag [#allocation14], %s4115_s26  ;;  %562 = sbr.rel (%p4210_p3) target bundleno = 1390 (0x56e), region = 64 }
  0xa7   : > { %3615 = dma.hbm_to_vmem [thread:$0]  (!%p4128_p6), %s545_s1, 64, %s548_s17, %s5116_s10  }
  0xa8   : > { %p5117_p7 = scmp.ne.s32.totalorder (!%p4210_p3), %s5105_s4, 0 }
  0xab   : > { %3955 = dma.done.wait (%p5117_p7), [#allocation3], 32  }
  0xac   : > { %3957 = vsyncadd (%p5117_p7), [#allocation3], 4294967264  ;;  %s5118_s24 = sadd.s32 4294967295, %s3996_s22   ;;  %s570_s15 = sand.u32 1, %s3980_s18  }
  0xad   : > { %s568_s26 = sand.u32 1, %s5118_s24   ;;  %s3547_s11 = sshll.u32 %s570_s15, 11 }
  0xae   : > { %s569_s13 = scalar_lea.sflag [#allocation5], %s568_s26  ;;  %s4294_s14 = scalar_lea.vmem [#allocation4], %s3547_s11 }
  0xaf   : > { %p5119_p6 = scmp.ne.s32.totalorder %s5106_s20, 0 }
  0xb1   : > { %3959 = dma.done.wait (%p5119_p6), %s569_s13, 32896  }
  0xb2   : > { %3961 = vsyncadd (%p5119_p6), %s569_s13, 4294934400  ;;  %s4300_s1 = sshll.u32 %s570_s15, 3  ;;  %s587_s4 = scalar_lea.sflag [#allocation8], %s568_s26 }
  0xb3   : > { %s581_s2 = scalar_lea.vmem [#allocation6], %s4300_s1  ;;  %s590_s12 = scalar_lea.vmem [#allocation7], %s4300_s1 }
  0xb4   : > { %3963 = dma.done.wait (%p5119_p6), %s587_s4, 16512  }
  0xb5   : > { %3965 = vsyncadd (%p5119_p6), %s587_s4, 4294950784  ;;  %s3550_s23 = sshll.u32 %s570_s15, 10  ;;  %s4308_s27 = sshll.u32 %s570_s15, 2 }
  0xb6   : > { %s4310_s16 = scalar_lea.vmem [#allocation9], %s3550_s23  ;;  %s605_s9 = scalar_lea.sflag [#allocation11], %s568_s26 }
  0xb7   : > { %s608_s0 = scalar_lea.vmem [#allocation10], %s4308_s27 }
  0xb8   : > { %3967 = dma.done.wait (%p5119_p6), %s605_s9, 192  }
  0xb9   : > { %3969 = vsyncadd (%p5119_p6), %s605_s9, 4294967104  ;;  %s617_s25 = scalar_lea.vmem [#allocation12], %s4300_s1  ;;  %s623_s28 = scalar_lea.sflag [#allocation14], %s568_s26 }
  0xba   : > { %s626_s17 = scalar_lea.vmem [#allocation13], %s4308_s27 }
  0xbb   : > { %3971 = dma.done.wait (%p5119_p6), %s623_s28, 128  }
  0xbc   : > { %3973 = vsyncadd (%p5119_p6), %s623_s28, 4294967168  ;;  %v759_v0 = vld [vmem:[%s4294_s14 + $0xc8] sm:$0xff]  ;;  %v758_v2 = vld [vmem:[%s4294_s14 + $0xc0] sm:$0xff]  ;;  %v4011_v18 = vmov 1966171168   ;;  %v1507_v20 = vlaneseq  ;;  %s5120_s5 = sld [smem:[#allocation25_spill]] }
  0xbd   : > { %v823_v1 = vld [vmem:[%s4294_s14 + $0x2c8] sm:$0xff]  ;;  %v1039_v3 = vunpack.c.l.s8.bf16 %v759_v0  ;;  %v1047_v4 = vunpack.c.h.s8.bf16 %v759_v0  ;;  %v822_v7 = vld [vmem:[%s4294_s14 + $0x2c0] sm:$0xff]  ;;  %v1046_v8 = vunpack.c.h.s8.bf16 %v758_v2  ;;  %v1038_v12 = vunpack.c.l.s8.bf16 %v758_v2  ;;  %s635_s3 = scalar_lea.vmem [#allocation15], %s4308_s27  ;;  %s5121_s8 = sld [smem:[#allocation22_spill]] }
  0xbe   : > { %v1167_v5 = vunpack.c.l.s8.bf16 %v823_v1  ;;  %v1175_v6 = vunpack.c.h.s8.bf16 %v823_v1  ;;  %v1174_v9 = vunpack.c.h.s8.bf16 %v822_v7  ;;  %v751_v10 = vld [vmem:[%s4294_s14 + $0x88] sm:$0xff]  ;;  %v1166_v13 = vunpack.c.l.s8.bf16 %v822_v7  ;;  %v750_v16 = vld [vmem:[%s4294_s14 + $0x80] sm:$0xff]  ;;  %s5122_s29 = sld [smem:[#allocation34_spill]] }
  0xbf   : > { %v815_v11 = vld [vmem:[%s4294_s14 + $0x288] sm:$0xff]  ;;  %1560 = vmatprep.subr.bf16.mxu0 %v1047_v4  ;;  %v1031_v14 = vunpack.c.h.s8.bf16 %v751_v10  ;;  %v814_v17 = vld [vmem:[%s4294_s14 + $0x280] sm:$0xff]  ;;  %v1505_v19 = vunpack.c.l.s4 %v4011_v18  ;;  %v1030_v21 = vunpack.c.h.s8.bf16 %v750_v16  ;;  %v1023_v23 = vunpack.c.l.s8.bf16 %v751_v10  ;;  %s5123_s13 = sld [smem:[#allocation35_spill]] }
  0xc0   : > { %1601 = vmatprep.subr.bf16.mxu1 %v1175_v6  ;;  %1561 = vmatpush1.bf16.msra.mxu0 %v1046_v8  ;;  %v1159_v15 = vunpack.c.h.s8.bf16 %v815_v11  ;;  %v1158_v22 = vunpack.c.h.s8.bf16 %v814_v17  ;;  %v1151_v24 = vunpack.c.l.s8.bf16 %v815_v11  ;;  %v4331_v26 = vshrl.u32 %v1507_v20, 7  ;;  %v743_v27 = vld [vmem:[%s4294_s14 + $0x48] sm:$0xff]  ;;  %v742_v33 = vld [vmem:[%s4294_s14 + $0x40] sm:$0xff] }
  0xc1   : > { %1602 = vmatpush1.bf16.msra.mxu1 %v1174_v9  ;;  %1562 = vmatprep.subr.bf16.mxu0 %v1039_v3  ;;  %v1506_v25 = vunpack.c.0.s8 %v1505_v19  ;;  %v807_v28 = vld [vmem:[%s4294_s14 + $0x248] sm:$0xff]  ;;  %v1022_v29 = vunpack.c.l.s8.bf16 %v750_v16  ;;  %v1150_v30 = vunpack.c.l.s8.bf16 %v814_v17  ;;  %v1015_v31 = vunpack.c.h.s8.bf16 %v743_v27  ;;  %v806_v34 = vld [vmem:[%s4294_s14 + $0x240] sm:$0xff] }
  0xc2   : > { %1603 = vmatprep.subr.bf16.mxu1 %v1167_v5  ;;  %v1143_v32 = vunpack.c.h.s8.bf16 %v807_v28  ;;  %v4343_v36 = vld [vmem:[%s5120_s5] sm:$0xff]  ;;  %v1014_v37 = vunpack.c.h.s8.bf16 %v742_v33  ;;  %v1142_v38 = vunpack.c.h.s8.bf16 %v806_v34  ;;  %v1007_v39 = vunpack.c.l.s8.bf16 %v743_v27  ;;  %v735_v42 = vld [vmem:[%s4294_s14 + $0x8] sm:$0xff] }
  0xc3   : > { %v4338_v35 = vsub.s32 %v1506_v25, %v4331_v26  ;;  %v1135_v40 = vunpack.c.l.s8.bf16 %v807_v28  ;;  %v799_v43 = vld [vmem:[%s4294_s14 + $0x208] sm:$0xff]  ;;  %v1006_v45 = vunpack.c.l.s8.bf16 %v742_v33  ;;  %v1134_v46 = vunpack.c.l.s8.bf16 %v806_v34  ;;  %v734_v49 = vld [vmem:[%s4294_s14] sm:$0xff]  ;;  %p722_p3 = scmp.lt.s32.totalorder %s5121_s8, 1 }
  0xc4   : > { %1563 = vmatpush1.bf16.msra.mxu0 %v1038_v12  ;;  %v999_v47 = vunpack.c.h.s8.bf16 %v735_v42  ;;  %v1127_v48 = vunpack.c.h.s8.bf16 %v799_v43  ;;  %v798_v50 = vld [vmem:[%s4294_s14 + $0x200] sm:$0xff]  ;;  %v998_v53 = vunpack.c.h.s8.bf16 %v734_v49  ;;  %v991_v55 = vunpack.c.l.s8.bf16 %v735_v42  ;;  %v791_v57 = vld [vmem:[%s4294_s14 + $0x1c8] sm:$0xff] }
  0xc5   : > { %1604 = vmatpush1.bf16.msra.mxu1 %v1166_v13  ;;  %1564 = vmatprep.subr.bf16.mxu0 %v1031_v14  ;;  %v4347_v41 = vrot.slane %v4343_v36, %v4338_v35  ;;  %v1126_v54 = vunpack.c.h.s8.bf16 %v798_v50  ;;  %v1119_v56 = vunpack.c.l.s8.bf16 %v799_v43  ;;  %v855_v58 = vld [vmem:[%s4294_s14 + $0x3c8] sm:$0xff]  ;;  %v990_v59 = vunpack.c.l.s8.bf16 %v734_v49  ;;  %v790_v63 = vld [vmem:[%s4294_s14 + $0x1c0] sm:$0xff]  ;;  %s5134_s8 = smov (!%p722_p3, %s5121_s8), 1 }
  0xc6   : > { %1605 = vmatprep.subr.bf16.mxu1 %v1159_v15  ;;  %v1118_v60 = vunpack.c.l.s8.bf16 %v798_v50  ;;  %v1111_v61 = vunpack.c.h.s8.bf16 %v791_v57  ;;  %v1239_v62 = vunpack.c.h.s8.bf16 %v855_v58  ;;  %v854_v0 = vld [vmem:[%s4294_s14 + $0x3c0] sm:$0xff]  ;;  %v1110_v1 = vunpack.c.h.s8.bf16 %v790_v63  ;;  %v783_v5 = vld [vmem:[%s4294_s14 + $0x188] sm:$0xff]  ;;  %s724_s24 = scalar_lea.vmem %s5122_s29, %s5134_s8  ;;  %s3555_s26 = sshll.u32 %s5134_s8, 1 }
  0xc7   : > { %v1518_v44 = vcombine.high %v4347_v41, %v4347_v41  ;;  %v1238_v2 = vunpack.c.h.s8.bf16 %v854_v0  ;;  %v1103_v3 = vunpack.c.l.s8.bf16 %v791_v57  ;;  %v1231_v4 = vunpack.c.l.s8.bf16 %v855_v58  ;;  %v847_v6 = vld [vmem:[%s4294_s14 + $0x388] sm:$0xff]  ;;  %v782_v13 = vld [vmem:[%s4294_s14 + $0x180] sm:$0xff] }
  0xc8   : > { %1565 = vmatpush1.bf16.msra.mxu0 %v1030_v21  ;;  %v1503_v7 = vcombine.high %v4343_v36, %v4343_v36  ;;  %v1102_v8 = vunpack.c.l.s8.bf16 %v790_v63  ;;  %v1230_v9 = vunpack.c.l.s8.bf16 %v854_v0  ;;  %v1095_v11 = vunpack.c.h.s8.bf16 %v783_v5  ;;  %v846_v14 = vld [vmem:[%s4294_s14 + $0x380] sm:$0xff]  ;;  %v775_v20 = vld [vmem:[%s4294_s14 + $0x148] sm:$0xff] }
  0xc9   : > { %1606 = vmatpush1.bf16.msra.mxu1 %v1158_v22  ;;  %1566 = vmatprep.subr.bf16.mxu0 %v1023_v23  ;;  %v4356_v51 = vrot.slane %v1518_v44, %v4338_v35  ;;  %v1223_v12 = vunpack.c.h.s8.bf16 %v847_v6  ;;  %v1094_v16 = vunpack.c.h.s8.bf16 %v782_v13  ;;  %v1222_v17 = vunpack.c.h.s8.bf16 %v846_v14  ;;  %v839_v21 = vld [vmem:[%s4294_s14 + $0x348] sm:$0xff]  ;;  %v774_v27 = vld [vmem:[%s4294_s14 + $0x140] sm:$0xff] }
  0xca   : > { %1607 = vmatprep.subr.bf16.mxu1 %v1151_v24  ;;  %v4373_v10 = vrot.slane %v1503_v7, %v4338_v35  ;;  %v1087_v18 = vunpack.c.l.s8.bf16 %v783_v5  ;;  %v1215_v19 = vunpack.c.l.s8.bf16 %v847_v6  ;;  %v1086_v22 = vunpack.c.l.s8.bf16 %v782_v13  ;;  %v838_v28 = vld [vmem:[%s4294_s14 + $0x340] sm:$0xff]  ;;  %v767_v33 = vld [vmem:[%s4294_s14 + $0x108] sm:$0xff] }
  0xcb   : > { %1592 = vmatprep.mubr.bf16.mxu0 %v4356_v51  ;;  %v4361_v52 = vcombine.high %v4356_v51, %v4356_v51  ;;  %v1214_v23 = vunpack.c.l.s8.bf16 %v846_v14  ;;  %v1079_v24 = vunpack.c.h.s8.bf16 %v775_v20  ;;  %v1207_v25 = vunpack.c.h.s8.bf16 %v839_v21  ;;  %v831_v34 = vld [vmem:[%s4294_s14 + $0x308] sm:$0xff]  ;;  %v830_v42 = vld [vmem:[%s4294_s14 + $0x300] sm:$0xff] }
  0xcc   : > { %1567 = vmatpush1.bf16.msra.mxu0 %v1022_v29  ;;  %v4379_v15 = vrot.slane %v4373_v10, %v4338_v35  ;;  %v1078_v29 = vunpack.c.h.s8.bf16 %v774_v27  ;;  %v1070_v36 = vunpack.c.l.s8.bf16 %v774_v27  ;;  %v1190_v44 = vunpack.c.h.s8.bf16 %v830_v42  ;;  %v886_v57 = vld [vmem:[%s4294_s14 + $0x4c0] sm:$0xff]  ;;  %v879_v0 = vld [vmem:[%s4294_s14 + $0x488] sm:$0xff] }
  0xcd   : > { %1608 = vmatpush1.bf16.msra.mxu1 %v1150_v30  ;;  %1568 = vmatprep.subr.bf16.mxu0 %v1015_v31  ;;  %v1206_v30 = vunpack.c.h.s8.bf16 %v838_v28  ;;  %v1071_v31 = vunpack.c.l.s8.bf16 %v775_v20  ;;  %v1519_v49 = vcombine.high %v4373_v10, %v4373_v10  ;;  %v4395_v50 = vrot.slane %v4347_v41, %v4338_v35  ;;  %v950_v58 = vld [vmem:[%s4294_s14 + $0x6c0] sm:$0xff]  ;;  %v935_v13 = vld [vmem:[%s4294_s14 + $0x648] sm:$0xff] }
  0xce   : > { %1609 = vmatprep.subr.bf16.mxu1 %v1143_v32  ;;  %1633 = vmatprep.mubr.bf16.mxu1 %v4361_v52  ;;  %v1199_v32 = vunpack.c.l.s8.bf16 %v839_v21  ;;  %v1302_v41 = vunpack.c.h.s8.bf16 %v886_v57  ;;  %v878_v6 = vld [vmem:[%s4294_s14 + $0x480] sm:$0xff]  ;;  %v1279_v10 = vunpack.c.l.s8.bf16 %v879_v0  ;;  %v927_v27 = vld [vmem:[%s4294_s14 + $0x608] sm:$0xff]  ;;  %vm3225_vm0 = vcmask 1041408  }
  0xcf   : > { %v942_v7 = vld [vmem:[%s4294_s14 + $0x680] sm:$0xff]  ;;  %v1278_v14 = vunpack.c.l.s8.bf16 %v878_v6  ;;  %vm3243_vm1 = vcmask 1024  }
  0xd0   : > { %1569 = vmatpush1.bf16.msra.mxu0 %v1014_v37  ;;  %v1198_v37 = vunpack.c.l.s8.bf16 %v838_v28  ;;  %v934_v20 = vld [vmem:[%s4294_s14 + $0x640] sm:$0xff] }
  0xd1   : > { %1610 = vmatpush1.bf16.msra.mxu1 %v1142_v38  ;;  %1570 = vmatprep.subr.bf16.mxu0 %v1007_v39  ;;  %v1063_v38 = vunpack.c.h.s8.bf16 %v767_v33  ;;  %v1191_v39 = vunpack.c.h.s8.bf16 %v831_v34 }
  0xd2   : > { %1611 = vmatprep.subr.bf16.mxu1 %v1135_v40  ;;  %v766_v40 = vld [vmem:[%s4294_s14 + $0x100] sm:$0xff] }
  0xd3   : > { %v1062_v43 = vunpack.c.h.s8.bf16 %v766_v40 }
  0xd4   : > { %1571 = vmatpush1.bf16.msra.mxu0 %v1006_v45  ;;  %v1055_v45 = vunpack.c.l.s8.bf16 %v767_v33  ;;  %v926_v33 = vld [vmem:[%s4294_s14 + $0x600] sm:$0xff] }
  0xd5   : > { %1612 = vmatpush1.bf16.msra.mxu1 %v1134_v46  ;;  %1572 = vmatprep.subr.bf16.mxu0 %v999_v47  ;;  %v1183_v46 = vunpack.c.l.s8.bf16 %v831_v34  ;;  %v887_v47 = vld [vmem:[%s4294_s14 + $0x4c8] sm:$0xff] }
  0xd6   : > { %1613 = vmatprep.subr.bf16.mxu1 %v1127_v48  ;;  %v951_v48 = vld [vmem:[%s4294_s14 + $0x6c8] sm:$0xff] }
  0xd7   : > { %v1423_v63 = vunpack.c.l.s8.bf16 %v951_v48 }
  0xd8   : > { %1573 = vmatpush1.bf16.msra.mxu0 %v998_v53  ;;  %v1054_v53 = vunpack.c.l.s8.bf16 %v766_v40  ;;  %v983_v40 = vld [vmem:[%s4294_s14 + $0x7c8] sm:$0xff] }
  0xd9   : > { %1614 = vmatpush1.bf16.msra.mxu1 %v1126_v54  ;;  %1574 = vmatprep.subr.bf16.mxu0 %v991_v55  ;;  %v1182_v54 = vunpack.c.l.s8.bf16 %v830_v42  ;;  %v1303_v55 = vunpack.c.h.s8.bf16 %v887_v47 }
  0xda   : > { %1615 = vmatprep.subr.bf16.mxu1 %v1119_v56  ;;  %v1431_v56 = vunpack.c.h.s8.bf16 %v951_v48 }
  0xdc   : > { %1575 = vmatpush1.bf16.msra.mxu0 %v990_v59  ;;  %v4400_v59 = vrot.slane %v1519_v49, %v4338_v35 }
  0xdd   : > { %1616 = vmatpush1.bf16.msra.mxu1 %v1118_v60  ;;  %1576 = vmatprep.subr.bf16.mxu0 %v1111_v61  ;;  %v4404_v60 = vcombine.high %v4395_v50, %v4395_v50  ;;  %v1430_v61 = vunpack.c.h.s8.bf16 %v950_v58 }
  0xde   : > { %1617 = vmatprep.subr.bf16.mxu1 %v1239_v62  ;;  %v1295_v62 = vunpack.c.l.s8.bf16 %v887_v47  ;;  %v4410_v35 = vcombine.high %v4400_v59, %v4400_v59  ;;  %v982_v47 = vld [vmem:[%s4294_s14 + $0x7c0] sm:$0xff] }
  0xdf   : > { %v1494_v49 = vunpack.c.h.s8.bf16 %v982_v47 }
  0xe0   : > { %1577 = vmatpush2.bf16.msra.mxu0 %v1110_v1  ;;  %v943_v1 = vld [vmem:[%s4294_s14 + $0x688] sm:$0xff] }
  0xe1   : > { %1618 = vmatpush2.bf16.msra.mxu1 %v1238_v2  ;;  %1578 = vmatprep.subr.bf16.mxu0 %v1103_v3  ;;  %v1294_v2 = vunpack.c.l.s8.bf16 %v886_v57  ;;  %v1422_v3 = vunpack.c.l.s8.bf16 %v950_v58  ;;  %v1415_v5 = vunpack.c.h.s8.bf16 %v943_v1  ;;  %v1486_v58 = vunpack.c.l.s8.bf16 %v982_v47 }
  0xe2   : > { %1619 = vmatprep.subr.bf16.mxu1 %v1231_v4  ;;  %v1287_v4 = vunpack.c.h.s8.bf16 %v879_v0 }
  0xe4   : > { %1579 = vmatpush2.bf16.msra.mxu0 %v1102_v8  ;;  %v1286_v8 = vunpack.c.h.s8.bf16 %v878_v6 }
  0xe5   : > { %1620 = vmatpush2.bf16.msra.mxu1 %v1230_v9  ;;  %1580 = vmatprep.subr.bf16.mxu0 %v1095_v11  ;;  %v1414_v9 = vunpack.c.h.s8.bf16 %v942_v7  ;;  %v1407_v11 = vunpack.c.l.s8.bf16 %v943_v1 }
  0xe6   : > { %1621 = vmatprep.subr.bf16.mxu1 %v1223_v12  ;;  %v871_v12 = vld [vmem:[%s4294_s14 + $0x448] sm:$0xff] }
  0xe8   : > { %1581 = vmatpush2.bf16.msra.mxu0 %v1094_v16  ;;  %v1406_v16 = vunpack.c.l.s8.bf16 %v942_v7 }
  0xe9   : > { %1622 = vmatpush2.bf16.msra.mxu1 %v1222_v17  ;;  %1582 = vmatprep.subr.bf16.mxu0 %v1087_v18  ;;  %v1271_v17 = vunpack.c.h.s8.bf16 %v871_v12  ;;  %v1399_v18 = vunpack.c.h.s8.bf16 %v935_v13 }
  0xea   : > { %1623 = vmatprep.subr.bf16.mxu1 %v1215_v19  ;;  %v870_v19 = vld [vmem:[%s4294_s14 + $0x440] sm:$0xff] }
  0xeb   : > { %v1270_v21 = vunpack.c.h.s8.bf16 %v870_v19  ;;  %v1262_v28 = vunpack.c.l.s8.bf16 %v870_v19 }
  0xec   : > { %1583 = vmatpush2.bf16.msra.mxu0 %v1086_v22  ;;  %v1398_v22 = vunpack.c.h.s8.bf16 %v934_v20 }
  0xed   : > { %1624 = vmatpush2.bf16.msra.mxu1 %v1214_v23  ;;  %1584 = vmatprep.subr.bf16.mxu0 %v1079_v24  ;;  %v1263_v23 = vunpack.c.l.s8.bf16 %v871_v12  ;;  %v1391_v24 = vunpack.c.l.s8.bf16 %v935_v13 }
  0xee   : > { %1625 = vmatprep.subr.bf16.mxu1 %v1207_v25  ;;  %v863_v25 = vld [vmem:[%s4294_s14 + $0x408] sm:$0xff] }
  0xf0   : > { %1585 = vmatpush2.bf16.msra.mxu0 %v1078_v29  ;;  %v1390_v29 = vunpack.c.l.s8.bf16 %v934_v20 }
  0xf1   : > { %1626 = vmatpush2.bf16.msra.mxu1 %v1206_v30  ;;  %1586 = vmatprep.subr.bf16.mxu0 %v1071_v31  ;;  %v1255_v30 = vunpack.c.h.s8.bf16 %v863_v25  ;;  %v1383_v31 = vunpack.c.h.s8.bf16 %v927_v27 }
  0xf2   : > { %1627 = vmatprep.subr.bf16.mxu1 %v1199_v32  ;;  %v862_v32 = vld [vmem:[%s4294_s14 + $0x400] sm:$0xff] }
  0xf3   : > { %v1254_v34 = vunpack.c.h.s8.bf16 %v862_v32  ;;  %v1246_v42 = vunpack.c.l.s8.bf16 %v862_v32 }
  0xf4   : > { %1587 = vmatpush2.bf16.msra.mxu0 %v1070_v36  ;;  %v1382_v36 = vunpack.c.h.s8.bf16 %v926_v33 }
  0xf5   : > { %1628 = vmatpush2.bf16.msra.mxu1 %v1198_v37  ;;  %1588 = vmatprep.subr.bf16.mxu0 %v1063_v38  ;;  %v1247_v37 = vunpack.c.l.s8.bf16 %v863_v25  ;;  %v1375_v38 = vunpack.c.l.s8.bf16 %v927_v27 }
  0xf6   : > { %1629 = vmatprep.subr.bf16.mxu1 %v1191_v39  ;;  %v919_v39 = vld [vmem:[%s4294_s14 + $0x5c8] sm:$0xff] }
  0xf8   : > { %1589 = vmatpush2.bf16.msra.mxu0 %v1062_v43  ;;  %v1374_v43 = vunpack.c.l.s8.bf16 %v926_v33 }
  0xf9   : > { %1630 = vmatpush2.bf16.msra.mxu1 %v1190_v44  ;;  %1590 = vmatprep.subr.bf16.mxu0 %v1055_v45  ;;  %v1367_v44 = vunpack.c.h.s8.bf16 %v919_v39  ;;  %v1495_v45 = vunpack.c.h.s8.bf16 %v983_v40 }
  0xfa   : > { %1631 = vmatprep.subr.bf16.mxu1 %v1183_v46  ;;  %v918_v46 = vld [vmem:[%s4294_s14 + $0x5c0] sm:$0xff] }
  0xfb   : > { %v1366_v48 = vunpack.c.h.s8.bf16 %v918_v46  ;;  %v1358_v57 = vunpack.c.l.s8.bf16 %v918_v46  ;;  %v817_v46 = vld [vmem:[%s4294_s14 + $0x298] sm:$0xff] }
  0xfc   : > { %1591 = vmatpush2.bf16.msra.mxu0 %v1054_v53  ;;  %v1359_v53 = vunpack.c.l.s8.bf16 %v919_v39  ;;  %v4448_v39 = vcombine.high %v4379_v15, %v4379_v15 }
  0xfd   : > { %1632 = vmatpush2.bf16.msra.mxu1 %v1182_v54  ;;  %1642 = vmatprep.subr.bf16.mxu0 %v1303_v55  ;;  %v1487_v54 = vunpack.c.l.s8.bf16 %v983_v40  ;;  %v911_v55 = vld [vmem:[%s4294_s14 + $0x588] sm:$0xff] }
  0xfe   : > { %1683 = vmatprep.subr.bf16.mxu1 %v1431_v56  ;;  %v975_v56 = vld [vmem:[%s4294_s14 + $0x788] sm:$0xff] }
  0xff   : > { %1593 = vmatmul.mubr.bf16.vlgmr.msra.gmra.mxu0 %v4395_v50 }
 0x100   : > { %1634 = vmatmul.mubr.bf16.vlgmr.msra.gmra.mxu1 %v4404_v60  ;;  %1643 = vmatpush1.bf16.msra.mxu0 %v1302_v41  ;;  %v1351_v41 = vunpack.c.h.s8.bf16 %v911_v55 }
 0x101   : > { %1684 = vmatpush1.bf16.msra.mxu1 %v1430_v61  ;;  %1644 = vmatprep.subr.bf16.mxu0 %v1295_v62  ;;  %v1479_v61 = vunpack.c.h.s8.bf16 %v975_v56  ;;  %v910_v62 = vld [vmem:[%s4294_s14 + $0x580] sm:$0xff] }
 0x102   : > { %1685 = vmatprep.subr.bf16.mxu1 %v1423_v63  ;;  %1674 = vmatprep.mubr.bf16.mxu0 %v4400_v59  ;;  %v974_v63 = vld [vmem:[%s4294_s14 + $0x780] sm:$0xff]  ;;  %v1350_v0 = vunpack.c.h.s8.bf16 %v910_v62  ;;  %v1342_v6 = vunpack.c.l.s8.bf16 %v910_v62  ;;  %v809_v62 = vld [vmem:[%s4294_s14 + $0x258] sm:$0xff] }
 0x103   : > { %1715 = vmatprep.mubr.bf16.mxu1 %v4410_v35  ;;  %v1478_v1 = vunpack.c.h.s8.bf16 %v974_v63  ;;  %v1470_v7 = vunpack.c.l.s8.bf16 %v974_v63 }
 0x104   : > { %1645 = vmatpush1.bf16.msra.mxu0 %v1294_v2  ;;  %v1343_v2 = vunpack.c.l.s8.bf16 %v911_v55  ;;  %v816_v55 = vld [vmem:[%s4294_s14 + $0x290] sm:$0xff] }
 0x105   : > { %1686 = vmatpush1.bf16.msra.mxu1 %v1422_v3  ;;  %1646 = vmatprep.subr.bf16.mxu0 %v1287_v4  ;;  %v1471_v3 = vunpack.c.l.s8.bf16 %v975_v56  ;;  %v903_v4 = vld [vmem:[%s4294_s14 + $0x548] sm:$0xff] }
 0x106   : > { %1687 = vmatprep.subr.bf16.mxu1 %v1415_v5  ;;  %v967_v5 = vld [vmem:[%s4294_s14 + $0x748] sm:$0xff] }
 0x108   : > { %1647 = vmatpush1.bf16.msra.mxu0 %v1286_v8  ;;  %v1335_v8 = vunpack.c.h.s8.bf16 %v903_v4 }
 0x109   : > { %1688 = vmatpush1.bf16.msra.mxu1 %v1414_v9  ;;  %1648 = vmatprep.subr.bf16.mxu0 %v1279_v10  ;;  %v1463_v9 = vunpack.c.h.s8.bf16 %v967_v5  ;;  %v902_v10 = vld [vmem:[%s4294_s14 + $0x540] sm:$0xff] }
 0x10a   : > { %1689 = vmatprep.subr.bf16.mxu1 %v1407_v11  ;;  %v966_v11 = vld [vmem:[%s4294_s14 + $0x740] sm:$0xff]  ;;  %v1334_v12 = vunpack.c.h.s8.bf16 %v902_v10  ;;  %v1326_v19 = vunpack.c.l.s8.bf16 %v902_v10  ;;  %v801_v10 = vld [vmem:[%s4294_s14 + $0x218] sm:$0xff] }
 0x10b   : > { %v1462_v13 = vunpack.c.h.s8.bf16 %v966_v11  ;;  %v1454_v20 = vunpack.c.l.s8.bf16 %v966_v11 }
 0x10c   : > { %1649 = vmatpush1.bf16.msra.mxu0 %v1278_v14  ;;  %v1327_v14 = vunpack.c.l.s8.bf16 %v903_v4  ;;  %v808_v4 = vld [vmem:[%s4294_s14 + $0x250] sm:$0xff] }
 0x10d   : > { %1690 = vmatpush1.bf16.msra.mxu1 %v1406_v16  ;;  %1650 = vmatprep.subr.bf16.mxu0 %v1271_v17  ;;  %v1455_v16 = vunpack.c.l.s8.bf16 %v967_v5  ;;  %v895_v17 = vld [vmem:[%s4294_s14 + $0x508] sm:$0xff] }
 0x10e   : > { %1691 = vmatprep.subr.bf16.mxu1 %v1399_v18  ;;  %v959_v18 = vld [vmem:[%s4294_s14 + $0x708] sm:$0xff] }
 0x110   : > { %1651 = vmatpush1.bf16.msra.mxu0 %v1270_v21  ;;  %v1319_v21 = vunpack.c.h.s8.bf16 %v895_v17 }
 0x111   : > { %1692 = vmatpush1.bf16.msra.mxu1 %v1398_v22  ;;  %1652 = vmatprep.subr.bf16.mxu0 %v1263_v23  ;;  %v1447_v22 = vunpack.c.h.s8.bf16 %v959_v18  ;;  %v894_v23 = vld [vmem:[%s4294_s14 + $0x500] sm:$0xff] }
 0x112   : > { %1693 = vmatprep.subr.bf16.mxu1 %v1391_v24  ;;  %v958_v24 = vld [vmem:[%s4294_s14 + $0x700] sm:$0xff]  ;;  %v1318_v25 = vunpack.c.h.s8.bf16 %v894_v23  ;;  %v1310_v32 = vunpack.c.l.s8.bf16 %v894_v23  ;;  %v857_v23 = vld [vmem:[%s4294_s14 + $0x3d8] sm:$0xff] }
 0x113   : > { %v1446_v27 = vunpack.c.h.s8.bf16 %v958_v24  ;;  %v1438_v33 = vunpack.c.l.s8.bf16 %v958_v24 }
 0x114   : > { %1653 = vmatpush1.bf16.msra.mxu0 %v1262_v28  ;;  %v1311_v28 = vunpack.c.l.s8.bf16 %v895_v17  ;;  %v800_v17 = vld [vmem:[%s4294_s14 + $0x210] sm:$0xff] }
 0x115   : > { %1694 = vmatpush1.bf16.msra.mxu1 %v1390_v29  ;;  %1654 = vmatprep.subr.bf16.mxu0 %v1255_v30  ;;  %v1439_v29 = vunpack.c.l.s8.bf16 %v959_v18  ;;  %v761_v30 = vld [vmem:[%s4294_s14 + $0xd8] sm:$0xff] }
 0x116   : > { %1695 = vmatprep.subr.bf16.mxu1 %v1383_v31  ;;  %v825_v31 = vld [vmem:[%s4294_s14 + $0x2d8] sm:$0xff] }
 0x118   : > { %1655 = vmatpush1.bf16.msra.mxu0 %v1254_v34  ;;  %v1049_v34 = vunpack.c.h.s8.bf16 %v761_v30 }
 0x119   : > { %1696 = vmatpush1.bf16.msra.mxu1 %v1382_v36  ;;  %1656 = vmatprep.subr.bf16.mxu0 %v1247_v37  ;;  %v1177_v36 = vunpack.c.h.s8.bf16 %v825_v31  ;;  %v760_v37 = vld [vmem:[%s4294_s14 + $0xd0] sm:$0xff] }
 0x11a   : > { %1697 = vmatprep.subr.bf16.mxu1 %v1375_v38  ;;  %v824_v38 = vld [vmem:[%s4294_s14 + $0x2d0] sm:$0xff]  ;;  %v1048_v40 = vunpack.c.h.s8.bf16 %v760_v37  ;;  %v1040_v47 = vunpack.c.l.s8.bf16 %v760_v37  ;;  %v849_v37 = vld [vmem:[%s4294_s14 + $0x398] sm:$0xff] }
 0x11c   : > { %1657 = vmatpush1.bf16.msra.mxu0 %v1246_v42  ;;  %v1176_v42 = vunpack.c.h.s8.bf16 %v824_v38 }
 0x11d   : > { %1698 = vmatpush1.bf16.msra.mxu1 %v1374_v43  ;;  %1658 = vmatprep.subr.bf16.mxu0 %v1367_v44  ;;  %v1041_v43 = vunpack.c.l.s8.bf16 %v761_v30  ;;  %v1169_v44 = vunpack.c.l.s8.bf16 %v825_v31  ;;  %v856_v30 = vld [vmem:[%s4294_s14 + $0x3d0] sm:$0xff] }
 0x11e   : > { %1699 = vmatprep.subr.bf16.mxu1 %v1495_v45  ;;  %v753_v45 = vld [vmem:[%s4294_s14 + $0x98] sm:$0xff] }
 0x120   : > { %1659 = vmatpush2.bf16.msra.mxu0 %v1366_v48  ;;  %v1168_v48 = vunpack.c.l.s8.bf16 %v824_v38 }
 0x121   : > { %1700 = vmatpush2.bf16.msra.mxu1 %v1494_v49  ;;  %1660 = vmatprep.subr.bf16.mxu0 %v1359_v53  ;;  %v1033_v49 = vunpack.c.h.s8.bf16 %v753_v45  ;;  %v1161_v53 = vunpack.c.h.s8.bf16 %v817_v46 }
 0x122   : > { %1701 = vmatprep.subr.bf16.mxu1 %v1487_v54  ;;  %v752_v54 = vld [vmem:[%s4294_s14 + $0x90] sm:$0xff] }
 0x123   : > { %v1032_v56 = vunpack.c.h.s8.bf16 %v752_v54  ;;  %v1024_v63 = vunpack.c.l.s8.bf16 %v752_v54  ;;  %v841_v54 = vld [vmem:[%s4294_s14 + $0x358] sm:$0xff] }
 0x124   : > { %1661 = vmatpush2.bf16.msra.mxu0 %v1358_v57  ;;  %v1160_v57 = vunpack.c.h.s8.bf16 %v816_v55 }
 0x125   : > { %1702 = vmatpush2.bf16.msra.mxu1 %v1486_v58  ;;  %1662 = vmatprep.subr.bf16.mxu0 %v1351_v41  ;;  %v1025_v58 = vunpack.c.l.s8.bf16 %v753_v45  ;;  %v1153_v41 = vunpack.c.l.s8.bf16 %v817_v46  ;;  %v848_v45 = vld [vmem:[%s4294_s14 + $0x390] sm:$0xff] }
 0x126   : > { %1703 = vmatprep.subr.bf16.mxu1 %v1479_v61  ;;  %v745_v61 = vld [vmem:[%s4294_s14 + $0x58] sm:$0xff] }
 0x128   : > { %1663 = vmatpush2.bf16.msra.mxu0 %v1350_v0  ;;  %v1152_v0 = vunpack.c.l.s8.bf16 %v816_v55 }
 0x129   : > { %1704 = vmatpush2.bf16.msra.mxu1 %v1478_v1  ;;  %1664 = vmatprep.subr.bf16.mxu0 %v1343_v2  ;;  %v1017_v1 = vunpack.c.h.s8.bf16 %v745_v61  ;;  %v1145_v2 = vunpack.c.h.s8.bf16 %v809_v62 }
 0x12a   : > { %1705 = vmatprep.subr.bf16.mxu1 %v1471_v3  ;;  %v744_v3 = vld [vmem:[%s4294_s14 + $0x50] sm:$0xff] }
 0x12b   : > { %v1016_v5 = vunpack.c.h.s8.bf16 %v744_v3  ;;  %v1008_v11 = vunpack.c.l.s8.bf16 %v744_v3  ;;  %v833_v3 = vld [vmem:[%s4294_s14 + $0x318] sm:$0xff] }
 0x12c   : > { %1665 = vmatpush2.bf16.msra.mxu0 %v1342_v6  ;;  %v1144_v6 = vunpack.c.h.s8.bf16 %v808_v4 }
 0x12d   : > { %1706 = vmatpush2.bf16.msra.mxu1 %v1470_v7  ;;  %1666 = vmatprep.subr.bf16.mxu0 %v1335_v8  ;;  %v1009_v7 = vunpack.c.l.s8.bf16 %v745_v61  ;;  %v1137_v8 = vunpack.c.l.s8.bf16 %v809_v62  ;;  %v840_v61 = vld [vmem:[%s4294_s14 + $0x350] sm:$0xff] }
 0x12e   : > { %1707 = vmatprep.subr.bf16.mxu1 %v1463_v9  ;;  %v737_v9 = vld [vmem:[%s4294_s14 + $0x18] sm:$0xff] }
 0x130   : > { %1667 = vmatpush2.bf16.msra.mxu0 %v1334_v12  ;;  %v1136_v12 = vunpack.c.l.s8.bf16 %v808_v4 }
 0x131   : > { %1708 = vmatpush2.bf16.msra.mxu1 %v1462_v13  ;;  %1668 = vmatprep.subr.bf16.mxu0 %v1327_v14  ;;  %v1001_v13 = vunpack.c.h.s8.bf16 %v737_v9  ;;  %v1129_v14 = vunpack.c.h.s8.bf16 %v801_v10 }
 0x132   : > { %1709 = vmatprep.subr.bf16.mxu1 %v1455_v16  ;;  %v736_v16 = vld [vmem:[%s4294_s14 + $0x10] sm:$0xff] }
 0x133   : > { %v1000_v18 = vunpack.c.h.s8.bf16 %v736_v16  ;;  %v992_v24 = vunpack.c.l.s8.bf16 %v736_v16  ;;  %v953_v16 = vld [vmem:[%s4294_s14 + $0x6d8] sm:$0xff] }
 0x134   : > { %1669 = vmatpush2.bf16.msra.mxu0 %v1326_v19  ;;  %v1128_v19 = vunpack.c.h.s8.bf16 %v800_v17 }
 0x135   : > { %1710 = vmatpush2.bf16.msra.mxu1 %v1454_v20  ;;  %1670 = vmatprep.subr.bf16.mxu0 %v1319_v21  ;;  %v993_v20 = vunpack.c.l.s8.bf16 %v737_v9  ;;  %v1121_v21 = vunpack.c.l.s8.bf16 %v801_v10  ;;  %v832_v9 = vld [vmem:[%s4294_s14 + $0x310] sm:$0xff] }
 0x136   : > { %1711 = vmatprep.subr.bf16.mxu1 %v1447_v22  ;;  %v793_v22 = vld [vmem:[%s4294_s14 + $0x1d8] sm:$0xff] }
 0x138   : > { %1671 = vmatpush2.bf16.msra.mxu0 %v1318_v25  ;;  %v1120_v25 = vunpack.c.l.s8.bf16 %v800_v17 }
 0x139   : > { %1712 = vmatpush2.bf16.msra.mxu1 %v1446_v27  ;;  %1672 = vmatprep.subr.bf16.mxu0 %v1311_v28  ;;  %v1113_v27 = vunpack.c.h.s8.bf16 %v793_v22  ;;  %v1241_v28 = vunpack.c.h.s8.bf16 %v857_v23 }
 0x13a   : > { %1713 = vmatprep.subr.bf16.mxu1 %v1439_v29  ;;  %v792_v29 = vld [vmem:[%s4294_s14 + $0x1d0] sm:$0xff] }
 0x13b   : > { %v1112_v31 = vunpack.c.h.s8.bf16 %v792_v29  ;;  %v1104_v38 = vunpack.c.l.s8.bf16 %v792_v29  ;;  %v945_v29 = vld [vmem:[%s4294_s14 + $0x698] sm:$0xff] }
 0x13c   : > { %1673 = vmatpush2.bf16.msra.mxu0 %v1310_v32  ;;  %v1240_v32 = vunpack.c.h.s8.bf16 %v856_v30 }
 0x13d   : > { %1714 = vmatpush2.bf16.msra.mxu1 %v1438_v33  ;;  %1724 = vmatprep.subr.bf16.mxu0 %v1049_v34  ;;  %v1105_v33 = vunpack.c.l.s8.bf16 %v793_v22  ;;  %v1233_v34 = vunpack.c.l.s8.bf16 %v857_v23  ;;  %v952_v22 = vld [vmem:[%s4294_s14 + $0x6d0] sm:$0xff] }
 0x13e   : > { %1765 = vmatprep.subr.bf16.mxu1 %v1177_v36  ;;  %v785_v36 = vld [vmem:[%s4294_s14 + $0x198] sm:$0xff] }
 0x13f   : > { %1675 = vmatmul.mubr.bf16.vlgmr.msra.gmra.mxu0 %v4379_v15 }
 0x140   : > { %1716 = vmatmul.mubr.bf16.vlgmr.msra.gmra.mxu1 %v4448_v39  ;;  %1725 = vmatpush1.bf16.msra.mxu0 %v1048_v40  ;;  %v1232_v40 = vunpack.c.l.s8.bf16 %v856_v30 }
 0x141   : > { %1766 = vmatpush1.bf16.msra.mxu1 %v1176_v42  ;;  %1726 = vmatprep.subr.bf16.mxu0 %v1041_v43  ;;  %v1097_v42 = vunpack.c.h.s8.bf16 %v785_v36  ;;  %v1225_v43 = vunpack.c.h.s8.bf16 %v849_v37 }
 0x142   : > { %1767 = vmatprep.subr.bf16.mxu1 %v1169_v44  ;;  %1756 = vmatprep.mubr.bf16.mxu0 %v4356_v51  ;;  %v784_v44 = vld [vmem:[%s4294_s14 + $0x190] sm:$0xff] }
 0x143   : > { %1797 = vmatprep.mubr.bf16.mxu1 %v4361_v52  ;;  %v1096_v46 = vunpack.c.h.s8.bf16 %v784_v44  ;;  %v1088_v55 = vunpack.c.l.s8.bf16 %v784_v44  ;;  %v937_v44 = vld [vmem:[%s4294_s14 + $0x658] sm:$0xff] }
 0x144   : > { %1727 = vmatpush1.bf16.msra.mxu0 %v1040_v47  ;;  %v1224_v47 = vunpack.c.h.s8.bf16 %v848_v45 }
 0x145   : > { %1768 = vmatpush1.bf16.msra.mxu1 %v1168_v48  ;;  %1728 = vmatprep.subr.bf16.mxu0 %v1033_v49  ;;  %v1089_v48 = vunpack.c.l.s8.bf16 %v785_v36  ;;  %v1217_v49 = vunpack.c.l.s8.bf16 %v849_v37  ;;  %v944_v36 = vld [vmem:[%s4294_s14 + $0x690] sm:$0xff] }
 0x146   : > { %1769 = vmatprep.subr.bf16.mxu1 %v1161_v53  ;;  %v777_v53 = vld [vmem:[%s4294_s14 + $0x158] sm:$0xff] }
 0x148   : > { %1729 = vmatpush1.bf16.msra.mxu0 %v1032_v56  ;;  %v1216_v56 = vunpack.c.l.s8.bf16 %v848_v45 }
 0x149   : > { %1770 = vmatpush1.bf16.msra.mxu1 %v1160_v57  ;;  %1730 = vmatprep.subr.bf16.mxu0 %v1025_v58  ;;  %v1081_v57 = vunpack.c.h.s8.bf16 %v777_v53  ;;  %v1209_v58 = vunpack.c.h.s8.bf16 %v841_v54 }
 0x14a   : > { %1771 = vmatprep.subr.bf16.mxu1 %v1153_v41  ;;  %v776_v41 = vld [vmem:[%s4294_s14 + $0x150] sm:$0xff] }
 0x14b   : > { %v1080_v62 = vunpack.c.h.s8.bf16 %v776_v41  ;;  %v1072_v4 = vunpack.c.l.s8.bf16 %v776_v41  ;;  %v929_v41 = vld [vmem:[%s4294_s14 + $0x618] sm:$0xff] }
 0x14c   : > { %1731 = vmatpush1.bf16.msra.mxu0 %v1024_v63  ;;  %v1208_v63 = vunpack.c.h.s8.bf16 %v840_v61 }
 0x14d   : > { %1772 = vmatpush1.bf16.msra.mxu1 %v1152_v0  ;;  %1732 = vmatprep.subr.bf16.mxu0 %v1017_v1  ;;  %v1073_v0 = vunpack.c.l.s8.bf16 %v777_v53  ;;  %v1201_v1 = vunpack.c.l.s8.bf16 %v841_v54  ;;  %v936_v53 = vld [vmem:[%s4294_s14 + $0x650] sm:$0xff] }
 0x14e   : > { %1773 = vmatprep.subr.bf16.mxu1 %v1145_v2  ;;  %v769_v2 = vld [vmem:[%s4294_s14 + $0x118] sm:$0xff] }
 0x150   : > { %1733 = vmatpush1.bf16.msra.mxu0 %v1016_v5  ;;  %v1200_v5 = vunpack.c.l.s8.bf16 %v840_v61 }
 0x151   : > { %1774 = vmatpush1.bf16.msra.mxu1 %v1144_v6  ;;  %1734 = vmatprep.subr.bf16.mxu0 %v1009_v7  ;;  %v1065_v6 = vunpack.c.h.s8.bf16 %v769_v2  ;;  %v1193_v7 = vunpack.c.h.s8.bf16 %v833_v3 }
 0x152   : > { %1775 = vmatprep.subr.bf16.mxu1 %v1137_v8  ;;  %v768_v8 = vld [vmem:[%s4294_s14 + $0x110] sm:$0xff] }
 0x153   : > { %v1064_v10 = vunpack.c.h.s8.bf16 %v768_v8  ;;  %v1056_v17 = vunpack.c.l.s8.bf16 %v768_v8  ;;  %v985_v8 = vld [vmem:[%s4294_s14 + $0x7d8] sm:$0xff] }
 0x154   : > { %1735 = vmatpush1.bf16.msra.mxu0 %v1008_v11  ;;  %v1192_v11 = vunpack.c.h.s8.bf16 %v832_v9 }
 0x155   : > { %1776 = vmatpush1.bf16.msra.mxu1 %v1136_v12  ;;  %1736 = vmatprep.subr.bf16.mxu0 %v1001_v13  ;;  %v1057_v12 = vunpack.c.l.s8.bf16 %v769_v2  ;;  %v1185_v13 = vunpack.c.l.s8.bf16 %v833_v3  ;;  %v928_v2 = vld [vmem:[%s4294_s14 + $0x610] sm:$0xff] }
 0x156   : > { %1777 = vmatprep.subr.bf16.mxu1 %v1129_v14  ;;  %v889_v14 = vld [vmem:[%s4294_s14 + $0x4d8] sm:$0xff] }
 0x158   : > { %1737 = vmatpush1.bf16.msra.mxu0 %v1000_v18  ;;  %v1184_v18 = vunpack.c.l.s8.bf16 %v832_v9 }
 0x159   : > { %1778 = vmatpush1.bf16.msra.mxu1 %v1128_v19  ;;  %1738 = vmatprep.subr.bf16.mxu0 %v993_v20  ;;  %v1305_v19 = vunpack.c.h.s8.bf16 %v889_v14  ;;  %v1433_v20 = vunpack.c.h.s8.bf16 %v953_v16 }
 0x15a   : > { %1779 = vmatprep.subr.bf16.mxu1 %v1121_v21  ;;  %v888_v21 = vld [vmem:[%s4294_s14 + $0x4d0] sm:$0xff] }
 0x15b   : > { %v1304_v23 = vunpack.c.h.s8.bf16 %v888_v21  ;;  %v1296_v30 = vunpack.c.l.s8.bf16 %v888_v21  ;;  %v977_v21 = vld [vmem:[%s4294_s14 + $0x798] sm:$0xff] }
 0x15c   : > { %1739 = vmatpush1.bf16.msra.mxu0 %v992_v24  ;;  %v1432_v24 = vunpack.c.h.s8.bf16 %v952_v22 }
 0x15d   : > { %1780 = vmatpush1.bf16.msra.mxu1 %v1120_v25  ;;  %1740 = vmatprep.subr.bf16.mxu0 %v1113_v27  ;;  %v1297_v25 = vunpack.c.l.s8.bf16 %v889_v14  ;;  %v1425_v27 = vunpack.c.l.s8.bf16 %v953_v16  ;;  %v984_v14 = vld [vmem:[%s4294_s14 + $0x7d0] sm:$0xff] }
 0x15e   : > { %1781 = vmatprep.subr.bf16.mxu1 %v1241_v28  ;;  %v881_v28 = vld [vmem:[%s4294_s14 + $0x498] sm:$0xff] }
 0x160   : > { %1741 = vmatpush2.bf16.msra.mxu0 %v1112_v31  ;;  %v1424_v31 = vunpack.c.l.s8.bf16 %v952_v22 }
 0x161   : > { %1782 = vmatpush2.bf16.msra.mxu1 %v1240_v32  ;;  %1742 = vmatprep.subr.bf16.mxu0 %v1105_v33  ;;  %v1289_v32 = vunpack.c.h.s8.bf16 %v881_v28  ;;  %v1417_v33 = vunpack.c.h.s8.bf16 %v945_v29 }
 0x162   : > { %1783 = vmatprep.subr.bf16.mxu1 %v1233_v34  ;;  %v880_v34 = vld [vmem:[%s4294_s14 + $0x490] sm:$0xff] }
 0x163   : > { %v1288_v37 = vunpack.c.h.s8.bf16 %v880_v34  ;;  %v1280_v45 = vunpack.c.l.s8.bf16 %v880_v34  ;;  %v969_v34 = vld [vmem:[%s4294_s14 + $0x758] sm:$0xff] }
 0x164   : > { %1743 = vmatpush2.bf16.msra.mxu0 %v1104_v38  ;;  %v1416_v38 = vunpack.c.h.s8.bf16 %v944_v36 }
 0x165   : > { %1784 = vmatpush2.bf16.msra.mxu1 %v1232_v40  ;;  %1744 = vmatprep.subr.bf16.mxu0 %v1097_v42  ;;  %v1281_v40 = vunpack.c.l.s8.bf16 %v881_v28  ;;  %v1409_v42 = vunpack.c.l.s8.bf16 %v945_v29  ;;  %v976_v28 = vld [vmem:[%s4294_s14 + $0x790] sm:$0xff] }
 0x166   : > { %1785 = vmatprep.subr.bf16.mxu1 %v1225_v43  ;;  %v873_v43 = vld [vmem:[%s4294_s14 + $0x458] sm:$0xff] }
 0x168   : > { %1745 = vmatpush2.bf16.msra.mxu0 %v1096_v46  ;;  %v1408_v46 = vunpack.c.l.s8.bf16 %v944_v36 }
 0x169   : > { %1786 = vmatpush2.bf16.msra.mxu1 %v1224_v47  ;;  %1746 = vmatprep.subr.bf16.mxu0 %v1089_v48  ;;  %v1273_v47 = vunpack.c.h.s8.bf16 %v873_v43  ;;  %v1401_v48 = vunpack.c.h.s8.bf16 %v937_v44 }
 0x16a   : > { %1787 = vmatprep.subr.bf16.mxu1 %v1217_v49  ;;  %v872_v49 = vld [vmem:[%s4294_s14 + $0x450] sm:$0xff] }
 0x16b   : > { %v1272_v54 = vunpack.c.h.s8.bf16 %v872_v49  ;;  %v1264_v61 = vunpack.c.l.s8.bf16 %v872_v49  ;;  %v961_v49 = vld [vmem:[%s4294_s14 + $0x718] sm:$0xff] }
 0x16c   : > { %1747 = vmatpush2.bf16.msra.mxu0 %v1088_v55  ;;  %v1400_v55 = vunpack.c.h.s8.bf16 %v936_v53 }
 0x16d   : > { %1788 = vmatpush2.bf16.msra.mxu1 %v1216_v56  ;;  %1748 = vmatprep.subr.bf16.mxu0 %v1081_v57  ;;  %v1265_v56 = vunpack.c.l.s8.bf16 %v873_v43  ;;  %v1393_v57 = vunpack.c.l.s8.bf16 %v937_v44  ;;  %v968_v43 = vld [vmem:[%s4294_s14 + $0x750] sm:$0xff] }
 0x16e   : > { %1789 = vmatprep.subr.bf16.mxu1 %v1209_v58  ;;  %v865_v58 = vld [vmem:[%s4294_s14 + $0x418] sm:$0xff] }
 0x170   : > { %1749 = vmatpush2.bf16.msra.mxu0 %v1080_v62  ;;  %v1392_v62 = vunpack.c.l.s8.bf16 %v936_v53 }
 0x171   : > { %1790 = vmatpush2.bf16.msra.mxu1 %v1208_v63  ;;  %1750 = vmatprep.subr.bf16.mxu0 %v1073_v0  ;;  %v1257_v63 = vunpack.c.h.s8.bf16 %v865_v58  ;;  %v1385_v0 = vunpack.c.h.s8.bf16 %v929_v41 }
 0x172   : > { %1791 = vmatprep.subr.bf16.mxu1 %v1201_v1  ;;  %v864_v1 = vld [vmem:[%s4294_s14 + $0x410] sm:$0xff] }
 0x173   : > { %v1256_v3 = vunpack.c.h.s8.bf16 %v864_v1  ;;  %v1248_v9 = vunpack.c.l.s8.bf16 %v864_v1  ;;  %v827_v1 = vld [vmem:[%s4294_s14 + $0x2e8] sm:$0xff] }
 0x174   : > { %1751 = vmatpush2.bf16.msra.mxu0 %v1072_v4  ;;  %v1384_v4 = vunpack.c.h.s8.bf16 %v928_v2 }
 0x175   : > { %1792 = vmatpush2.bf16.msra.mxu1 %v1200_v5  ;;  %1752 = vmatprep.subr.bf16.mxu0 %v1065_v6  ;;  %v1249_v5 = vunpack.c.l.s8.bf16 %v865_v58  ;;  %v1377_v6 = vunpack.c.l.s8.bf16 %v929_v41  ;;  %v960_v58 = vld [vmem:[%s4294_s14 + $0x710] sm:$0xff] }
 0x176   : > { %1793 = vmatprep.subr.bf16.mxu1 %v1193_v7  ;;  %v921_v7 = vld [vmem:[%s4294_s14 + $0x5d8] sm:$0xff] }
 0x178   : > { %1753 = vmatpush2.bf16.msra.mxu0 %v1064_v10  ;;  %v1376_v10 = vunpack.c.l.s8.bf16 %v928_v2 }
 0x179   : > { %1794 = vmatpush2.bf16.msra.mxu1 %v1192_v11  ;;  %1754 = vmatprep.subr.bf16.mxu0 %v1057_v12  ;;  %v1369_v11 = vunpack.c.h.s8.bf16 %v921_v7  ;;  %v1497_v12 = vunpack.c.h.s8.bf16 %v985_v8 }
 0x17a   : > { %1795 = vmatprep.subr.bf16.mxu1 %v1185_v13  ;;  %v920_v13 = vld [vmem:[%s4294_s14 + $0x5d0] sm:$0xff] }
 0x17b   : > { %v1368_v16 = vunpack.c.h.s8.bf16 %v920_v13  ;;  %v1360_v22 = vunpack.c.l.s8.bf16 %v920_v13  ;;  %v819_v13 = vld [vmem:[%s4294_s14 + $0x2a8] sm:$0xff] }
 0x17c   : > { %1755 = vmatpush2.bf16.msra.mxu0 %v1056_v17  ;;  %v1496_v17 = vunpack.c.h.s8.bf16 %v984_v14 }
 0x17d   : > { %1796 = vmatpush2.bf16.msra.mxu1 %v1184_v18  ;;  %1806 = vmatprep.subr.bf16.mxu0 %v1305_v19  ;;  %v1361_v18 = vunpack.c.l.s8.bf16 %v921_v7  ;;  %v1489_v19 = vunpack.c.l.s8.bf16 %v985_v8  ;;  %v826_v7 = vld [vmem:[%s4294_s14 + $0x2e0] sm:$0xff] }
 0x17e   : > { %1847 = vmatprep.subr.bf16.mxu1 %v1433_v20  ;;  %v913_v20 = vld [vmem:[%s4294_s14 + $0x598] sm:$0xff] }
 0x17f   : > { %1757 = vmatmul.mubr.bf16.vlgmr.msra.gmra.mxu0 %v4395_v50 }
 0x180   : > { %1798 = vmatmul.mubr.bf16.vlgmr.msra.gmra.mxu1 %v4404_v60  ;;  %1807 = vmatpush1.bf16.msra.mxu0 %v1304_v23  ;;  %v1488_v23 = vunpack.c.l.s8.bf16 %v984_v14 }
 0x181   : > { %1848 = vmatpush1.bf16.msra.mxu1 %v1432_v24  ;;  %1808 = vmatprep.subr.bf16.mxu0 %v1297_v25  ;;  %v1353_v24 = vunpack.c.h.s8.bf16 %v913_v20  ;;  %v1481_v25 = vunpack.c.h.s8.bf16 %v977_v21 }
 0x182   : > { %1849 = vmatprep.subr.bf16.mxu1 %v1425_v27  ;;  %1838 = vmatprep.mubr.bf16.mxu0 %v4400_v59  ;;  %v912_v27 = vld [vmem:[%s4294_s14 + $0x590] sm:$0xff] }
 0x183   : > { %1879 = vmatprep.mubr.bf16.mxu1 %v4410_v35  ;;  %v1352_v29 = vunpack.c.h.s8.bf16 %v912_v27  ;;  %v1344_v36 = vunpack.c.l.s8.bf16 %v912_v27 }
 0x184   : > { %1809 = vmatpush1.bf16.msra.mxu0 %v1296_v30  ;;  %v1480_v30 = vunpack.c.h.s8.bf16 %v976_v28 }
 0x185   : > { %1850 = vmatpush1.bf16.msra.mxu1 %v1424_v31  ;;  %1810 = vmatprep.subr.bf16.mxu0 %v1289_v32  ;;  %v1345_v31 = vunpack.c.l.s8.bf16 %v913_v20  ;;  %v1473_v32 = vunpack.c.l.s8.bf16 %v977_v21 }
 0x186   : > { %1851 = vmatprep.subr.bf16.mxu1 %v1417_v33  ;;  %v905_v33 = vld [vmem:[%s4294_s14 + $0x558] sm:$0xff] }
 0x188   : > { %1811 = vmatpush1.bf16.msra.mxu0 %v1288_v37  ;;  %v1472_v37 = vunpack.c.l.s8.bf16 %v976_v28 }
 0x189   : > { %1852 = vmatpush1.bf16.msra.mxu1 %v1416_v38  ;;  %1812 = vmatprep.subr.bf16.mxu0 %v1281_v40  ;;  %v1337_v38 = vunpack.c.h.s8.bf16 %v905_v33  ;;  %v1465_v40 = vunpack.c.h.s8.bf16 %v969_v34 }
 0x18a   : > { %1853 = vmatprep.subr.bf16.mxu1 %v1409_v42  ;;  %v904_v42 = vld [vmem:[%s4294_s14 + $0x550] sm:$0xff] }
 0x18b   : > { %v1336_v44 = vunpack.c.h.s8.bf16 %v904_v42  ;;  %v1328_v53 = vunpack.c.l.s8.bf16 %v904_v42 }
 0x18c   : > { %1813 = vmatpush1.bf16.msra.mxu0 %v1280_v45  ;;  %v1464_v45 = vunpack.c.h.s8.bf16 %v968_v43 }
 0x18d   : > { %1854 = vmatpush1.bf16.msra.mxu1 %v1408_v46  ;;  %1814 = vmatprep.subr.bf16.mxu0 %v1273_v47  ;;  %v1329_v46 = vunpack.c.l.s8.bf16 %v905_v33  ;;  %v1457_v47 = vunpack.c.l.s8.bf16 %v969_v34 }
 0x18e   : > { %1855 = vmatprep.subr.bf16.mxu1 %v1401_v48  ;;  %v897_v48 = vld [vmem:[%s4294_s14 + $0x518] sm:$0xff] }
 0x190   : > { %1815 = vmatpush1.bf16.msra.mxu0 %v1272_v54  ;;  %v1456_v54 = vunpack.c.l.s8.bf16 %v968_v43 }
 0x191   : > { %1856 = vmatpush1.bf16.msra.mxu1 %v1400_v55  ;;  %1816 = vmatprep.subr.bf16.mxu0 %v1265_v56  ;;  %v1321_v55 = vunpack.c.h.s8.bf16 %v897_v48  ;;  %v1449_v56 = vunpack.c.h.s8.bf16 %v961_v49 }
 0x192   : > { %1857 = vmatprep.subr.bf16.mxu1 %v1393_v57  ;;  %v896_v57 = vld [vmem:[%s4294_s14 + $0x510] sm:$0xff] }
 0x193   : > { %v1320_v41 = vunpack.c.h.s8.bf16 %v896_v57  ;;  %v1312_v2 = vunpack.c.l.s8.bf16 %v896_v57 }
 0x194   : > { %1817 = vmatpush1.bf16.msra.mxu0 %v1264_v61  ;;  %v1448_v61 = vunpack.c.h.s8.bf16 %v960_v58 }
 0x195   : > { %1858 = vmatpush1.bf16.msra.mxu1 %v1392_v62  ;;  %1818 = vmatprep.subr.bf16.mxu0 %v1257_v63  ;;  %v1313_v62 = vunpack.c.l.s8.bf16 %v897_v48  ;;  %v1441_v63 = vunpack.c.l.s8.bf16 %v961_v49 }
 0x196   : > { %1859 = vmatprep.subr.bf16.mxu1 %v1385_v0  ;;  %v763_v0 = vld [vmem:[%s4294_s14 + $0xe8] sm:$0xff] }
 0x198   : > { %1819 = vmatpush1.bf16.msra.mxu0 %v1256_v3  ;;  %v1440_v3 = vunpack.c.l.s8.bf16 %v960_v58 }
 0x199   : > { %1860 = vmatpush1.bf16.msra.mxu1 %v1384_v4  ;;  %1820 = vmatprep.subr.bf16.mxu0 %v1249_v5  ;;  %v1051_v4 = vunpack.c.h.s8.bf16 %v763_v0  ;;  %v1179_v5 = vunpack.c.h.s8.bf16 %v827_v1 }
 0x19a   : > { %1861 = vmatprep.subr.bf16.mxu1 %v1377_v6  ;;  %v762_v6 = vld [vmem:[%s4294_s14 + $0xe0] sm:$0xff] }
 0x19b   : > { %v1050_v8 = vunpack.c.h.s8.bf16 %v762_v6 }
 0x19c   : > { %1821 = vmatpush1.bf16.msra.mxu0 %v1248_v9  ;;  %v1178_v9 = vunpack.c.h.s8.bf16 %v826_v7 }
 0x19d   : > { %1862 = vmatpush1.bf16.msra.mxu1 %v1376_v10  ;;  %1822 = vmatprep.subr.bf16.mxu0 %v1369_v11  ;;  %v1043_v10 = vunpack.c.l.s8.bf16 %v763_v0  ;;  %v1171_v11 = vunpack.c.l.s8.bf16 %v827_v1 }
 0x19e   : > { %1863 = vmatprep.subr.bf16.mxu1 %v1497_v12  ;;  %v755_v12 = vld [vmem:[%s4294_s14 + $0xa8] sm:$0xff] }
 0x19f   : > { %v1027_v34 = vunpack.c.l.s8.bf16 %v755_v12 }
 0x1a0   : > { %1823 = vmatpush2.bf16.msra.mxu0 %v1368_v16 }
 0x1a1   : > { %1864 = vmatpush2.bf16.msra.mxu1 %v1496_v17  ;;  %1824 = vmatprep.subr.bf16.mxu0 %v1361_v18  ;;  %v1042_v18 = vunpack.c.l.s8.bf16 %v762_v6 }
 0x1a2   : > { %1865 = vmatprep.subr.bf16.mxu1 %v1489_v19  ;;  %v1170_v19 = vunpack.c.l.s8.bf16 %v826_v7 }
 0x1a4   : > { %1825 = vmatpush2.bf16.msra.mxu0 %v1360_v22  ;;  %v1035_v22 = vunpack.c.h.s8.bf16 %v755_v12 }
 0x1a5   : > { %1866 = vmatpush2.bf16.msra.mxu1 %v1488_v23  ;;  %1826 = vmatprep.subr.bf16.mxu0 %v1353_v24  ;;  %v1163_v23 = vunpack.c.h.s8.bf16 %v819_v13  ;;  %v754_v24 = vld [vmem:[%s4294_s14 + $0xa0] sm:$0xff] }
 0x1a6   : > { %1867 = vmatprep.subr.bf16.mxu1 %v1481_v25  ;;  %v818_v25 = vld [vmem:[%s4294_s14 + $0x2a0] sm:$0xff] }
 0x1a7   : > { %v1154_v42 = vunpack.c.l.s8.bf16 %v818_v25 }
 0x1a8   : > { %1827 = vmatpush2.bf16.msra.mxu0 %v1352_v29 }
 0x1a9   : > { %1868 = vmatpush2.bf16.msra.mxu1 %v1480_v30  ;;  %1828 = vmatprep.subr.bf16.mxu0 %v1345_v31  ;;  %v1034_v30 = vunpack.c.h.s8.bf16 %v754_v24  ;;  %v1162_v31 = vunpack.c.h.s8.bf16 %v818_v25 }
 0x1aa   : > { %1869 = vmatprep.subr.bf16.mxu1 %v1473_v32 }
 0x1ac   : > { %1829 = vmatpush2.bf16.msra.mxu0 %v1344_v36  ;;  %v1155_v36 = vunpack.c.l.s8.bf16 %v819_v13 }
 0x1ad   : > { %1870 = vmatpush2.bf16.msra.mxu1 %v1472_v37  ;;  %1830 = vmatprep.subr.bf16.mxu0 %v1337_v38  ;;  %v747_v37 = vld [vmem:[%s4294_s14 + $0x68] sm:$0xff] }
 0x1ae   : > { %1871 = vmatprep.subr.bf16.mxu1 %v1465_v40  ;;  %v811_v38 = vld [vmem:[%s4294_s14 + $0x268] sm:$0xff]  ;;  %v1026_v40 = vunpack.c.l.s8.bf16 %v754_v24  ;;  %v1019_v43 = vunpack.c.h.s8.bf16 %v747_v37  ;;  %v1011_v49 = vunpack.c.l.s8.bf16 %v747_v37  ;;  %v850_v24 = vld [vmem:[%s4294_s14 + $0x3a0] sm:$0xff] }
 0x1b0   : > { %1831 = vmatpush2.bf16.msra.mxu0 %v1336_v44  ;;  %v1147_v44 = vunpack.c.h.s8.bf16 %v811_v38 }
 0x1b1   : > { %1872 = vmatpush2.bf16.msra.mxu1 %v1464_v45  ;;  %1832 = vmatprep.subr.bf16.mxu0 %v1329_v46  ;;  %v746_v45 = vld [vmem:[%s4294_s14 + $0x60] sm:$0xff] }
 0x1b2   : > { %1873 = vmatprep.subr.bf16.mxu1 %v1457_v47  ;;  %v810_v46 = vld [vmem:[%s4294_s14 + $0x260] sm:$0xff]  ;;  %v1018_v47 = vunpack.c.h.s8.bf16 %v746_v45 }
 0x1b3   : > { %v1146_v48 = vunpack.c.h.s8.bf16 %v810_v46  ;;  %v1138_v57 = vunpack.c.l.s8.bf16 %v810_v46  ;;  %v771_v46 = vld [vmem:[%s4294_s14 + $0x128] sm:$0xff] }
 0x1b4   : > { %1833 = vmatpush2.bf16.msra.mxu0 %v1328_v53  ;;  %v1139_v53 = vunpack.c.l.s8.bf16 %v811_v38  ;;  %v778_v38 = vld [vmem:[%s4294_s14 + $0x160] sm:$0xff] }
 0x1b5   : > { %1874 = vmatpush2.bf16.msra.mxu1 %v1456_v54  ;;  %1834 = vmatprep.subr.bf16.mxu0 %v1321_v55  ;;  %v739_v54 = vld [vmem:[%s4294_s14 + $0x28] sm:$0xff] }
 0x1b6   : > { %1875 = vmatprep.subr.bf16.mxu1 %v1449_v56  ;;  %v803_v55 = vld [vmem:[%s4294_s14 + $0x228] sm:$0xff]  ;;  %v1010_v56 = vunpack.c.l.s8.bf16 %v746_v45  ;;  %v1003_v58 = vunpack.c.h.s8.bf16 %v739_v54  ;;  %v995_v1 = vunpack.c.l.s8.bf16 %v739_v54 }
 0x1b8   : > { %1835 = vmatpush2.bf16.msra.mxu0 %v1320_v41  ;;  %v1131_v41 = vunpack.c.h.s8.bf16 %v803_v55 }
 0x1b9   : > { %1876 = vmatpush2.bf16.msra.mxu1 %v1448_v61  ;;  %1836 = vmatprep.subr.bf16.mxu0 %v1313_v62  ;;  %v738_v61 = vld [vmem:[%s4294_s14 + $0x20] sm:$0xff] }
 0x1ba   : > { %1877 = vmatprep.subr.bf16.mxu1 %v1441_v63  ;;  %v802_v62 = vld [vmem:[%s4294_s14 + $0x220] sm:$0xff]  ;;  %v1002_v63 = vunpack.c.h.s8.bf16 %v738_v61 }
 0x1bb   : > { %v1130_v0 = vunpack.c.h.s8.bf16 %v802_v62  ;;  %v1122_v6 = vunpack.c.l.s8.bf16 %v802_v62  ;;  %v891_v62 = vld [vmem:[%s4294_s14 + $0x4e8] sm:$0xff] }
 0x1bc   : > { %1837 = vmatpush2.bf16.msra.mxu0 %v1312_v2  ;;  %v1123_v2 = vunpack.c.l.s8.bf16 %v803_v55  ;;  %v770_v55 = vld [vmem:[%s4294_s14 + $0x120] sm:$0xff] }
 0x1bd   : > { %1878 = vmatpush2.bf16.msra.mxu1 %v1440_v3  ;;  %1888 = vmatprep.subr.bf16.mxu0 %v1051_v4  ;;  %v795_v3 = vld [vmem:[%s4294_s14 + $0x1e8] sm:$0xff] }
 0x1be   : > { %1929 = vmatprep.subr.bf16.mxu1 %v1179_v5  ;;  %v859_v4 = vld [vmem:[%s4294_s14 + $0x3e8] sm:$0xff]  ;;  %v994_v5 = vunpack.c.l.s8.bf16 %v738_v61  ;;  %v1115_v7 = vunpack.c.h.s8.bf16 %v795_v3  ;;  %v1107_v13 = vunpack.c.l.s8.bf16 %v795_v3 }
 0x1bf   : > { %v1594_v14 = vpop.f32.mrf.mxu0  ;;  %1839 = vmatmul.mubr.bf16.vlgmr.msra.gmra.mxu0 %v4379_v15 }
 0x1c0   : > { %v1635_v16 = vpop.f32.mrf.mxu1  ;;  %1880 = vmatmul.mubr.bf16.vlgmr.msra.gmra.mxu1 %v4448_v39  ;;  %1889 = vmatpush1.bf16.msra.mxu0 %v1050_v8  ;;  %v1243_v8 = vunpack.c.h.s8.bf16 %v859_v4 }
 0x1c1   : > { %v4526_v17 = vadd.f32 %v1635_v16, %v1594_v14  ;;  %1930 = vmatpush1.bf16.msra.mxu1 %v1178_v9  ;;  %v1596_v20 = vpop.f32.mrf.mxu0  ;;  %1890 = vmatprep.subr.bf16.mxu0 %v1043_v10  ;;  %v794_v9 = vld [vmem:[%s4294_s14 + $0x1e0] sm:$0xff]  ;;  %v1235_v14 = vunpack.c.l.s8.bf16 %v859_v4  ;;  %v787_v16 = vld [vmem:[%s4294_s14 + $0x1a8] sm:$0xff] }
 0x1c2   : > { %v1637_v21 = vpop.f32.mrf.mxu1  ;;  %1931 = vmatprep.subr.bf16.mxu1 %v1171_v11  ;;  %1920 = vmatprep.mubr.bf16.mxu0 %v4356_v51  ;;  %v858_v10 = vld [vmem:[%s4294_s14 + $0x3e0] sm:$0xff]  ;;  %v1114_v11 = vunpack.c.h.s8.bf16 %v794_v9 }
 0x1c3   : > { %v4530_v27 = vadd.f32 %v1637_v21, %v1596_v20  ;;  %1961 = vmatprep.mubr.bf16.mxu1 %v4361_v52  ;;  %v1598_v28 = vpop.f32.mrf.mxu0  ;;  %v1242_v12 = vunpack.c.h.s8.bf16 %v858_v10  ;;  %v1234_v20 = vunpack.c.l.s8.bf16 %v858_v10  ;;  %v1099_v21 = vunpack.c.h.s8.bf16 %v787_v16  ;;  %v890_v4 = vld [vmem:[%s4294_s14 + $0x4e0] sm:$0xff]  ;;  %v883_v10 = vld [vmem:[%s4294_s14 + $0x4a8] sm:$0xff] }
 0x1c4   : > { %v1639_v29 = vpop.f32.mrf.mxu1  ;;  %1891 = vmatpush1.bf16.msra.mxu0 %v1042_v18  ;;  %v851_v18 = vld [vmem:[%s4294_s14 + $0x3a8] sm:$0xff]  ;;  %v1226_v28 = vunpack.c.h.s8.bf16 %v850_v24 }
 0x1c5   : > { %1932 = vmatpush1.bf16.msra.mxu1 %v1170_v19  ;;  %v1599_v32 = vpop.f32.mrf.mxu0  ;;  %1892 = vmatprep.subr.bf16.mxu0 %v1035_v22  ;;  %v1106_v19 = vunpack.c.l.s8.bf16 %v794_v9  ;;  %v1227_v22 = vunpack.c.h.s8.bf16 %v851_v18  ;;  %v1091_v29 = vunpack.c.l.s8.bf16 %v787_v16  ;;  %v1298_v16 = vunpack.c.l.s8.bf16 %v890_v4 }
 0x1c6   : > { %v1640_v33 = vpop.f32.mrf.mxu1  ;;  %1933 = vmatprep.subr.bf16.mxu1 %v1163_v23  ;;  %v786_v23 = vld [vmem:[%s4294_s14 + $0x1a0] sm:$0xff]  ;;  %v843_v32 = vld [vmem:[%s4294_s14 + $0x368] sm:$0xff] }
 0x1c7   : > { %v1098_v25 = vunpack.c.h.s8.bf16 %v786_v23  ;;  %v1090_v33 = vunpack.c.l.s8.bf16 %v786_v23  ;;  %v1211_v37 = vunpack.c.h.s8.bf16 %v843_v32  ;;  %v1203_v45 = vunpack.c.l.s8.bf16 %v843_v32  ;;  %v882_v23 = vld [vmem:[%s4294_s14 + $0x4a0] sm:$0xff] }
 0x1c8   : > { %1893 = vmatpush1.bf16.msra.mxu0 %v1034_v30  ;;  %v1219_v30 = vunpack.c.l.s8.bf16 %v851_v18 }
 0x1c9   : > { %1934 = vmatpush1.bf16.msra.mxu1 %v1162_v31  ;;  %1894 = vmatprep.subr.bf16.mxu0 %v1027_v34  ;;  %v779_v31 = vld [vmem:[%s4294_s14 + $0x168] sm:$0xff]  ;;  %v1218_v34 = vunpack.c.l.s8.bf16 %v850_v24  ;;  %v946_v24 = vld [vmem:[%s4294_s14 + $0x6a0] sm:$0xff] }
 0x1ca   : > { %1935 = vmatprep.subr.bf16.mxu1 %v1155_v36  ;;  %v1083_v36 = vunpack.c.h.s8.bf16 %v779_v31  ;;  %v1418_v32 = vunpack.c.h.s8.bf16 %v946_v24 }
 0x1cc   : > { %1895 = vmatpush1.bf16.msra.mxu0 %v1026_v40  ;;  %v842_v40 = vld [vmem:[%s4294_s14 + $0x360] sm:$0xff] }
 0x1cd   : > { %1936 = vmatpush1.bf16.msra.mxu1 %v1154_v42  ;;  %1896 = vmatprep.subr.bf16.mxu0 %v1019_v43  ;;  %v1082_v42 = vunpack.c.h.s8.bf16 %v778_v38  ;;  %v1210_v43 = vunpack.c.h.s8.bf16 %v842_v40 }
 0x1ce   : > { %1937 = vmatprep.subr.bf16.mxu1 %v1147_v44  ;;  %v1075_v44 = vunpack.c.l.s8.bf16 %v779_v31  ;;  %v1290_v31 = vunpack.c.h.s8.bf16 %v882_v23 }
 0x1d0   : > { %1897 = vmatpush1.bf16.msra.mxu0 %v1018_v47  ;;  %v835_v47 = vld [vmem:[%s4294_s14 + $0x328] sm:$0xff] }
 0x1d1   : > { %1938 = vmatpush1.bf16.msra.mxu1 %v1146_v48  ;;  %1898 = vmatprep.subr.bf16.mxu0 %v1011_v49  ;;  %v1074_v48 = vunpack.c.l.s8.bf16 %v778_v38  ;;  %v1202_v49 = vunpack.c.l.s8.bf16 %v842_v40  ;;  %v1195_v54 = vunpack.c.h.s8.bf16 %v835_v47  ;;  %v1187_v61 = vunpack.c.l.s8.bf16 %v835_v47  ;;  %v939_v38 = vld [vmem:[%s4294_s14 + $0x668] sm:$0xff] }
 0x1d2   : > { %1939 = vmatprep.subr.bf16.mxu1 %v1139_v53  ;;  %v1067_v53 = vunpack.c.h.s8.bf16 %v771_v46  ;;  %v1282_v40 = vunpack.c.l.s8.bf16 %v882_v23  ;;  %v914_v23 = vld [vmem:[%s4294_s14 + $0x5a0] sm:$0xff] }
 0x1d4   : > { %1899 = vmatpush1.bf16.msra.mxu0 %v1010_v56  ;;  %v834_v56 = vld [vmem:[%s4294_s14 + $0x320] sm:$0xff] }
 0x1d5   : > { %1940 = vmatpush1.bf16.msra.mxu1 %v1138_v57  ;;  %1900 = vmatprep.subr.bf16.mxu0 %v1003_v58  ;;  %v1066_v57 = vunpack.c.h.s8.bf16 %v770_v55  ;;  %v1194_v58 = vunpack.c.h.s8.bf16 %v834_v56 }
 0x1d6   : > { %1941 = vmatprep.subr.bf16.mxu1 %v1131_v41  ;;  %v1059_v41 = vunpack.c.l.s8.bf16 %v771_v46  ;;  %v938_v46 = vld [vmem:[%s4294_s14 + $0x660] sm:$0xff] }
 0x1d8   : > { %1901 = vmatpush1.bf16.msra.mxu0 %v1002_v63  ;;  %v955_v63 = vld [vmem:[%s4294_s14 + $0x6e8] sm:$0xff] }
 0x1d9   : > { %1942 = vmatpush1.bf16.msra.mxu1 %v1130_v0  ;;  %1902 = vmatprep.subr.bf16.mxu0 %v995_v1  ;;  %v1058_v0 = vunpack.c.l.s8.bf16 %v770_v55  ;;  %v1186_v1 = vunpack.c.l.s8.bf16 %v834_v56  ;;  %v1435_v3 = vunpack.c.h.s8.bf16 %v955_v63  ;;  %v1427_v9 = vunpack.c.l.s8.bf16 %v955_v63  ;;  %v931_v55 = vld [vmem:[%s4294_s14 + $0x628] sm:$0xff] }
 0x1da   : > { %1943 = vmatprep.subr.bf16.mxu1 %v1123_v2  ;;  %v1307_v2 = vunpack.c.h.s8.bf16 %v891_v62 }
 0x1dc   : > { %1903 = vmatpush1.bf16.msra.mxu0 %v994_v5  ;;  %v954_v5 = vld [vmem:[%s4294_s14 + $0x6e0] sm:$0xff] }
 0x1dd   : > { %1944 = vmatpush1.bf16.msra.mxu1 %v1122_v6  ;;  %1904 = vmatprep.subr.bf16.mxu0 %v1115_v7  ;;  %v1306_v6 = vunpack.c.h.s8.bf16 %v890_v4  ;;  %v1434_v7 = vunpack.c.h.s8.bf16 %v954_v5  ;;  %v1426_v18 = vunpack.c.l.s8.bf16 %v954_v5  ;;  %v987_v4 = vld [vmem:[%s4294_s14 + $0x7e8] sm:$0xff] }
 0x1de   : > { %1945 = vmatprep.subr.bf16.mxu1 %v1243_v8  ;;  %v1299_v8 = vunpack.c.l.s8.bf16 %v891_v62  ;;  %v930_v62 = vld [vmem:[%s4294_s14 + $0x620] sm:$0xff] }
 0x1e0   : > { %1905 = vmatpush2.bf16.msra.mxu0 %v1114_v11  ;;  %v947_v11 = vld [vmem:[%s4294_s14 + $0x6a8] sm:$0xff] }
 0x1e1   : > { %1946 = vmatpush2.bf16.msra.mxu1 %v1242_v12  ;;  %1906 = vmatprep.subr.bf16.mxu0 %v1107_v13 }
 0x1e2   : > { %1947 = vmatprep.subr.bf16.mxu1 %v1235_v14 }
 0x1e4   : > { %1907 = vmatpush2.bf16.msra.mxu0 %v1106_v19 }
 0x1e5   : > { %1948 = vmatpush2.bf16.msra.mxu1 %v1234_v20  ;;  %1908 = vmatprep.subr.bf16.mxu0 %v1099_v21  ;;  %v1291_v21 = vunpack.c.h.s8.bf16 %v883_v10 }
 0x1e6   : > { %1949 = vmatprep.subr.bf16.mxu1 %v1227_v22  ;;  %v1419_v22 = vunpack.c.h.s8.bf16 %v947_v11 }
 0x1e8   : > { %1909 = vmatpush2.bf16.msra.mxu0 %v1098_v25 }
 0x1e9   : > { %1950 = vmatpush2.bf16.msra.mxu1 %v1226_v28  ;;  %1910 = vmatprep.subr.bf16.mxu0 %v1091_v29 }
 0x1ea   : > { %1951 = vmatprep.subr.bf16.mxu1 %v1219_v30 }
 0x1ec   : > { %1911 = vmatpush2.bf16.msra.mxu0 %v1090_v33 }
 0x1ed   : > { %1952 = vmatpush2.bf16.msra.mxu1 %v1218_v34  ;;  %1912 = vmatprep.subr.bf16.mxu0 %v1083_v36  ;;  %v1411_v36 = vunpack.c.l.s8.bf16 %v947_v11 }
 0x1ee   : > { %1953 = vmatprep.subr.bf16.mxu1 %v1211_v37  ;;  %v875_v37 = vld [vmem:[%s4294_s14 + $0x468] sm:$0xff] }
 0x1f0   : > { %1913 = vmatpush2.bf16.msra.mxu0 %v1082_v42  ;;  %v1410_v42 = vunpack.c.l.s8.bf16 %v946_v24  ;;  %v978_v24 = vld [vmem:[%s4294_s14 + $0x7a0] sm:$0xff] }
 0x1f1   : > { %1954 = vmatpush2.bf16.msra.mxu1 %v1210_v43  ;;  %1914 = vmatprep.subr.bf16.mxu0 %v1075_v44  ;;  %v1275_v43 = vunpack.c.h.s8.bf16 %v875_v37  ;;  %v1403_v44 = vunpack.c.h.s8.bf16 %v939_v38 }
 0x1f2   : > { %1955 = vmatprep.subr.bf16.mxu1 %v1203_v45  ;;  %v874_v45 = vld [vmem:[%s4294_s14 + $0x460] sm:$0xff] }
 0x1f3   : > { %v1274_v47 = vunpack.c.h.s8.bf16 %v874_v45  ;;  %v1266_v56 = vunpack.c.l.s8.bf16 %v874_v45 }
 0x1f4   : > { %1915 = vmatpush2.bf16.msra.mxu0 %v1074_v48  ;;  %v1402_v48 = vunpack.c.h.s8.bf16 %v938_v46 }
 0x1f5   : > { %1956 = vmatpush2.bf16.msra.mxu1 %v1202_v49  ;;  %1916 = vmatprep.subr.bf16.mxu0 %v1067_v53  ;;  %v1267_v49 = vunpack.c.l.s8.bf16 %v875_v37  ;;  %v1395_v53 = vunpack.c.l.s8.bf16 %v939_v38  ;;  %v906_v38 = vld [vmem:[%s4294_s14 + $0x560] sm:$0xff] }
 0x1f6   : > { %1957 = vmatprep.subr.bf16.mxu1 %v1195_v54  ;;  %v867_v54 = vld [vmem:[%s4294_s14 + $0x428] sm:$0xff] }
 0x1f8   : > { %1917 = vmatpush2.bf16.msra.mxu0 %v1066_v57  ;;  %v1394_v57 = vunpack.c.l.s8.bf16 %v938_v46  ;;  %v899_v46 = vld [vmem:[%s4294_s14 + $0x528] sm:$0xff] }
 0x1f9   : > { %1958 = vmatpush2.bf16.msra.mxu1 %v1194_v58  ;;  %1918 = vmatprep.subr.bf16.mxu0 %v1059_v41  ;;  %v1259_v58 = vunpack.c.h.s8.bf16 %v867_v54  ;;  %v1387_v41 = vunpack.c.h.s8.bf16 %v931_v55 }
 0x1fa   : > { %1959 = vmatprep.subr.bf16.mxu1 %v1187_v61  ;;  %v866_v61 = vld [vmem:[%s4294_s14 + $0x420] sm:$0xff] }
 0x1fb   : > { %v1258_v63 = vunpack.c.h.s8.bf16 %v866_v61  ;;  %v1250_v5 = vunpack.c.l.s8.bf16 %v866_v61 }
 0x1fc   : > { %1919 = vmatpush2.bf16.msra.mxu0 %v1058_v0  ;;  %v1386_v0 = vunpack.c.h.s8.bf16 %v930_v62 }
 0x1fd   : > { %1960 = vmatpush2.bf16.msra.mxu1 %v1186_v1  ;;  %1970 = vmatprep.subr.bf16.mxu0 %v1307_v2  ;;  %v1251_v1 = vunpack.c.l.s8.bf16 %v867_v54  ;;  %v1379_v2 = vunpack.c.l.s8.bf16 %v931_v55  ;;  %v898_v55 = vld [vmem:[%s4294_s14 + $0x520] sm:$0xff] }
 0x1fe   : > { %2011 = vmatprep.subr.bf16.mxu1 %v1435_v3  ;;  %v923_v3 = vld [vmem:[%s4294_s14 + $0x5e8] sm:$0xff] }
 0x1ff   : > { %v1676_v12 = vpop.f32.mrf.mxu0  ;;  %1921 = vmatmul.mubr.bf16.vlgmr.msra.gmra.mxu0 %v4395_v50 }
 0x200   : > { %v1717_v13 = vpop.f32.mrf.mxu1  ;;  %1962 = vmatmul.mubr.bf16.vlgmr.msra.gmra.mxu1 %v4404_v60  ;;  %v1677_v14 = vadd.f32 %v1676_v12, %v4526_v17  ;;  %1971 = vmatpush1.bf16.msra.mxu0 %v1306_v6  ;;  %v1378_v6 = vunpack.c.l.s8.bf16 %v930_v62  ;;  %v765_v62 = vld [vmem:[%s4294_s14 + $0xf8] sm:$0xff] }
 0x201   : > { %2012 = vmatpush1.bf16.msra.mxu1 %v1434_v7  ;;  %v1678_v19 = vpop.f32.mrf.mxu0  ;;  %1972 = vmatprep.subr.bf16.mxu0 %v1299_v8  ;;  %v1371_v7 = vunpack.c.h.s8.bf16 %v923_v3  ;;  %v1499_v8 = vunpack.c.h.s8.bf16 %v987_v4 }
 0x202   : > { %v1719_v20 = vpop.f32.mrf.mxu1  ;;  %2013 = vmatprep.subr.bf16.mxu1 %v1427_v9  ;;  %v4569_v25 = vadd.f32 %v1717_v13, %v1677_v14  ;;  %v1679_v28 = vadd.f32 %v1678_v19, %v4530_v27  ;;  %2002 = vmatprep.mubr.bf16.mxu0 %v4400_v59  ;;  %v1283_v27 = vunpack.c.l.s8.bf16 %v883_v10  ;;  %v922_v9 = vld [vmem:[%s4294_s14 + $0x5e0] sm:$0xff]  ;;  %v1363_v13 = vunpack.c.l.s8.bf16 %v923_v3 }
 0x203   : > { %2043 = vmatprep.mubr.bf16.mxu1 %v4410_v35  ;;  %v1680_v17 = vpop.f32.mrf.mxu0  ;;  %v986_v10 = vld [vmem:[%s4294_s14 + $0x7e0] sm:$0xff]  ;;  %v1370_v11 = vunpack.c.h.s8.bf16 %v922_v9  ;;  %v1491_v14 = vunpack.c.l.s8.bf16 %v987_v4  ;;  %v1362_v19 = vunpack.c.l.s8.bf16 %v922_v9  ;;  %v764_v4 = vld [vmem:[%s4294_s14 + $0xf0] sm:$0xff] }
 0x204   : > { %v1721_v29 = vpop.f32.mrf.mxu1  ;;  %v4574_v30 = vadd.f32 %v1719_v20, %v1679_v28  ;;  %1973 = vmatpush1.bf16.msra.mxu0 %v1298_v16  ;;  %v1498_v12 = vunpack.c.h.s8.bf16 %v986_v10  ;;  %v915_v16 = vld [vmem:[%s4294_s14 + $0x5a8] sm:$0xff]  ;;  %v1490_v20 = vunpack.c.l.s8.bf16 %v986_v10  ;;  %v1354_v28 = vunpack.c.h.s8.bf16 %v914_v23  ;;  %v757_v10 = vld [vmem:[%s4294_s14 + $0xb8] sm:$0xff] }
 0x205   : > { %2014 = vmatpush1.bf16.msra.mxu1 %v1426_v18  ;;  %v1681_v33 = vpop.f32.mrf.mxu0  ;;  %1974 = vmatprep.subr.bf16.mxu0 %v1291_v21  ;;  %v979_v18 = vld [vmem:[%s4294_s14 + $0x7a8] sm:$0xff]  ;;  %v1355_v21 = vunpack.c.h.s8.bf16 %v915_v16  ;;  %v1482_v17 = vunpack.c.h.s8.bf16 %v978_v24  ;;  %v1347_v29 = vunpack.c.l.s8.bf16 %v915_v16  ;;  %v1044_v16 = vunpack.c.l.s8.bf16 %v764_v4 }
 0x206   : > { %v1722_v34 = vpop.f32.mrf.mxu1  ;;  %2015 = vmatprep.subr.bf16.mxu1 %v1419_v22  ;;  %v1483_v22 = vunpack.c.h.s8.bf16 %v979_v18  ;;  %v971_v33 = vld [vmem:[%s4294_s14 + $0x768] sm:$0xff] }
 0x207   : > { %v1346_v34 = vunpack.c.l.s8.bf16 %v914_v23  ;;  %v1467_v37 = vunpack.c.h.s8.bf16 %v971_v33  ;;  %v1459_v45 = vunpack.c.l.s8.bf16 %v971_v33  ;;  %v756_v23 = vld [vmem:[%s4294_s14 + $0xb0] sm:$0xff] }
 0x208   : > { %1975 = vmatpush1.bf16.msra.mxu0 %v1290_v31  ;;  %v1475_v31 = vunpack.c.l.s8.bf16 %v979_v18 }
 0x209   : > { %2016 = vmatpush1.bf16.msra.mxu1 %v1418_v32  ;;  %1976 = vmatprep.subr.bf16.mxu0 %v1283_v27  ;;  %v907_v32 = vld [vmem:[%s4294_s14 + $0x568] sm:$0xff]  ;;  %v1474_v27 = vunpack.c.l.s8.bf16 %v978_v24  ;;  %v820_v24 = vld [vmem:[%s4294_s14 + $0x2b0] sm:$0xff] }
 0x20a   : > { %2017 = vmatprep.subr.bf16.mxu1 %v1411_v36  ;;  %v1339_v36 = vunpack.c.h.s8.bf16 %v907_v32 }
 0x20c   : > { %1977 = vmatpush1.bf16.msra.mxu0 %v1282_v40  ;;  %v970_v40 = vld [vmem:[%s4294_s14 + $0x760] sm:$0xff] }
 0x20d   : > { %2018 = vmatpush1.bf16.msra.mxu1 %v1410_v42  ;;  %1978 = vmatprep.subr.bf16.mxu0 %v1275_v43  ;;  %v1338_v42 = vunpack.c.h.s8.bf16 %v906_v38  ;;  %v1466_v43 = vunpack.c.h.s8.bf16 %v970_v40 }
 0x20e   : > { %2019 = vmatprep.subr.bf16.mxu1 %v1403_v44  ;;  %v1331_v44 = vunpack.c.l.s8.bf16 %v907_v32  ;;  %v1164_v32 = vunpack.c.h.s8.bf16 %v820_v24 }
 0x210   : > { %1979 = vmatpush1.bf16.msra.mxu0 %v1274_v47  ;;  %v963_v47 = vld [vmem:[%s4294_s14 + $0x728] sm:$0xff] }
 0x211   : > { %2020 = vmatpush1.bf16.msra.mxu1 %v1402_v48  ;;  %1980 = vmatprep.subr.bf16.mxu0 %v1267_v49  ;;  %v1330_v48 = vunpack.c.l.s8.bf16 %v906_v38  ;;  %v1458_v49 = vunpack.c.l.s8.bf16 %v970_v40  ;;  %v1451_v54 = vunpack.c.h.s8.bf16 %v963_v47  ;;  %v1443_v61 = vunpack.c.l.s8.bf16 %v963_v47  ;;  %v813_v38 = vld [vmem:[%s4294_s14 + $0x278] sm:$0xff] }
 0x212   : > { %2021 = vmatprep.subr.bf16.mxu1 %v1395_v53  ;;  %v1323_v53 = vunpack.c.h.s8.bf16 %v899_v46 }
 0x214   : > { %1981 = vmatpush1.bf16.msra.mxu0 %v1266_v56  ;;  %v962_v56 = vld [vmem:[%s4294_s14 + $0x720] sm:$0xff] }
 0x215   : > { %2022 = vmatpush1.bf16.msra.mxu1 %v1394_v57  ;;  %1982 = vmatprep.subr.bf16.mxu0 %v1259_v58  ;;  %v1322_v57 = vunpack.c.h.s8.bf16 %v898_v55  ;;  %v1450_v58 = vunpack.c.h.s8.bf16 %v962_v56 }
 0x216   : > { %2023 = vmatprep.subr.bf16.mxu1 %v1387_v41  ;;  %v1315_v41 = vunpack.c.l.s8.bf16 %v899_v46 }
 0x218   : > { %1983 = vmatpush1.bf16.msra.mxu0 %v1258_v63  ;;  %v829_v63 = vld [vmem:[%s4294_s14 + $0x2f8] sm:$0xff] }
 0x219   : > { %2024 = vmatpush1.bf16.msra.mxu1 %v1386_v0  ;;  %1984 = vmatprep.subr.bf16.mxu0 %v1251_v1  ;;  %v1314_v0 = vunpack.c.l.s8.bf16 %v898_v55  ;;  %v1442_v1 = vunpack.c.l.s8.bf16 %v962_v56  ;;  %v1181_v3 = vunpack.c.h.s8.bf16 %v829_v63  ;;  %v1173_v9 = vunpack.c.l.s8.bf16 %v829_v63 }
 0x21a   : > { %2025 = vmatprep.subr.bf16.mxu1 %v1379_v2  ;;  %v1053_v2 = vunpack.c.h.s8.bf16 %v765_v62 }
 0x21c   : > { %1985 = vmatpush1.bf16.msra.mxu0 %v1250_v5  ;;  %v828_v5 = vld [vmem:[%s4294_s14 + $0x2f0] sm:$0xff] }
 0x21d   : > { %2026 = vmatpush1.bf16.msra.mxu1 %v1378_v6  ;;  %1986 = vmatprep.subr.bf16.mxu0 %v1371_v7  ;;  %v1052_v6 = vunpack.c.h.s8.bf16 %v764_v4  ;;  %v1180_v7 = vunpack.c.h.s8.bf16 %v828_v5  ;;  %v1172_v18 = vunpack.c.l.s8.bf16 %v828_v5 }
 0x21e   : > { %2027 = vmatprep.subr.bf16.mxu1 %v1499_v8  ;;  %v1045_v8 = vunpack.c.l.s8.bf16 %v765_v62 }
 0x220   : > { %1987 = vmatpush2.bf16.msra.mxu0 %v1370_v11  ;;  %v821_v11 = vld [vmem:[%s4294_s14 + $0x2b8] sm:$0xff] }
 0x221   : > { %2028 = vmatpush2.bf16.msra.mxu1 %v1498_v12  ;;  %1988 = vmatprep.subr.bf16.mxu0 %v1363_v13 }
 0x222   : > { %2029 = vmatprep.subr.bf16.mxu1 %v1491_v14 }
 0x224   : > { %1989 = vmatpush2.bf16.msra.mxu0 %v1362_v19 }
 0x225   : > { %2030 = vmatpush2.bf16.msra.mxu1 %v1490_v20  ;;  %1990 = vmatprep.subr.bf16.mxu0 %v1355_v21  ;;  %v1037_v21 = vunpack.c.h.s8.bf16 %v757_v10 }
 0x226   : > { %2031 = vmatprep.subr.bf16.mxu1 %v1483_v22  ;;  %v1165_v22 = vunpack.c.h.s8.bf16 %v821_v11 }
 0x228   : > { %1991 = vmatpush2.bf16.msra.mxu0 %v1354_v28 }
 0x229   : > { %2032 = vmatpush2.bf16.msra.mxu1 %v1482_v17  ;;  %1992 = vmatprep.subr.bf16.mxu0 %v1347_v29 }
 0x22a   : > { %2033 = vmatprep.subr.bf16.mxu1 %v1475_v31  ;;  %v1036_v31 = vunpack.c.h.s8.bf16 %v756_v23 }
 0x22c   : > { %1993 = vmatpush2.bf16.msra.mxu0 %v1346_v34 }
 0x22d   : > { %2034 = vmatpush2.bf16.msra.mxu1 %v1474_v27  ;;  %1994 = vmatprep.subr.bf16.mxu0 %v1339_v36  ;;  %v1029_v27 = vunpack.c.l.s8.bf16 %v757_v10  ;;  %v1157_v36 = vunpack.c.l.s8.bf16 %v821_v11 }
 0x22e   : > { %2035 = vmatprep.subr.bf16.mxu1 %v1467_v37  ;;  %v749_v37 = vld [vmem:[%s4294_s14 + $0x78] sm:$0xff] }
 0x22f   : > { %v1021_v40 = vunpack.c.h.s8.bf16 %v749_v37  ;;  %v1013_v47 = vunpack.c.l.s8.bf16 %v749_v37 }
 0x230   : > { %1995 = vmatpush2.bf16.msra.mxu0 %v1338_v42  ;;  %v1149_v42 = vunpack.c.h.s8.bf16 %v813_v38 }
 0x231   : > { %2036 = vmatpush2.bf16.msra.mxu1 %v1466_v43  ;;  %1996 = vmatprep.subr.bf16.mxu0 %v1331_v44  ;;  %v748_v43 = vld [vmem:[%s4294_s14 + $0x70] sm:$0xff] }
 0x232   : > { %2037 = vmatprep.subr.bf16.mxu1 %v1459_v45  ;;  %v812_v44 = vld [vmem:[%s4294_s14 + $0x270] sm:$0xff]  ;;  %v1020_v45 = vunpack.c.h.s8.bf16 %v748_v43 }
 0x233   : > { %v1148_v46 = vunpack.c.h.s8.bf16 %v812_v44  ;;  %v1140_v55 = vunpack.c.l.s8.bf16 %v812_v44  ;;  %v773_v44 = vld [vmem:[%s4294_s14 + $0x138] sm:$0xff] }
 0x234   : > { %1997 = vmatpush2.bf16.msra.mxu0 %v1330_v48  ;;  %v1141_v48 = vunpack.c.l.s8.bf16 %v813_v38  ;;  %v780_v38 = vld [vmem:[%s4294_s14 + $0x170] sm:$0xff] }
 0x235   : > { %2038 = vmatpush2.bf16.msra.mxu1 %v1458_v49  ;;  %1998 = vmatprep.subr.bf16.mxu0 %v1323_v53  ;;  %v741_v49 = vld [vmem:[%s4294_s14 + $0x38] sm:$0xff] }
 0x236   : > { %2039 = vmatprep.subr.bf16.mxu1 %v1451_v54  ;;  %v805_v53 = vld [vmem:[%s4294_s14 + $0x238] sm:$0xff]  ;;  %v1012_v54 = vunpack.c.l.s8.bf16 %v748_v43  ;;  %v1005_v56 = vunpack.c.h.s8.bf16 %v741_v49  ;;  %v997_v63 = vunpack.c.l.s8.bf16 %v741_v49 }
 0x238   : > { %1999 = vmatpush2.bf16.msra.mxu0 %v1322_v57  ;;  %v1133_v57 = vunpack.c.h.s8.bf16 %v805_v53 }
 0x239   : > { %2040 = vmatpush2.bf16.msra.mxu1 %v1450_v58  ;;  %2000 = vmatprep.subr.bf16.mxu0 %v1315_v41  ;;  %v740_v58 = vld [vmem:[%s4294_s14 + $0x30] sm:$0xff] }
 0x23a   : > { %2041 = vmatprep.subr.bf16.mxu1 %v1443_v61  ;;  %v804_v41 = vld [vmem:[%s4294_s14 + $0x230] sm:$0xff]  ;;  %v1004_v61 = vunpack.c.h.s8.bf16 %v740_v58 }
 0x23b   : > { %v1132_v62 = vunpack.c.h.s8.bf16 %v804_v41  ;;  %v1124_v4 = vunpack.c.l.s8.bf16 %v804_v41  ;;  %v893_v41 = vld [vmem:[%s4294_s14 + $0x4f8] sm:$0xff] }
 0x23c   : > { %2001 = vmatpush2.bf16.msra.mxu0 %v1314_v0  ;;  %v1125_v0 = vunpack.c.l.s8.bf16 %v805_v53  ;;  %v772_v53 = vld [vmem:[%s4294_s14 + $0x130] sm:$0xff] }
 0x23d   : > { %2042 = vmatpush2.bf16.msra.mxu1 %v1442_v1  ;;  %2052 = vmatprep.subr.bf16.mxu0 %v1053_v2  ;;  %v797_v1 = vld [vmem:[%s4294_s14 + $0x1f8] sm:$0xff] }
 0x23e   : > { %2093 = vmatprep.subr.bf16.mxu1 %v1181_v3  ;;  %v861_v2 = vld [vmem:[%s4294_s14 + $0x3f8] sm:$0xff]  ;;  %v996_v3 = vunpack.c.l.s8.bf16 %v740_v58  ;;  %v1117_v5 = vunpack.c.h.s8.bf16 %v797_v1  ;;  %v1109_v11 = vunpack.c.l.s8.bf16 %v797_v1 }
 0x23f   : > { %v1758_v12 = vpop.f32.mrf.mxu0  ;;  %2003 = vmatmul.mubr.bf16.vlgmr.msra.gmra.mxu0 %v4379_v15 }
 0x240   : > { %v1799_v13 = vpop.f32.mrf.mxu1  ;;  %2044 = vmatmul.mubr.bf16.vlgmr.msra.gmra.mxu1 %v4448_v39  ;;  %2053 = vmatpush1.bf16.msra.mxu0 %v1052_v6  ;;  %v1245_v6 = vunpack.c.h.s8.bf16 %v861_v2 }
 0x241   : > { %v4608_v14 = vadd.f32 %v1799_v13, %v1758_v12  ;;  %2094 = vmatpush1.bf16.msra.mxu1 %v1180_v7  ;;  %v1760_v19 = vpop.f32.mrf.mxu0  ;;  %2054 = vmatprep.subr.bf16.mxu0 %v1045_v8  ;;  %v796_v7 = vld [vmem:[%s4294_s14 + $0x1f0] sm:$0xff]  ;;  %v1237_v12 = vunpack.c.l.s8.bf16 %v861_v2  ;;  %v789_v13 = vld [vmem:[%s4294_s14 + $0x1b8] sm:$0xff] }
 0x242   : > { %v1801_v20 = vpop.f32.mrf.mxu1  ;;  %2095 = vmatprep.subr.bf16.mxu1 %v1173_v9  ;;  %2084 = vmatprep.mubr.bf16.mxu0 %v4356_v51  ;;  %v1028_v51 = vunpack.c.l.s8.bf16 %v756_v23  ;;  %v860_v8 = vld [vmem:[%s4294_s14 + $0x3f0] sm:$0xff]  ;;  %v1116_v9 = vunpack.c.h.s8.bf16 %v796_v7 }
 0x243   : > { %v4612_v28 = vadd.f32 %v1801_v20, %v1760_v19  ;;  %2125 = vmatprep.mubr.bf16.mxu1 %v4361_v52  ;;  %v1762_v17 = vpop.f32.mrf.mxu0  ;;  %v1156_v52 = vunpack.c.l.s8.bf16 %v820_v24  ;;  %v1244_v10 = vunpack.c.h.s8.bf16 %v860_v8  ;;  %v1236_v19 = vunpack.c.l.s8.bf16 %v860_v8  ;;  %v852_v23 = vld [vmem:[%s4294_s14 + $0x3b0] sm:$0xff]  ;;  %v885_v8 = vld [vmem:[%s4294_s14 + $0x4b8] sm:$0xff] }
 0x244   : > { %v1803_v29 = vpop.f32.mrf.mxu1  ;;  %2055 = vmatpush1.bf16.msra.mxu0 %v1044_v16  ;;  %v853_v16 = vld [vmem:[%s4294_s14 + $0x3b8] sm:$0xff]  ;;  %v1101_v20 = vunpack.c.h.s8.bf16 %v789_v13  ;;  %v1228_v17 = vunpack.c.h.s8.bf16 %v852_v23  ;;  %v892_v2 = vld [vmem:[%s4294_s14 + $0x4f0] sm:$0xff] }
 0x245   : > { %2096 = vmatpush1.bf16.msra.mxu1 %v1172_v18  ;;  %v1763_v33 = vpop.f32.mrf.mxu0  ;;  %2056 = vmatprep.subr.bf16.mxu0 %v1037_v21  ;;  %v1108_v18 = vunpack.c.l.s8.bf16 %v796_v7  ;;  %v1229_v21 = vunpack.c.h.s8.bf16 %v853_v16  ;;  %v1093_v29 = vunpack.c.l.s8.bf16 %v789_v13  ;;  %v1300_v13 = vunpack.c.l.s8.bf16 %v892_v2 }
 0x246   : > { %v1804_v34 = vpop.f32.mrf.mxu1  ;;  %2097 = vmatprep.subr.bf16.mxu1 %v1165_v22  ;;  %v788_v22 = vld [vmem:[%s4294_s14 + $0x1b0] sm:$0xff]  ;;  %v845_v33 = vld [vmem:[%s4294_s14 + $0x378] sm:$0xff] }
 0x247   : > { %v1100_v24 = vunpack.c.h.s8.bf16 %v788_v22  ;;  %v1092_v34 = vunpack.c.l.s8.bf16 %v788_v22  ;;  %v1213_v37 = vunpack.c.h.s8.bf16 %v845_v33  ;;  %v1205_v43 = vunpack.c.l.s8.bf16 %v845_v33  ;;  %v884_v22 = vld [vmem:[%s4294_s14 + $0x4b0] sm:$0xff] }
 0x248   : > { %2057 = vmatpush1.bf16.msra.mxu0 %v1036_v31  ;;  %v1221_v31 = vunpack.c.l.s8.bf16 %v853_v16 }
 0x249   : > { %2098 = vmatpush1.bf16.msra.mxu1 %v1164_v32  ;;  %2058 = vmatprep.subr.bf16.mxu0 %v1029_v27  ;;  %v781_v32 = vld [vmem:[%s4294_s14 + $0x178] sm:$0xff]  ;;  %v1220_v27 = vunpack.c.l.s8.bf16 %v852_v23  ;;  %v948_v23 = vld [vmem:[%s4294_s14 + $0x6b0] sm:$0xff] }
 0x24a   : > { %2099 = vmatprep.subr.bf16.mxu1 %v1157_v36  ;;  %v1085_v36 = vunpack.c.h.s8.bf16 %v781_v32 }
 0x24c   : > { %2059 = vmatpush1.bf16.msra.mxu0 %v1028_v51  ;;  %v844_v51 = vld [vmem:[%s4294_s14 + $0x370] sm:$0xff] }
 0x24d   : > { %2100 = vmatpush1.bf16.msra.mxu1 %v1156_v52  ;;  %2060 = vmatprep.subr.bf16.mxu0 %v1021_v40  ;;  %v1084_v52 = vunpack.c.h.s8.bf16 %v780_v38  ;;  %v1212_v40 = vunpack.c.h.s8.bf16 %v844_v51 }
 0x24e   : > { %2101 = vmatprep.subr.bf16.mxu1 %v1149_v42  ;;  %v1077_v42 = vunpack.c.l.s8.bf16 %v781_v32  ;;  %v1285_v32 = vunpack.c.l.s8.bf16 %v885_v8 }
 0x250   : > { %2061 = vmatpush1.bf16.msra.mxu0 %v1020_v45  ;;  %v837_v45 = vld [vmem:[%s4294_s14 + $0x338] sm:$0xff] }
 0x251   : > { %2102 = vmatpush1.bf16.msra.mxu1 %v1148_v46  ;;  %2062 = vmatprep.subr.bf16.mxu0 %v1013_v47  ;;  %v1076_v46 = vunpack.c.l.s8.bf16 %v780_v38  ;;  %v1204_v47 = vunpack.c.l.s8.bf16 %v844_v51  ;;  %v1197_v49 = vunpack.c.h.s8.bf16 %v837_v45  ;;  %v1189_v58 = vunpack.c.l.s8.bf16 %v837_v45  ;;  %v876_v38 = vld [vmem:[%s4294_s14 + $0x470] sm:$0xff]  ;;  %v933_v45 = vld [vmem:[%s4294_s14 + $0x638] sm:$0xff] }
 0x252   : > { %2103 = vmatprep.subr.bf16.mxu1 %v1141_v48  ;;  %v1069_v48 = vunpack.c.h.s8.bf16 %v773_v44  ;;  %v940_v51 = vld [vmem:[%s4294_s14 + $0x670] sm:$0xff] }
 0x254   : > { %2063 = vmatpush1.bf16.msra.mxu0 %v1012_v54  ;;  %v836_v54 = vld [vmem:[%s4294_s14 + $0x330] sm:$0xff] }
 0x255   : > { %2104 = vmatpush1.bf16.msra.mxu1 %v1140_v55  ;;  %2064 = vmatprep.subr.bf16.mxu0 %v1005_v56  ;;  %v1068_v55 = vunpack.c.h.s8.bf16 %v772_v53  ;;  %v1196_v56 = vunpack.c.h.s8.bf16 %v836_v54 }
 0x256   : > { %2105 = vmatprep.subr.bf16.mxu1 %v1133_v57  ;;  %v1061_v57 = vunpack.c.l.s8.bf16 %v773_v44  ;;  %v869_v44 = vld [vmem:[%s4294_s14 + $0x438] sm:$0xff] }
 0x258   : > { %2065 = vmatpush1.bf16.msra.mxu0 %v1004_v61  ;;  %v957_v61 = vld [vmem:[%s4294_s14 + $0x6f8] sm:$0xff] }
 0x259   : > { %2106 = vmatpush1.bf16.msra.mxu1 %v1132_v62  ;;  %2066 = vmatprep.subr.bf16.mxu0 %v997_v63  ;;  %v1060_v62 = vunpack.c.l.s8.bf16 %v772_v53  ;;  %v1188_v63 = vunpack.c.l.s8.bf16 %v836_v54  ;;  %v1437_v1 = vunpack.c.h.s8.bf16 %v957_v61  ;;  %v1429_v7 = vunpack.c.l.s8.bf16 %v957_v61  ;;  %v868_v53 = vld [vmem:[%s4294_s14 + $0x430] sm:$0xff]  ;;  %v989_v61 = vld [vmem:[%s4294_s14 + $0x7f8] sm:$0xff] }
 0x25a   : > { %2107 = vmatprep.subr.bf16.mxu1 %v1125_v0  ;;  %v1309_v0 = vunpack.c.h.s8.bf16 %v893_v41  ;;  %v932_v54 = vld [vmem:[%s4294_s14 + $0x630] sm:$0xff] }
 0x25c   : > { %2067 = vmatpush1.bf16.msra.mxu0 %v996_v3  ;;  %v956_v3 = vld [vmem:[%s4294_s14 + $0x6f0] sm:$0xff] }
 0x25d   : > { %2108 = vmatpush1.bf16.msra.mxu1 %v1124_v4  ;;  %2068 = vmatprep.subr.bf16.mxu0 %v1117_v5  ;;  %v1308_v4 = vunpack.c.h.s8.bf16 %v892_v2  ;;  %v1436_v5 = vunpack.c.h.s8.bf16 %v956_v3  ;;  %v1428_v16 = vunpack.c.l.s8.bf16 %v956_v3  ;;  %v924_v2 = vld [vmem:[%s4294_s14 + $0x5f0] sm:$0xff] }
 0x25e   : > { %2109 = vmatprep.subr.bf16.mxu1 %v1245_v6  ;;  %v1301_v6 = vunpack.c.l.s8.bf16 %v893_v41  ;;  %v925_v41 = vld [vmem:[%s4294_s14 + $0x5f8] sm:$0xff]  ;;  %v988_v3 = vld [vmem:[%s4294_s14 + $0x7f0] sm:$0xff] }
 0x260   : > { %2069 = vmatpush2.bf16.msra.mxu0 %v1116_v9  ;;  %v949_v9 = vld [vmem:[%s4294_s14 + $0x6b8] sm:$0xff] }
 0x261   : > { %2110 = vmatpush2.bf16.msra.mxu1 %v1244_v10  ;;  %2070 = vmatprep.subr.bf16.mxu0 %v1109_v11  ;;  %v1413_v33 = vunpack.c.l.s8.bf16 %v949_v9 }
 0x262   : > { %2111 = vmatprep.subr.bf16.mxu1 %v1237_v12 }
 0x264   : > { %2071 = vmatpush2.bf16.msra.mxu0 %v1108_v18 }
 0x265   : > { %2112 = vmatpush2.bf16.msra.mxu1 %v1236_v19  ;;  %2072 = vmatprep.subr.bf16.mxu0 %v1101_v20  ;;  %v1293_v20 = vunpack.c.h.s8.bf16 %v885_v8  ;;  %v917_v8 = vld [vmem:[%s4294_s14 + $0x5b8] sm:$0xff] }
 0x266   : > { %2113 = vmatprep.subr.bf16.mxu1 %v1229_v21  ;;  %v1421_v21 = vunpack.c.h.s8.bf16 %v949_v9  ;;  %v981_v9 = vld [vmem:[%s4294_s14 + $0x7b8] sm:$0xff] }
 0x268   : > { %2073 = vmatpush2.bf16.msra.mxu0 %v1100_v24  ;;  %v1292_v24 = vunpack.c.h.s8.bf16 %v884_v22 }
 0x269   : > { %2114 = vmatpush2.bf16.msra.mxu1 %v1228_v17  ;;  %2074 = vmatprep.subr.bf16.mxu0 %v1093_v29  ;;  %v1420_v17 = vunpack.c.h.s8.bf16 %v948_v23 }
 0x26a   : > { %2115 = vmatprep.subr.bf16.mxu1 %v1221_v31 }
 0x26c   : > { %2075 = vmatpush2.bf16.msra.mxu0 %v1092_v34  ;;  %v877_v34 = vld [vmem:[%s4294_s14 + $0x478] sm:$0xff] }
 0x26d   : > { %2116 = vmatpush2.bf16.msra.mxu1 %v1220_v27  ;;  %2076 = vmatprep.subr.bf16.mxu0 %v1085_v36  ;;  %v941_v27 = vld [vmem:[%s4294_s14 + $0x678] sm:$0xff]  ;;  %v1277_v36 = vunpack.c.h.s8.bf16 %v877_v34 }
 0x26e   : > { %2117 = vmatprep.subr.bf16.mxu1 %v1213_v37  ;;  %v1405_v37 = vunpack.c.h.s8.bf16 %v941_v27 }
 0x270   : > { %2077 = vmatpush2.bf16.msra.mxu0 %v1084_v52  ;;  %v1276_v52 = vunpack.c.h.s8.bf16 %v876_v38 }
 0x271   : > { %2118 = vmatpush2.bf16.msra.mxu1 %v1212_v40  ;;  %2078 = vmatprep.subr.bf16.mxu0 %v1077_v42  ;;  %v1404_v40 = vunpack.c.h.s8.bf16 %v940_v51  ;;  %v1269_v42 = vunpack.c.l.s8.bf16 %v877_v34  ;;  %v972_v34 = vld [vmem:[%s4294_s14 + $0x770] sm:$0xff] }
 0x272   : > { %2119 = vmatprep.subr.bf16.mxu1 %v1205_v43  ;;  %v1397_v43 = vunpack.c.l.s8.bf16 %v941_v27  ;;  %v4680_v27 = vsub.s32 1, %v4331_v26 }
 0x274   : > { %2079 = vmatpush2.bf16.msra.mxu0 %v1076_v46  ;;  %v1268_v46 = vunpack.c.l.s8.bf16 %v876_v38  ;;  %v4689_v38 = vld [vmem:[%s581_s2] sm:$0xff] }
 0x275   : > { %2120 = vmatpush2.bf16.msra.mxu1 %v1204_v47  ;;  %2080 = vmatprep.subr.bf16.mxu0 %v1069_v48  ;;  %v1396_v47 = vunpack.c.l.s8.bf16 %v940_v51  ;;  %v1261_v48 = vunpack.c.h.s8.bf16 %v869_v44 }
 0x276   : > { %2121 = vmatprep.subr.bf16.mxu1 %v1197_v49  ;;  %v1389_v49 = vunpack.c.h.s8.bf16 %v933_v45 }
 0x278   : > { %2081 = vmatpush2.bf16.msra.mxu0 %v1068_v55  ;;  %v1260_v55 = vunpack.c.h.s8.bf16 %v868_v53 }
 0x279   : > { %2122 = vmatpush2.bf16.msra.mxu1 %v1196_v56  ;;  %2082 = vmatprep.subr.bf16.mxu0 %v1061_v57  ;;  %v1388_v56 = vunpack.c.h.s8.bf16 %v932_v54  ;;  %v1253_v57 = vunpack.c.l.s8.bf16 %v869_v44 }
 0x27a   : > { %2123 = vmatprep.subr.bf16.mxu1 %v1189_v58  ;;  %v1381_v58 = vunpack.c.l.s8.bf16 %v933_v45  ;;  %v1460_v45 = vunpack.c.l.s8.bf16 %v972_v34 }
 0x27c   : > { %2083 = vmatpush2.bf16.msra.mxu0 %v1060_v62  ;;  %v1252_v62 = vunpack.c.l.s8.bf16 %v868_v53  ;;  %v964_v53 = vld [vmem:[%s4294_s14 + $0x730] sm:$0xff] }
 0x27d   : > { %2124 = vmatpush2.bf16.msra.mxu1 %v1188_v63  ;;  %2134 = vmatprep.subr.bf16.mxu0 %v1309_v0  ;;  %v1380_v63 = vunpack.c.l.s8.bf16 %v932_v54  ;;  %v1373_v0 = vunpack.c.h.s8.bf16 %v925_v41 }
 0x27e   : > { %2175 = vmatprep.subr.bf16.mxu1 %v1437_v1  ;;  %v1501_v1 = vunpack.c.h.s8.bf16 %v989_v61 }
 0x27f   : > { %v1840_v10 = vpop.f32.mrf.mxu0  ;;  %2085 = vmatmul.mubr.bf16.vlgmr.msra.gmra.mxu0 %v4395_v50 }
 0x280   : > { %v1881_v11 = vpop.f32.mrf.mxu1  ;;  %2126 = vmatmul.mubr.bf16.vlgmr.msra.gmra.mxu1 %v4404_v60  ;;  %v1841_v12 = vadd.f32 %v1840_v10, %v4608_v14  ;;  %2135 = vmatpush1.bf16.msra.mxu0 %v1308_v4  ;;  %v1372_v4 = vunpack.c.h.s8.bf16 %v924_v2  ;;  %v1364_v10 = vunpack.c.l.s8.bf16 %v924_v2  ;;  %v1444_v2 = vunpack.c.l.s8.bf16 %v964_v53 }
 0x281   : > { %2176 = vmatpush1.bf16.msra.mxu1 %v1436_v5  ;;  %v4649_v18 = vpop.f32.mrf.mxu0  ;;  %2136 = vmatprep.subr.bf16.mxu0 %v1301_v6  ;;  %v1500_v5 = vunpack.c.h.s8.bf16 %v988_v3  ;;  %v1365_v6 = vunpack.c.l.s8.bf16 %v925_v41 }
 0x282   : > { %v4651_v19 = vpop.f32.mrf.mxu1  ;;  %2177 = vmatprep.subr.bf16.mxu1 %v1429_v7  ;;  %v4655_v50 = vadd.f32 %v1881_v11, %v1841_v12  ;;  %2166 = vmatprep.mubr.bf16.mxu0 %v4400_v59  ;;  %v1284_v59 = vunpack.c.l.s8.bf16 %v884_v22  ;;  %v1493_v7 = vunpack.c.l.s8.bf16 %v989_v61  ;;  %v1492_v11 = vunpack.c.l.s8.bf16 %v988_v3 }
 0x283   : > { %2207 = vmatprep.mubr.bf16.mxu1 %v4410_v35  ;;  %v1844_v60 = vpop.f32.mrf.mxu0  ;;  %v1412_v35 = vunpack.c.l.s8.bf16 %v948_v23  ;;  %v1357_v12 = vunpack.c.h.s8.bf16 %v917_v8  ;;  %v1349_v23 = vunpack.c.l.s8.bf16 %v917_v8 }
 0x284   : > { %v1885_v14 = vpop.f32.mrf.mxu1  ;;  %2137 = vmatpush1.bf16.msra.mxu0 %v1300_v13  ;;  %v1485_v13 = vunpack.c.h.s8.bf16 %v981_v9  ;;  %v1477_v60 = vunpack.c.l.s8.bf16 %v981_v9 }
 0x285   : > { %2178 = vmatpush1.bf16.msra.mxu1 %v1428_v16  ;;  %v1845_v29 = vpop.f32.mrf.mxu0  ;;  %2138 = vmatprep.subr.bf16.mxu0 %v1293_v20  ;;  %v916_v16 = vld [vmem:[%s4294_s14 + $0x5b0] sm:$0xff]  ;;  %v909_v14 = vld [vmem:[%s4294_s14 + $0x578] sm:$0xff] }
 0x286   : > { %v1886_v31 = vpop.f32.mrf.mxu1  ;;  %2179 = vmatprep.subr.bf16.mxu1 %v1421_v21  ;;  %v980_v20 = vld [vmem:[%s4294_s14 + $0x7b0] sm:$0xff]  ;;  %v1356_v21 = vunpack.c.h.s8.bf16 %v916_v16  ;;  %v1333_v51 = vunpack.c.l.s8.bf16 %v909_v14 }
 0x287   : > { %v1484_v22 = vunpack.c.h.s8.bf16 %v980_v20  ;;  %v1476_v29 = vunpack.c.l.s8.bf16 %v980_v20  ;;  %v1341_v31 = vunpack.c.h.s8.bf16 %v909_v14 }
 0x288   : > { %2139 = vmatpush1.bf16.msra.mxu0 %v1292_v24  ;;  %v973_v24 = vld [vmem:[%s4294_s14 + $0x778] sm:$0xff] }
 0x289   : > { %2180 = vmatpush1.bf16.msra.mxu1 %v1420_v17  ;;  %2140 = vmatprep.subr.bf16.mxu0 %v1285_v32  ;;  %v1348_v17 = vunpack.c.l.s8.bf16 %v916_v16  ;;  %v1469_v32 = vunpack.c.h.s8.bf16 %v973_v24  ;;  %v2428_v16 = vld [vmem:[%s4310_s16 + $0x48] sm:$0xff] }
 0x28a   : > { %2181 = vmatprep.subr.bf16.mxu1 %v1413_v33  ;;  %v908_v33 = vld [vmem:[%s4294_s14 + $0x570] sm:$0xff] }
 0x28b   : > { %v1332_v44 = vunpack.c.l.s8.bf16 %v908_v33 }
 0x28c   : > { %2141 = vmatpush1.bf16.msra.mxu0 %v1284_v59  ;;  %v1843_v59 = vadd.f32 %v4649_v18, %v4612_v28  ;;  %v2225_v28 = vrot.slane %v4689_v38, %v4680_v27  ;;  %v901_v18 = vld [vmem:[%s4294_s14 + $0x538] sm:$0xff] }
 0x28d   : > { %2182 = vmatpush1.bf16.msra.mxu1 %v1412_v35  ;;  %2142 = vmatprep.subr.bf16.mxu0 %v1277_v36  ;;  %v4685_v35 = vsub.s32 3, %v4331_v26  ;;  %v1340_v36 = vunpack.c.h.s8.bf16 %v908_v33  ;;  %v1317_v41 = vunpack.c.l.s8.bf16 %v901_v18 }
 0x28e   : > { %2183 = vmatprep.subr.bf16.mxu1 %v1405_v37  ;;  %v1468_v37 = vunpack.c.h.s8.bf16 %v972_v34 }
 0x290   : > { %2143 = vmatpush1.bf16.msra.mxu0 %v1276_v52  ;;  %v1461_v52 = vunpack.c.l.s8.bf16 %v973_v24 }
 0x291   : > { %2184 = vmatpush1.bf16.msra.mxu1 %v1404_v40  ;;  %2144 = vmatprep.subr.bf16.mxu0 %v1269_v42  ;;  %v965_v40 = vld [vmem:[%s4294_s14 + $0x738] sm:$0xff]  ;;  %v1884_v42 = vadd.f32 %v4651_v19, %v1843_v59  ;;  %v2259_v19 = vmul.f32 %v2225_v28, %v4574_v30  ;;  %v2464_v30 = vld [vmem:[%s4310_s16 + $0x168] sm:$0xff] }
 0x292   : > { %2185 = vmatprep.subr.bf16.mxu1 %v1397_v43  ;;  %v2233_v43 = vrot.slane %v4689_v38, %v4685_v35  ;;  %v1445_v61 = vunpack.c.l.s8.bf16 %v965_v40 }
 0x294   : > { %2145 = vmatpush1.bf16.msra.mxu0 %v1268_v46  ;;  %v4700_v46 = vld [vmem:[%s590_s12] sm:$0xff] }
 0x295   : > { %2186 = vmatpush1.bf16.msra.mxu1 %v1396_v47  ;;  %2146 = vmatprep.subr.bf16.mxu0 %v1261_v48  ;;  %v1325_v47 = vunpack.c.h.s8.bf16 %v901_v18  ;;  %v1453_v48 = vunpack.c.h.s8.bf16 %v965_v40  ;;  %v2275_v54 = vrot.slane %v4700_v46, %v4680_v27  ;;  %v2424_v18 = vld [vmem:[%s4310_s16 + $0x28] sm:$0xff] }
 0x296   : > { %2187 = vmatprep.subr.bf16.mxu1 %v1389_v49  ;;  %v900_v49 = vld [vmem:[%s4294_s14 + $0x530] sm:$0xff]  ;;  %v2456_v40 = vld [vmem:[%s4310_s16 + $0x128] sm:$0xff]  ;;  %s731_s14 = scalar_lea.vmem %s5123_s13, %s3555_s26 }
 0x298   : > { %2147 = vmatpush1.bf16.msra.mxu0 %v1260_v55  ;;  %v2261_v55 = vmul.f32 %v2233_v43, %v1884_v42 }
 0x299   : > { %2188 = vmatpush1.bf16.msra.mxu1 %v1388_v56  ;;  %2148 = vmatprep.subr.bf16.mxu0 %v1253_v57  ;;  %v2283_v56 = vrot.slane %v4700_v46, %v4685_v35  ;;  %v1324_v57 = vunpack.c.h.s8.bf16 %v900_v49 }
 0x29a   : > { %2189 = vmatprep.subr.bf16.mxu1 %v1381_v58  ;;  %v1452_v58 = vunpack.c.h.s8.bf16 %v964_v53 }
 0x29c   : > { %2149 = vmatpush1.bf16.msra.mxu0 %v1252_v62  ;;  %v2309_v62 = vadd.f32 %v2275_v54, %v2259_v19  ;;  %v2556_v19 = vunpack.c.l.s8.bf16 %v2424_v18  ;;  %v2620_v54 = vunpack.c.l.s8.bf16 %v2456_v40 }
 0x29d   : > { %2190 = vmatpush1.bf16.msra.mxu1 %v1380_v63  ;;  %2150 = vmatprep.subr.bf16.mxu0 %v1373_v0  ;;  %v2432_v63 = vld [vmem:[%s4310_s16 + $0x68] sm:$0xff]  ;;  %v2311_v0 = vadd.f32 %v2283_v56, %v2261_v55 }
 0x29e   : > { %2191 = vmatprep.subr.bf16.mxu1 %v1501_v1  ;;  %v1316_v1 = vunpack.c.l.s8.bf16 %v900_v49  ;;  %v2576_v3 = vunpack.c.h.s8.bf16 %v2432_v63  ;;  %v2420_v55 = vld [vmem:[%s4310_s16 + $0x8] sm:$0xff] }
 0x29f   : > { %v2319_v8 = vmax.f32 %v2311_v0, 0.0  ;;  %v2452_v56 = vld [vmem:[%s4310_s16 + $0x108] sm:$0xff] }
 0x2a0   : > { %2151 = vmatpush2.bf16.msra.mxu0 %v1372_v4  ;;  %v2640_v4 = vunpack.c.h.s8.bf16 %v2464_v30 }
 0x2a1   : > { %2192 = vmatpush2.bf16.msra.mxu1 %v1500_v5  ;;  %2152 = vmatprep.subr.bf16.mxu0 %v1365_v6  ;;  %v2431_v5 = vld [vmem:[%s4310_s16 + $0x60] sm:$0xff]  ;;  %v2317_v6 = vmax.f32 %v2309_v62, 0.0  ;;  %v2616_v62 = vunpack.c.h.s8.bf16 %v2452_v56 }
 0x2a2   : > { %2193 = vmatprep.subr.bf16.mxu1 %v1493_v7  ;;  %v2463_v7 = vld [vmem:[%s4310_s16 + $0x160] sm:$0xff]  ;;  %v2575_v9 = vunpack.c.h.s8.bf16 %v2431_v5  ;;  %v2571_v14 = vunpack.c.l.s8.bf16 %v2431_v5 }
 0x2a4   : > { %2153 = vmatpush2.bf16.msra.mxu0 %v1364_v10  ;;  %v2639_v10 = vunpack.c.h.s8.bf16 %v2463_v7 }
 0x2a5   : > { %2194 = vmatpush2.bf16.msra.mxu1 %v1492_v11  ;;  %2154 = vmatprep.subr.bf16.mxu0 %v1357_v12  ;;  %v4713_v11 = vpack.c.bf16 %v2317_v6, %v2317_v6  ;;  %v2572_v12 = vunpack.c.l.s8.bf16 %v2432_v63  ;;  %v2451_v63 = vld [vmem:[%s4310_s16 + $0x100] sm:$0xff] }
 0x2a6   : > { %2195 = vmatprep.subr.bf16.mxu1 %v1485_v13  ;;  %v2636_v13 = vunpack.c.l.s8.bf16 %v2464_v30  ;;  %v2615_v0 = vunpack.c.h.s8.bf16 %v2451_v63  ;;  %v2611_v6 = vunpack.c.l.s8.bf16 %v2451_v63  ;;  %v2435_v63 = vld [vmem:[%s4310_s16 + $0x80] sm:$0xff] }
 0x2a8   : > { %2155 = vmatpush2.bf16.msra.mxu0 %v1356_v21 }
 0x2a9   : > { %2196 = vmatpush2.bf16.msra.mxu1 %v1484_v22  ;;  %2156 = vmatprep.subr.bf16.mxu0 %v1349_v23  ;;  %v4718_v22 = vpack.c.bf16 %v2319_v8, %v2319_v8  ;;  %v2460_v23 = vld [vmem:[%s4310_s16 + $0x148] sm:$0xff]  ;;  %v2447_v8 = vld [vmem:[%s4310_s16 + $0xe0] sm:$0xff] }
 0x2aa   : > { %2197 = vmatprep.subr.bf16.mxu1 %v1477_v60  ;;  %v2628_v28 = vunpack.c.l.s8.bf16 %v2460_v23 }
 0x2ac   : > { %2157 = vmatpush2.bf16.msra.mxu0 %v1348_v17 }
 0x2ad   : > { %2198 = vmatpush2.bf16.msra.mxu1 %v1476_v29  ;;  %2158 = vmatprep.subr.bf16.mxu0 %v1341_v31  ;;  %v2568_v29 = vunpack.c.h.s8.bf16 %v2428_v16  ;;  %v2632_v31 = vunpack.c.h.s8.bf16 %v2460_v23  ;;  %v2476_v23 = vld [vmem:[%s4310_s16 + $0x1c8] sm:$0xff] }
 0x2ae   : > { %2199 = vmatprep.subr.bf16.mxu1 %v1469_v32  ;;  %v2459_v32 = vld [vmem:[%s4310_s16 + $0x140] sm:$0xff] }
 0x2af   : > { %v2627_v43 = vunpack.c.l.s8.bf16 %v2459_v32 }
 0x2b0   : > { %2159 = vmatpush2.bf16.msra.mxu0 %v1340_v36 }
 0x2b1   : > { %2200 = vmatpush2.bf16.msra.mxu1 %v1468_v37  ;;  %2160 = vmatprep.subr.bf16.mxu0 %v1333_v51  ;;  %v2631_v51 = vunpack.c.h.s8.bf16 %v2459_v32  ;;  %v2475_v32 = vld [vmem:[%s4310_s16 + $0x1c0] sm:$0xff] }
 0x2b2   : > { %2201 = vmatprep.subr.bf16.mxu1 %v1461_v52  ;;  %v2564_v52 = vunpack.c.l.s8.bf16 %v2428_v16 }
 0x2b4   : > { %2161 = vmatpush2.bf16.msra.mxu0 %v1332_v44  ;;  %v2560_v44 = vunpack.c.h.s8.bf16 %v2424_v18  ;;  %v2659_v18 = vunpack.c.l.s8.bf16 %v2475_v32 }
 0x2b5   : > { %2202 = vmatpush2.bf16.msra.mxu1 %v1460_v45  ;;  %2162 = vmatprep.subr.bf16.mxu0 %v1325_v47  ;;  %v2423_v45 = vld [vmem:[%s4310_s16 + $0x20] sm:$0xff]  ;;  %v2624_v47 = vunpack.c.h.s8.bf16 %v2456_v40 }
 0x2b6   : > { %2203 = vmatprep.subr.bf16.mxu1 %v1453_v48  ;;  %v2455_v48 = vld [vmem:[%s4310_s16 + $0x120] sm:$0xff]  ;;  %v2559_v49 = vunpack.c.h.s8.bf16 %v2423_v45 }
 0x2b7   : > { %v2623_v53 = vunpack.c.h.s8.bf16 %v2455_v48 }
 0x2b8   : > { %2163 = vmatpush2.bf16.msra.mxu0 %v1324_v57  ;;  %v2555_v57 = vunpack.c.l.s8.bf16 %v2423_v45  ;;  %v2471_v45 = vld [vmem:[%s4310_s16 + $0x1a0] sm:$0xff] }
 0x2b9   : > { %2204 = vmatpush2.bf16.msra.mxu1 %v1452_v58  ;;  %2164 = vmatprep.subr.bf16.mxu0 %v1317_v41  ;;  %v2619_v58 = vunpack.c.l.s8.bf16 %v2455_v48  ;;  %v2552_v41 = vunpack.c.h.s8.bf16 %v2420_v55 }
 0x2ba   : > { %2205 = vmatprep.subr.bf16.mxu1 %v1445_v61  ;;  %v2419_v61 = vld [vmem:[%s4310_s16] sm:$0xff] }
 0x2bb   : > { %v2551_v30 = vunpack.c.h.s8.bf16 %v2419_v61  ;;  %v2547_v5 = vunpack.c.l.s8.bf16 %v2419_v61  ;;  %v2651_v61 = vunpack.c.l.s8.bf16 %v2471_v45 }
 0x2bc   : > { %2165 = vmatpush2.bf16.msra.mxu0 %v1316_v1  ;;  %v2548_v1 = vunpack.c.l.s8.bf16 %v2420_v55  ;;  %v2436_v55 = vld [vmem:[%s4310_s16 + $0x88] sm:$0xff] }
 0x2bd   : > { %2206 = vmatpush2.bf16.msra.mxu1 %v1444_v2  ;;  %2811 = vmatprep.subr.bf16.mxu0 %v2576_v3  ;;  %v2612_v2 = vunpack.c.l.s8.bf16 %v2452_v56  ;;  %v2448_v3 = vld [vmem:[%s4310_s16 + $0xe8] sm:$0xff] }
 0x2be   : > { %2852 = vmatprep.subr.bf16.mxu1 %v2640_v4  ;;  %v2480_v4 = vld [vmem:[%s4310_s16 + $0x1e8] sm:$0xff]  ;;  %v2604_v16 = vunpack.c.l.s8.bf16 %v2448_v3 }
 0x2bf   : > { %v1922_v20 = vpop.f32.mrf.mxu0  ;;  %2167 = vmatmul.mubr.bf16.vlgmr.msra.gmra.mxu0 %v4379_v15  ;;  %v2635_v15 = vunpack.c.l.s8.bf16 %v2463_v7  ;;  %v2608_v7 = vunpack.c.h.s8.bf16 %v2448_v3  ;;  %v2468_v56 = vld [vmem:[%s4310_s16 + $0x188] sm:$0xff] }
 0x2c0   : > { %v1963_v21 = vpop.f32.mrf.mxu1  ;;  %2208 = vmatmul.mubr.bf16.vlgmr.msra.gmra.mxu1 %v4448_v39  ;;  %2812 = vmatpush1.bf16.msra.mxu0 %v2575_v9  ;;  %v2427_v39 = vld [vmem:[%s4310_s16 + $0x40] sm:$0xff]  ;;  %v2672_v9 = vunpack.c.h.s8.bf16 %v2480_v4 }
 0x2c1   : > { %v4721_v60 = vadd.f32 %v1963_v21, %v1922_v20  ;;  %2843 = vmatprep.mubr.bf16.mxu0 %v4713_v11  ;;  %2853 = vmatpush1.bf16.msra.mxu1 %v2639_v10  ;;  %v4725_v24 = vpop.f32.mrf.mxu0  ;;  %v2567_v59 = vunpack.c.h.s8.bf16 %v2427_v39  ;;  %v2563_v42 = vunpack.c.l.s8.bf16 %v2427_v39  ;;  %v2479_v10 = vld [vmem:[%s4310_s16 + $0x1e0] sm:$0xff]  ;;  %v2668_v20 = vunpack.c.l.s8.bf16 %v2480_v4  ;;  %v2444_v21 = vld [vmem:[%s4310_s16 + $0xc8] sm:$0xff] }
 0x2c2   : > { %2884 = vmatprep.mubr.bf16.mxu1 %v4718_v22  ;;  %v4727_v17 = vpop.f32.mrf.mxu1  ;;  %2813 = vmatprep.subr.bf16.mxu0 %v2572_v12  ;;  %v2607_v12 = vunpack.c.h.s8.bf16 %v2447_v8  ;;  %v2443_v39 = vld [vmem:[%s4310_s16 + $0xc0] sm:$0xff] }
 0x2c3   : > { %2854 = vmatprep.subr.bf16.mxu1 %v2636_v13  ;;  %v1926_v33 = vpop.f32.mrf.mxu0  ;;  %v2671_v13 = vunpack.c.h.s8.bf16 %v2479_v10 }
 0x2c4   : > { %v1967_v34 = vpop.f32.mrf.mxu1  ;;  %2814 = vmatpush1.bf16.msra.mxu0 %v2571_v14  ;;  %v2603_v14 = vunpack.c.l.s8.bf16 %v2447_v8  ;;  %v2599_v33 = vunpack.c.h.s8.bf16 %v2443_v39  ;;  %v2528_v8 = vld [vmem:[%s4310_s16 + $0x368] sm:$0xff] }
 0x2c5   : > { %2855 = vmatpush1.bf16.msra.mxu1 %v2635_v15  ;;  %v1927_v36 = vpop.f32.mrf.mxu0  ;;  %2815 = vmatprep.subr.bf16.mxu0 %v2568_v29  ;;  %v2667_v15 = vunpack.c.l.s8.bf16 %v2479_v10  ;;  %v2600_v29 = vunpack.c.h.s8.bf16 %v2444_v21  ;;  %v2663_v34 = vunpack.c.h.s8.bf16 %v2475_v32  ;;  %v4780_v32 = vsub.s32 5, %v4331_v26 }
 0x2c6   : > { %v1968_v37 = vpop.f32.mrf.mxu1  ;;  %2856 = vmatprep.subr.bf16.mxu1 %v2632_v31  ;;  %v2664_v31 = vunpack.c.h.s8.bf16 %v2476_v23  ;;  %v2660_v36 = vunpack.c.l.s8.bf16 %v2476_v23  ;;  %v2527_v23 = vld [vmem:[%s4310_s16 + $0x360] sm:$0xff] }
 0x2c7   : > { %v2440_v37 = vld [vmem:[%s4310_s16 + $0xa8] sm:$0xff] }
 0x2c8   : > { %2816 = vmatpush1.bf16.msra.mxu0 %v2567_v59  ;;  %v2596_v59 = vunpack.c.l.s8.bf16 %v2444_v21  ;;  %v2592_v40 = vunpack.c.h.s8.bf16 %v2440_v37  ;;  %v2768_v21 = vunpack.c.h.s8.bf16 %v2528_v8 }
 0x2c9   : > { %2857 = vmatpush1.bf16.msra.mxu1 %v2631_v51  ;;  %2817 = vmatprep.subr.bf16.mxu0 %v2564_v52  ;;  %v2472_v51 = vld [vmem:[%s4310_s16 + $0x1a8] sm:$0xff]  ;;  %v2595_v52 = vunpack.c.l.s8.bf16 %v2443_v39  ;;  %v2767_v39 = vunpack.c.h.s8.bf16 %v2527_v23 }
 0x2ca   : > { %2858 = vmatprep.subr.bf16.mxu1 %v2628_v28  ;;  %v4750_v28 = vsub.s32 0, %v4331_v26 }
 0x2cc   : > { %2818 = vmatpush1.bf16.msra.mxu0 %v2563_v42  ;;  %v2439_v42 = vld [vmem:[%s4310_s16 + $0xa0] sm:$0xff]  ;;  %v2221_v48 = vrot.slane %v4689_v38, %v4750_v28 }
 0x2cd   : > { %2859 = vmatpush1.bf16.msra.mxu1 %v2627_v43  ;;  %2819 = vmatprep.subr.bf16.mxu0 %v2560_v44  ;;  %v4754_v43 = vsub.s32 2, %v4331_v26  ;;  %v2656_v44 = vunpack.c.h.s8.bf16 %v2472_v51 }
 0x2ce   : > { %2860 = vmatprep.subr.bf16.mxu1 %v2624_v47  ;;  %v2591_v47 = vunpack.c.h.s8.bf16 %v2439_v42 }
 0x2d0   : > { %2820 = vmatpush1.bf16.msra.mxu0 %v2559_v49  ;;  %v2655_v49 = vunpack.c.h.s8.bf16 %v2471_v45  ;;  %v2763_v45 = vunpack.c.l.s8.bf16 %v2527_v23 }
 0x2d1   : > { %2861 = vmatpush1.bf16.msra.mxu1 %v2623_v53  ;;  %2821 = vmatprep.subr.bf16.mxu0 %v2556_v19  ;;  %v2588_v53 = vunpack.c.l.s8.bf16 %v2440_v37  ;;  %v2229_v19 = vrot.slane %v4689_v38, %v4754_v43  ;;  %v2524_v37 = vld [vmem:[%s4310_s16 + $0x348] sm:$0xff] }
 0x2d2   : > { %2862 = vmatprep.subr.bf16.mxu1 %v2620_v54  ;;  %v2652_v54 = vunpack.c.l.s8.bf16 %v2472_v51  ;;  %v1966_v51 = vadd.f32 %v4727_v17, %v4725_v24 }
 0x2d4   : > { %2822 = vmatpush1.bf16.msra.mxu0 %v2555_v57  ;;  %v2587_v57 = vunpack.c.l.s8.bf16 %v2439_v42 }
 0x2d5   : > { %2863 = vmatpush1.bf16.msra.mxu1 %v2619_v58  ;;  %2823 = vmatprep.subr.bf16.mxu0 %v2552_v41  ;;  %v2258_v58 = vmul.f32 %v2221_v48, %v4569_v25  ;;  %v2271_v41 = vrot.slane %v4700_v46, %v4750_v28  ;;  %v2583_v25 = vunpack.c.h.s8.bf16 %v2435_v63  ;;  %v2241_v48 = vrot.slane %v4689_v38, %v4780_v32 }
 0x2d6   : > { %2864 = vmatprep.subr.bf16.mxu1 %v2616_v62  ;;  %v2584_v62 = vunpack.c.h.s8.bf16 %v2436_v55 }
 0x2d7   : > { %v2308_v3 = vadd.f32 %v2271_v41, %v2258_v58 }
 0x2d8   : > { %2824 = vmatpush1.bf16.msra.mxu0 %v2551_v30  ;;  %v2260_v30 = vmul.f32 %v2229_v19, %v4655_v50  ;;  %v2496_v50 = vld [vmem:[%s4310_s16 + $0x268] sm:$0xff] }
 0x2d9   : > { %2865 = vmatpush1.bf16.msra.mxu1 %v2615_v0  ;;  %2825 = vmatprep.subr.bf16.mxu0 %v2548_v1  ;;  %v2279_v0 = vrot.slane %v4700_v46, %v4754_v43  ;;  %v2648_v1 = vunpack.c.h.s8.bf16 %v2468_v56  ;;  %v2316_v10 = vmax.f32 %v2308_v3, 0.0 }
 0x2da   : > { %2866 = vmatprep.subr.bf16.mxu1 %v2612_v2  ;;  %v2467_v2 = vld [vmem:[%s4310_s16 + $0x180] sm:$0xff] }
 0x2db   : > { %v2647_v4 = vunpack.c.h.s8.bf16 %v2467_v2 }
 0x2dc   : > { %2826 = vmatpush1.bf16.msra.mxu0 %v2547_v5  ;;  %v2580_v5 = vunpack.c.l.s8.bf16 %v2436_v55 }
 0x2dd   : > { %2867 = vmatpush1.bf16.msra.mxu1 %v2611_v6  ;;  %2827 = vmatprep.subr.bf16.mxu0 %v2608_v7  ;;  %v2310_v6 = vadd.f32 %v2279_v0, %v2260_v30  ;;  %v2644_v7 = vunpack.c.l.s8.bf16 %v2468_v56  ;;  %v2520_v30 = vld [vmem:[%s4310_s16 + $0x328] sm:$0xff] }
 0x2de   : > { %2868 = vmatprep.subr.bf16.mxu1 %v2672_v9  ;;  %v2579_v9 = vunpack.c.l.s8.bf16 %v2435_v63  ;;  %v2756_v63 = vunpack.c.l.s8.bf16 %v2524_v37 }
 0x2e0   : > { %2828 = vmatpush2.bf16.msra.mxu0 %v2607_v12  ;;  %v2643_v12 = vunpack.c.l.s8.bf16 %v2467_v2 }
 0x2e1   : > { %2869 = vmatpush2.bf16.msra.mxu1 %v2671_v13  ;;  %2829 = vmatprep.subr.bf16.mxu0 %v2604_v16  ;;  %v2704_v13 = vunpack.c.h.s8.bf16 %v2496_v50  ;;  %v2495_v16 = vld [vmem:[%s4310_s16 + $0x260] sm:$0xff] }
 0x2e2   : > { %2870 = vmatprep.subr.bf16.mxu1 %v2668_v20  ;;  %v2318_v20 = vmax.f32 %v2310_v6, 0.0  ;;  %v2519_v6 = vld [vmem:[%s4310_s16 + $0x320] sm:$0xff] }
 0x2e3   : > { %v2747_v23 = vunpack.c.l.s8.bf16 %v2519_v6 }
 0x2e4   : > { %2830 = vmatpush2.bf16.msra.mxu0 %v2603_v14  ;;  %v2703_v14 = vunpack.c.h.s8.bf16 %v2495_v16 }
 0x2e5   : > { %2871 = vmatpush2.bf16.msra.mxu1 %v2667_v15  ;;  %2831 = vmatprep.subr.bf16.mxu0 %v2600_v29  ;;  %v4775_v15 = vpack.c.bf16 %v2316_v10, %v2316_v10  ;;  %v2700_v29 = vunpack.c.l.s8.bf16 %v2496_v50  ;;  %v2484_v10 = vld [vmem:[%s4310_s16 + $0x208] sm:$0xff] }
 0x2e6   : > { %2872 = vmatprep.subr.bf16.mxu1 %v2664_v31  ;;  %v4777_v31 = vpack.c.bf16 %v2318_v20, %v2318_v20  ;;  %v2680_v20 = vunpack.c.h.s8.bf16 %v2484_v10 }
 0x2e8   : > { %2832 = vmatpush2.bf16.msra.mxu0 %v2599_v33  ;;  %v2492_v33 = vld [vmem:[%s4310_s16 + $0x248] sm:$0xff] }
 0x2e9   : > { %2873 = vmatpush2.bf16.msra.mxu1 %v2663_v34  ;;  %2833 = vmatprep.subr.bf16.mxu0 %v2596_v59  ;;  %v2764_v34 = vunpack.c.l.s8.bf16 %v2528_v8  ;;  %v2696_v42 = vunpack.c.h.s8.bf16 %v2492_v33  ;;  %v2692_v58 = vunpack.c.l.s8.bf16 %v2492_v33  ;;  %v2676_v33 = vunpack.c.l.s8.bf16 %v2484_v10 }
 0x2ea   : > { %2874 = vmatprep.subr.bf16.mxu1 %v2660_v36 }
 0x2ec   : > { %2834 = vmatpush2.bf16.msra.mxu0 %v2595_v52  ;;  %v2699_v52 = vunpack.c.l.s8.bf16 %v2495_v16 }
 0x2ed   : > { %2875 = vmatpush2.bf16.msra.mxu1 %v2659_v18  ;;  %2835 = vmatprep.subr.bf16.mxu0 %v2592_v40 }
 0x2ee   : > { %2876 = vmatprep.subr.bf16.mxu1 %v2656_v44  ;;  %v2491_v44 = vld [vmem:[%s4310_s16 + $0x240] sm:$0xff] }
 0x2ef   : > { %v2695_v55 = vunpack.c.h.s8.bf16 %v2491_v44 }
 0x2f0   : > { %2836 = vmatpush2.bf16.msra.mxu0 %v2591_v47 }
 0x2f1   : > { %2877 = vmatpush2.bf16.msra.mxu1 %v2655_v49  ;;  %2837 = vmatprep.subr.bf16.mxu0 %v2588_v53  ;;  %v2760_v49 = vunpack.c.h.s8.bf16 %v2524_v37  ;;  %v2523_v53 = vld [vmem:[%s4310_s16 + $0x340] sm:$0xff]  ;;  %v2512_v37 = vld [vmem:[%s4310_s16 + $0x2e8] sm:$0xff] }
 0x2f2   : > { %2878 = vmatprep.subr.bf16.mxu1 %v2652_v54  ;;  %v2291_v54 = vrot.slane %v4700_v46, %v4780_v32  ;;  %v2759_v41 = vunpack.c.h.s8.bf16 %v2523_v53  ;;  %v2755_v3 = vunpack.c.l.s8.bf16 %v2523_v53 }
 0x2f4   : > { %2838 = vmatpush2.bf16.msra.mxu0 %v2587_v57 }
 0x2f5   : > { %2879 = vmatpush2.bf16.msra.mxu1 %v2651_v61  ;;  %2839 = vmatprep.subr.bf16.mxu0 %v2584_v62  ;;  %v2488_v62 = vld [vmem:[%s4310_s16 + $0x228] sm:$0xff] }
 0x2f6   : > { %2880 = vmatprep.subr.bf16.mxu1 %v2648_v1  ;;  %v2691_v1 = vunpack.c.l.s8.bf16 %v2491_v44  ;;  %v2688_v2 = vunpack.c.h.s8.bf16 %v2488_v62  ;;  %v2684_v8 = vunpack.c.l.s8.bf16 %v2488_v62 }
 0x2f8   : > { %2840 = vmatpush2.bf16.msra.mxu0 %v2583_v25  ;;  %v2487_v25 = vld [vmem:[%s4310_s16 + $0x220] sm:$0xff] }
 0x2f9   : > { %2881 = vmatpush2.bf16.msra.mxu1 %v2647_v4  ;;  %2841 = vmatprep.subr.bf16.mxu0 %v2580_v5  ;;  %v2752_v5 = vunpack.c.h.s8.bf16 %v2520_v30  ;;  %v2687_v50 = vunpack.c.h.s8.bf16 %v2487_v25  ;;  %v2683_v16 = vunpack.c.l.s8.bf16 %v2487_v25 }
 0x2fa   : > { %2882 = vmatprep.subr.bf16.mxu1 %v2644_v7 }
 0x2fc   : > { %2842 = vmatpush2.bf16.msra.mxu0 %v2579_v9  ;;  %v2751_v9 = vunpack.c.h.s8.bf16 %v2519_v6 }
 0x2fd   : > { %2883 = vmatpush2.bf16.msra.mxu1 %v2643_v12  ;;  %2893 = vmatprep.subr.bf16.mxu0 %v2704_v13  ;;  %v2748_v12 = vunpack.c.l.s8.bf16 %v2520_v30  ;;  %v2516_v13 = vld [vmem:[%s4310_s16 + $0x308] sm:$0xff] }
 0x2fe   : > { %2934 = vmatprep.subr.bf16.mxu1 %v2768_v21  ;;  %v2483_v21 = vld [vmem:[%s4310_s16 + $0x200] sm:$0xff]  ;;  %v2504_v30 = vld [vmem:[%s4310_s16 + $0x2a8] sm:$0xff] }
 0x2ff   : > { %v4783_v59 = vpop.f32.mrf.mxu0  ;;  %2844 = vmatmul.mubr.bf16.vlgmr.msra.gmra.mxu0 %v4775_v15 }
 0x300   : > { %v4785_v36 = vpop.f32.mrf.mxu1  ;;  %2885 = vmatmul.mubr.bf16.vlgmr.msra.gmra.mxu1 %v4777_v31  ;;  %2894 = vmatpush1.bf16.msra.mxu0 %v2703_v14  ;;  %v2744_v14 = vunpack.c.h.s8.bf16 %v2516_v13  ;;  %v2005_v25 = vadd.f32 %v4783_v59, %v4721_v60  ;;  %v2716_v59 = vunpack.c.l.s8.bf16 %v2504_v30 }
 0x301   : > { %v2006_v18 = vpop.f32.mrf.mxu0  ;;  %2895 = vmatprep.subr.bf16.mxu0 %v2700_v29  ;;  %2935 = vmatpush1.bf16.msra.mxu1 %v2767_v39  ;;  %v2515_v29 = vld [vmem:[%s4310_s16 + $0x300] sm:$0xff]  ;;  %v2679_v39 = vunpack.c.h.s8.bf16 %v2483_v21 }
 0x302   : > { %v2047_v40 = vpop.f32.mrf.mxu1  ;;  %v2007_v47 = vadd.f32 %v2006_v18, %v1966_v51  ;;  %2936 = vmatprep.subr.bf16.mxu1 %v2764_v34  ;;  %v2743_v34 = vunpack.c.h.s8.bf16 %v2515_v29  ;;  %v2740_v51 = vunpack.c.l.s8.bf16 %v2516_v13  ;;  %v2675_v18 = vunpack.c.l.s8.bf16 %v2483_v21  ;;  %v2500_v13 = vld [vmem:[%s4310_s16 + $0x288] sm:$0xff] }
 0x303   : > { %v2008_v24 = vpop.f32.mrf.mxu0  ;;  %v2739_v44 = vunpack.c.l.s8.bf16 %v2515_v29  ;;  %v2046_v10 = vadd.f32 %v4785_v36, %v2005_v25  ;;  %v2712_v36 = vunpack.c.h.s8.bf16 %v2500_v13  ;;  %v2499_v29 = vld [vmem:[%s4310_s16 + $0x280] sm:$0xff] }
 0x304   : > { %v2049_v17 = vpop.f32.mrf.mxu1  ;;  %v2048_v19 = vadd.f32 %v2047_v40, %v2007_v47  ;;  %2896 = vmatpush1.bf16.msra.mxu0 %v2699_v52  ;;  %v2544_v52 = vld [vmem:[%s4310_s16 + $0x3e8] sm:$0xff]  ;;  %v2736_v40 = vunpack.c.h.s8.bf16 %v2512_v37  ;;  %v2543_v47 = vld [vmem:[%s4310_s16 + $0x3e0] sm:$0xff] }
 0x305   : > { %v2009_v56 = vpop.f32.mrf.mxu0  ;;  %2897 = vmatprep.subr.bf16.mxu0 %v2696_v42  ;;  %2937 = vmatpush1.bf16.msra.mxu1 %v2763_v45  ;;  %v2511_v42 = vld [vmem:[%s4310_s16 + $0x2e0] sm:$0xff]  ;;  %v2800_v45 = vunpack.c.h.s8.bf16 %v2544_v52  ;;  %v2799_v53 = vunpack.c.h.s8.bf16 %v2543_v47  ;;  %v2508_v24 = vld [vmem:[%s4310_s16 + $0x2c8] sm:$0xff]  ;;  %v2796_v17 = vunpack.c.l.s8.bf16 %v2544_v52 }
 0x306   : > { %v2050_v57 = vpop.f32.mrf.mxu1  ;;  %v2263_v61 = vmul.f32 %v2241_v48, %v2048_v19  ;;  %2938 = vmatprep.subr.bf16.mxu1 %v2760_v49  ;;  %v2735_v48 = vunpack.c.h.s8.bf16 %v2511_v42  ;;  %v2732_v49 = vunpack.c.l.s8.bf16 %v2512_v37  ;;  %v2540_v19 = vld [vmem:[%s4310_s16 + $0x3c8] sm:$0xff]  ;;  %v2507_v56 = vld [vmem:[%s4310_s16 + $0x2c0] sm:$0xff]  ;;  %v2724_v62 = vunpack.c.l.s8.bf16 %v2508_v24 }
 0x307   : > { %v2795_v57 = vunpack.c.l.s8.bf16 %v2543_v47  ;;  %v2433_v47 = vld [vmem:[%s4310_s16 + $0x70] sm:$0xff] }
 0x308   : > { %v2313_v0 = vadd.f32 %v2291_v54, %v2263_v61  ;;  %2898 = vmatpush1.bf16.msra.mxu0 %v2695_v55  ;;  %v2731_v54 = vunpack.c.l.s8.bf16 %v2511_v42  ;;  %v2728_v55 = vunpack.c.h.s8.bf16 %v2508_v24  ;;  %v2727_v61 = vunpack.c.h.s8.bf16 %v2507_v56 }
 0x309   : > { %2899 = vmatprep.subr.bf16.mxu0 %v2692_v58  ;;  %2939 = vmatpush1.bf16.msra.mxu1 %v2759_v41  ;;  %v2792_v58 = vunpack.c.h.s8.bf16 %v2540_v19  ;;  %v2539_v41 = vld [vmem:[%s4310_s16 + $0x3c0] sm:$0xff]  ;;  %v2707_v42 = vunpack.c.l.s8.bf16 %v2499_v29 }
 0x30a   : > { %v2321_v4 = vmax.f32 %v2313_v0, 0.0  ;;  %2940 = vmatprep.subr.bf16.mxu1 %v2756_v63  ;;  %v2791_v63 = vunpack.c.h.s8.bf16 %v2539_v41  ;;  %v2788_v0 = vunpack.c.l.s8.bf16 %v2540_v19  ;;  %v2787_v6 = vunpack.c.l.s8.bf16 %v2539_v41  ;;  %v2430_v19 = vld [vmem:[%s4310_s16 + $0x58] sm:$0xff] }
 0x30b   : > { %v2566_v25 = vunpack.c.l.s8.bf16 %v2430_v19 }
 0x30c   : > { %2900 = vmatpush1.bf16.msra.mxu0 %v2691_v1  ;;  %v4802_v7 = vpack.c.bf16 %v2321_v4, %v2321_v4  ;;  %v2536_v1 = vld [vmem:[%s4310_s16 + $0x3a8] sm:$0xff]  ;;  %v2720_v4 = vunpack.c.h.s8.bf16 %v2504_v30 }
 0x30d   : > { %2901 = vmatprep.subr.bf16.mxu0 %v2688_v2  ;;  %2941 = vmatpush1.bf16.msra.mxu1 %v2755_v3  ;;  %v2723_v2 = vunpack.c.l.s8.bf16 %v2507_v56  ;;  %v4822_v3 = vsub.s32 4, %v4331_v26 }
 0x30e   : > { %2925 = vmatprep.mubr.bf16.mxu0 %v4802_v7  ;;  %2942 = vmatprep.subr.bf16.mxu1 %v2752_v5  ;;  %v2503_v5 = vld [vmem:[%s4310_s16 + $0x2a0] sm:$0xff] }
 0x30f   : > { %v2237_v60 = vrot.slane %v4689_v38, %v4822_v3  ;;  %v2715_v21 = vunpack.c.l.s8.bf16 %v2503_v5 }
 0x310   : > { %2902 = vmatpush1.bf16.msra.mxu0 %v2687_v50  ;;  %v2784_v50 = vunpack.c.h.s8.bf16 %v2536_v1 }
 0x311   : > { %2903 = vmatprep.subr.bf16.mxu0 %v2684_v8  ;;  %2943 = vmatpush1.bf16.msra.mxu1 %v2751_v9  ;;  %v2535_v8 = vld [vmem:[%s4310_s16 + $0x3a0] sm:$0xff]  ;;  %v2719_v9 = vunpack.c.h.s8.bf16 %v2503_v5 }
 0x312   : > { %2944 = vmatprep.subr.bf16.mxu1 %v2748_v12  ;;  %v2783_v12 = vunpack.c.h.s8.bf16 %v2535_v8  ;;  %v2779_v38 = vunpack.c.l.s8.bf16 %v2535_v8 }
 0x314   : > { %2904 = vmatpush1.bf16.msra.mxu0 %v2683_v16  ;;  %v2780_v16 = vunpack.c.l.s8.bf16 %v2536_v1 }
 0x315   : > { %2905 = vmatprep.subr.bf16.mxu0 %v2680_v20  ;;  %2945 = vmatpush1.bf16.msra.mxu1 %v2747_v23  ;;  %v2532_v20 = vld [vmem:[%s4310_s16 + $0x388] sm:$0xff]  ;;  %v2262_v23 = vmul.f32 %v2237_v60, %v2046_v10  ;;  %v2422_v10 = vld [vmem:[%s4310_s16 + $0x18] sm:$0xff] }
 0x316   : > { %2946 = vmatprep.subr.bf16.mxu1 %v2744_v14  ;;  %v2287_v14 = vrot.slane %v4700_v46, %v4822_v3  ;;  %v2772_v46 = vunpack.c.l.s8.bf16 %v2532_v20  ;;  %v733_v60 = vld [vmem:[#allocation2] sm:$0x3] }
 0x318   : > { %2906 = vmatpush1.bf16.msra.mxu0 %v2679_v39  ;;  %v2776_v39 = vunpack.c.h.s8.bf16 %v2532_v20  ;;  %v2312_v37 = vadd.f32 %v2287_v14, %v2262_v23  ;;  %v4013_v20 = vmov 1   ;;  %v2450_v23 = vld [vmem:[%s4310_s16 + $0xf8] sm:$0xff] }
 0x319   : > { %2907 = vmatprep.subr.bf16.mxu0 %v2676_v33  ;;  %2947 = vmatpush1.bf16.msra.mxu1 %v2743_v34  ;;  %v2531_v33 = vld [vmem:[%s4310_s16 + $0x380] sm:$0xff]  ;;  %v2711_v34 = vunpack.c.h.s8.bf16 %v2499_v29  ;;  %v2449_v29 = vld [vmem:[%s4310_s16 + $0xf0] sm:$0xff] }
 0x31a   : > { %2948 = vmatprep.subr.bf16.mxu1 %v2740_v51  ;;  %v2708_v51 = vunpack.c.l.s8.bf16 %v2500_v13  ;;  %v2775_v52 = vunpack.c.h.s8.bf16 %v2531_v33  ;;  %v2421_v13 = vld [vmem:[%s4310_s16 + $0x10] sm:$0xff] }
 0x31b   : > { %v2549_v14 = vunpack.c.l.s8.bf16 %v2421_v13 }
 0x31c   : > { %2908 = vmatpush1.bf16.msra.mxu0 %v2675_v18  ;;  %v2434_v18 = vld [vmem:[%s4310_s16 + $0x78] sm:$0xff] }
 0x31d   : > { %2909 = vmatprep.subr.bf16.mxu0 %v2736_v40  ;;  %2949 = vmatpush1.bf16.msra.mxu1 %v2739_v44  ;;  %v4837_v40 = vld [vmem:[%s4310_s16 + $0x178] sm:$0xff]  ;;  %v2320_v44 = vmax.f32 %v2312_v37, 0.0 }
 0x31e   : > { %2950 = vmatprep.subr.bf16.mxu1 %v2800_v45  ;;  %v2578_v45 = vunpack.c.h.s8.bf16 %v2434_v18 }
 0x31f   : > { %v4841_v24 = vpack.c.bf16 %v2320_v44, %v2320_v44 }
 0x320   : > { %2910 = vmatpush2.bf16.msra.mxu0 %v2735_v48  ;;  %v2771_v48 = vunpack.c.l.s8.bf16 %v2531_v33  ;;  %v2446_v33 = vld [vmem:[%s4310_s16 + $0xd8] sm:$0xff] }
 0x321   : > { %2911 = vmatprep.subr.bf16.mxu0 %v2732_v49  ;;  %2951 = vmatpush2.bf16.msra.mxu1 %v2799_v53  ;;  %v2642_v49 = vunpack.c.h.s8.bf16 %v4837_v40  ;;  %v2577_v53 = vunpack.c.h.s8.bf16 %v2433_v47  ;;  %v2602_v37 = vunpack.c.h.s8.bf16 %v2446_v33 }
 0x322   : > { %2952 = vmatprep.subr.bf16.mxu1 %v2796_v17  ;;  %v2574_v17 = vunpack.c.l.s8.bf16 %v2434_v18  ;;  %v2598_v18 = vunpack.c.l.s8.bf16 %v2446_v33  ;;  %v2490_v33 = vld [vmem:[%s4310_s16 + $0x238] sm:$0xff] }
 0x324   : > { %2912 = vmatpush2.bf16.msra.mxu0 %v2731_v54 }
 0x325   : > { %2913 = vmatprep.subr.bf16.mxu0 %v2728_v55  ;;  %2953 = vmatpush2.bf16.msra.mxu1 %v2795_v57  ;;  %v2573_v57 = vunpack.c.l.s8.bf16 %v2433_v47 }
 0x326   : > { %2954 = vmatprep.subr.bf16.mxu1 %v2792_v58 }
 0x328   : > { %2914 = vmatpush2.bf16.msra.mxu0 %v2727_v61  ;;  %v2570_v61 = vunpack.c.h.s8.bf16 %v2430_v19  ;;  %v2437_v19 = vld [vmem:[%s4310_s16 + $0x90] sm:$0xff] }
 0x329   : > { %2915 = vmatprep.subr.bf16.mxu0 %v2724_v62  ;;  %2955 = vmatpush2.bf16.msra.mxu1 %v2791_v63  ;;  %v2429_v62 = vld [vmem:[%s4310_s16 + $0x50] sm:$0xff] }
 0x32a   : > { %2956 = vmatprep.subr.bf16.mxu1 %v2788_v0  ;;  %v2569_v0 = vunpack.c.h.s8.bf16 %v2429_v62 }
 0x32c   : > { %2916 = vmatpush2.bf16.msra.mxu0 %v2723_v2 }
 0x32d   : > { %2917 = vmatprep.subr.bf16.mxu0 %v2720_v4  ;;  %2957 = vmatpush2.bf16.msra.mxu1 %v2787_v6  ;;  %v2426_v4 = vld [vmem:[%s4310_s16 + $0x38] sm:$0xff]  ;;  %v2425_v6 = vld [vmem:[%s4310_s16 + $0x30] sm:$0xff] }
 0x32e   : > { %2958 = vmatprep.subr.bf16.mxu1 %v2784_v50  ;;  %v2562_v5 = vunpack.c.h.s8.bf16 %v2426_v4  ;;  %v2561_v50 = vunpack.c.h.s8.bf16 %v2425_v6  ;;  %v2558_v8 = vunpack.c.l.s8.bf16 %v2426_v4 }
 0x330   : > { %2918 = vmatpush2.bf16.msra.mxu0 %v2719_v9  ;;  %v4012_v9 = vmov 0  }
 0x331   : > { %2919 = vmatprep.subr.bf16.mxu0 %v2716_v59  ;;  %2959 = vmatpush2.bf16.msra.mxu1 %v2783_v12  ;;  %v2557_v59 = vunpack.c.l.s8.bf16 %v2425_v6  ;;  %v2554_v12 = vunpack.c.h.s8.bf16 %v2422_v10 }
 0x332   : > { %2960 = vmatprep.subr.bf16.mxu1 %v2780_v16  ;;  %3675 = vset.pattern.permute.xlu0 %v4012_v9  ;;  %v2553_v16 = vunpack.c.h.s8.bf16 %v2421_v13 }
 0x333   : > { %2327 = vperm.xlu0 %3675, %v733_v60  }
 0x334   : > { %2920 = vmatpush2.bf16.msra.mxu0 %v2715_v21  ;;  %v2550_v21 = vunpack.c.l.s8.bf16 %v2422_v10 }
 0x335   : > { %2921 = vmatprep.subr.bf16.mxu0 %v2712_v36  ;;  %2961 = vmatpush2.bf16.msra.mxu1 %v2779_v38  ;;  %v2610_v36 = vunpack.c.h.s8.bf16 %v2450_v23  ;;  %v2609_v38 = vunpack.c.h.s8.bf16 %v2449_v29 }
 0x336   : > { %2962 = vmatprep.subr.bf16.mxu1 %v2776_v39  ;;  %v2606_v39 = vunpack.c.l.s8.bf16 %v2450_v23 }
 0x337   : > { %3676 = vset.pattern.permute.xlu0 %v4013_v20 }
 0x338   : > { %2922 = vmatpush2.bf16.msra.mxu0 %v2711_v34  ;;  %2372 = vperm.xlu0 %3676, %v733_v60   ;;  %v2605_v34 = vunpack.c.l.s8.bf16 %v2449_v29 }
 0x339   : > { %2923 = vmatprep.subr.bf16.mxu0 %v2708_v51  ;;  %2963 = vmatpush2.bf16.msra.mxu1 %v2775_v52  ;;  %v2445_v51 = vld [vmem:[%s4310_s16 + $0xd0] sm:$0xff] }
 0x33a   : > { %2964 = vmatprep.subr.bf16.mxu1 %v2772_v46  ;;  %v2601_v52 = vunpack.c.h.s8.bf16 %v2445_v51  ;;  %v2442_v46 = vld [vmem:[%s4310_s16 + $0xb8] sm:$0xff] }
 0x33b   : > { %v2594_v44 = vunpack.c.h.s8.bf16 %v2442_v46 }
 0x33c   : > { %2924 = vmatpush2.bf16.msra.mxu0 %v2707_v42  ;;  %v2597_v42 = vunpack.c.l.s8.bf16 %v2445_v51 }
 0x33d   : > { %2975 = vmatprep.subr.bf16.mxu0 %v2578_v45  ;;  %2965 = vmatpush2.bf16.msra.mxu1 %v2771_v48  ;;  %v2441_v45 = vld [vmem:[%s4310_s16 + $0xb0] sm:$0xff]  ;;  %v2590_v48 = vunpack.c.l.s8.bf16 %v2442_v46 }
 0x33e   : > { %3016 = vmatprep.subr.bf16.mxu1 %v2642_v49  ;;  %v2593_v47 = vunpack.c.h.s8.bf16 %v2441_v45  ;;  %v2438_v49 = vld [vmem:[%s4310_s16 + $0x98] sm:$0xff] }
 0x33f   : > { %v2086_v54 = vpop.f32.mrf.mxu0  ;;  %2926 = vmatmul.mubr.bf16.vlgmr.msra.gmra.mxu0 %v4841_v24 }
 0x340   : > { %v2127_v55 = vpop.f32.mrf.mxu1  ;;  %2976 = vmatpush1.bf16.msra.mxu0 %v2577_v53  ;;  %3007 = vmatprep.mubr.bf16.mxu0 %v4713_v11  ;;  %v2565_v11 = vunpack.c.l.s8.bf16 %v2429_v62  ;;  %v2589_v53 = vunpack.c.l.s8.bf16 %v2441_v45 }
 0x341   : > { %v4845_v56 = vadd.f32 %v2127_v55, %v2086_v54  ;;  %v4848_v58 = vpop.f32.mrf.mxu0  ;;  %2977 = vmatprep.subr.bf16.mxu0 %v2574_v17  ;;  %v2586_v17 = vunpack.c.h.s8.bf16 %v2438_v49  ;;  %v2585_v54 = vunpack.c.h.s8.bf16 %v2437_v19  ;;  %v2582_v55 = vunpack.c.l.s8.bf16 %v2438_v49 }
 0x342   : > { %v4850_v41 = vpop.f32.mrf.mxu1  ;;  %v2638_v49 = vunpack.c.l.s8.bf16 %v4837_v40 }
 0x343   : > { %v2090_v63 = vpop.f32.mrf.mxu0 }
 0x344   : > { %v2131_v30 = vpop.f32.mrf.mxu1  ;;  %2978 = vmatpush1.bf16.msra.mxu0 %v2573_v57  ;;  %v2498_v57 = vld [vmem:[%s4310_s16 + $0x278] sm:$0xff]  ;;  %v2497_v63 = vld [vmem:[%s4310_s16 + $0x270] sm:$0xff] }
 0x345   : > { %v2091_v1 = vpop.f32.mrf.mxu0  ;;  %2979 = vmatprep.subr.bf16.mxu0 %v2570_v61  ;;  %v2581_v61 = vunpack.c.l.s8.bf16 %v2437_v19  ;;  %v2706_v62 = vunpack.c.h.s8.bf16 %v2498_v57  ;;  %v4868_v30 = vsub.s32 6, %v4331_v26  ;;  %v2486_v19 = vld [vmem:[%s4310_s16 + $0x218] sm:$0xff] }
 0x346   : > { %v2132_v2 = vpop.f32.mrf.mxu1  ;;  %v2702_v1 = vunpack.c.l.s8.bf16 %v2498_v57  ;;  %v2682_v40 = vunpack.c.h.s8.bf16 %v2486_v19 }
 0x347   : > { %v4871_v2 = vsub.s32 7, %v4331_v26  ;;  %v2701_v26 = vunpack.c.l.s8.bf16 %v2497_v63 }
 0x348   : > { %2980 = vmatpush1.bf16.msra.mxu0 %v2569_v0  ;;  %v2705_v0 = vunpack.c.h.s8.bf16 %v2497_v63 }
 0x349   : > { %2981 = vmatprep.subr.bf16.mxu0 %v2566_v25  ;;  %v2494_v25 = vld [vmem:[%s4310_s16 + $0x258] sm:$0xff] }
 0x34a   : > { %v2698_v60 = vunpack.c.h.s8.bf16 %v2494_v25  ;;  %v2694_v29 = vunpack.c.l.s8.bf16 %v2494_v25  ;;  %v2458_v25 = vld [vmem:[%s4310_s16 + $0x138] sm:$0xff] }
 0x34c   : > { %2982 = vmatpush1.bf16.msra.mxu0 %v2565_v11 }
 0x34d   : > { %2983 = vmatprep.subr.bf16.mxu0 %v2562_v5  ;;  %v2130_v5 = vadd.f32 %v4850_v41, %v4848_v58 }
 0x350   : > { %2984 = vmatpush1.bf16.msra.mxu0 %v2561_v50  ;;  %v3678_v50 = vld [vmem:[%s581_s2] sm:$0xff] }
 0x351   : > { %2985 = vmatprep.subr.bf16.mxu0 %v2558_v8  ;;  %v2245_v8 = vrot.slane %v3678_v50, %v4868_v30  ;;  %v2249_v41 = vrot.slane %v3678_v50, %v4871_v2  ;;  %v2457_v50 = vld [vmem:[%s4310_s16 + $0x130] sm:$0xff] }
 0x354   : > { %2986 = vmatpush1.bf16.msra.mxu0 %v2557_v59  ;;  %v2493_v59 = vld [vmem:[%s4310_s16 + $0x250] sm:$0xff] }
 0x355   : > { %2987 = vmatprep.subr.bf16.mxu0 %v2554_v12  ;;  %v2697_v23 = vunpack.c.h.s8.bf16 %v2493_v59 }
 0x358   : > { %2988 = vmatpush1.bf16.msra.mxu0 %v2553_v16 }
 0x359   : > { %2989 = vmatprep.subr.bf16.mxu0 %v2550_v21 }
 0x35c   : > { %2990 = vmatpush1.bf16.msra.mxu0 %v2549_v14 }
 0x35d   : > { %2991 = vmatprep.subr.bf16.mxu0 %v2610_v36 }
 0x360   : > { %2992 = vmatpush2.bf16.msra.mxu0 %v2609_v38 }
 0x361   : > { %2993 = vmatprep.subr.bf16.mxu0 %v2606_v39 }
 0x364   : > { %2994 = vmatpush2.bf16.msra.mxu0 %v2605_v34 }
 0x365   : > { %2995 = vmatprep.subr.bf16.mxu0 %v2602_v37  ;;  %v2693_v37 = vunpack.c.l.s8.bf16 %v2493_v59 }
 0x368   : > { %2996 = vmatpush2.bf16.msra.mxu0 %v2601_v52  ;;  %v2465_v52 = vld [vmem:[%s4310_s16 + $0x170] sm:$0xff] }
 0x369   : > { %2997 = vmatprep.subr.bf16.mxu0 %v2598_v18  ;;  %v2690_v18 = vunpack.c.h.s8.bf16 %v2490_v33  ;;  %v2641_v45 = vunpack.c.h.s8.bf16 %v2465_v52 }
 0x36c   : > { %2998 = vmatpush2.bf16.msra.mxu0 %v2597_v42  ;;  %v2489_v42 = vld [vmem:[%s4310_s16 + $0x230] sm:$0xff] }
 0x36d   : > { %2999 = vmatprep.subr.bf16.mxu0 %v2594_v44 }
 0x370   : > { %3000 = vmatpush2.bf16.msra.mxu0 %v2593_v47 }
 0x371   : > { %3001 = vmatprep.subr.bf16.mxu0 %v2590_v48  ;;  %v2689_v48 = vunpack.c.h.s8.bf16 %v2489_v42 }
 0x374   : > { %3002 = vmatpush2.bf16.msra.mxu0 %v2589_v53  ;;  %v2686_v53 = vunpack.c.l.s8.bf16 %v2490_v33 }
 0x375   : > { %3003 = vmatprep.subr.bf16.mxu0 %v2586_v17  ;;  %v2462_v17 = vld [vmem:[%s4310_s16 + $0x158] sm:$0xff] }
 0x376   : > { %v2634_v57 = vunpack.c.h.s8.bf16 %v2462_v17 }
 0x378   : > { %3004 = vmatpush2.bf16.msra.mxu0 %v2585_v54  ;;  %v2637_v54 = vunpack.c.l.s8.bf16 %v2465_v52 }
 0x379   : > { %3005 = vmatprep.subr.bf16.mxu0 %v2582_v55  ;;  %v2685_v55 = vunpack.c.l.s8.bf16 %v2489_v42 }
 0x37c   : > { %3006 = vmatpush2.bf16.msra.mxu0 %v2581_v61  ;;  %v2461_v61 = vld [vmem:[%s4310_s16 + $0x150] sm:$0xff] }
 0x37d   : > { %3057 = vmatprep.subr.bf16.mxu0 %v2706_v62  ;;  %v2485_v62 = vld [vmem:[%s4310_s16 + $0x210] sm:$0xff]  ;;  %v2633_v63 = vunpack.c.h.s8.bf16 %v2461_v61 }
 0x37f   : > { %v2168_v4 = vpop.f32.mrf.mxu0  ;;  %3008 = vmatmul.mubr.bf16.vlgmr.msra.gmra.mxu0 %v4775_v15  ;;  %v3679_v15 = vld [vmem:[%s590_s12] sm:$0xff] }
 0x380   : > { %v2209_v11 = vpop.f32.mrf.mxu1  ;;  %v2169_v6 = vadd.f32 %v2168_v4, %v4845_v56  ;;  %3058 = vmatpush1.bf16.msra.mxu0 %v2705_v0  ;;  %3089 = vmatprep.mubr.bf16.mxu0 %v4802_v7  ;;  %v2295_v58 = vrot.slane %v3679_v15, %v4868_v30  ;;  %v2299_v7 = vrot.slane %v3679_v15, %v4871_v2  ;;  %v2681_v0 = vunpack.c.h.s8.bf16 %v2485_v62  ;;  %v2514_v4 = vld [vmem:[%s4310_s16 + $0x2f8] sm:$0xff] }
 0x381   : > { %v2170_v9 = vpop.f32.mrf.mxu0  ;;  %3059 = vmatprep.subr.bf16.mxu0 %v2702_v1  ;;  %v2630_v1 = vunpack.c.l.s8.bf16 %v2462_v17  ;;  %v2734_v59 = vunpack.c.l.s8.bf16 %v2514_v4  ;;  %v2510_v15 = vld [vmem:[%s4310_s16 + $0x2d8] sm:$0xff] }
 0x382   : > { %v2211_v10 = vpop.f32.mrf.mxu1  ;;  %v2210_v12 = vadd.f32 %v2209_v11, %v2169_v6  ;;  %v2171_v56 = vadd.f32 %v2170_v9, %v2130_v5  ;;  %v2629_v11 = vunpack.c.l.s8.bf16 %v2461_v61  ;;  %v2677_v5 = vunpack.c.l.s8.bf16 %v2485_v62 }
 0x383   : > { %v2172_v13 = vpop.f32.mrf.mxu0  ;;  %v2626_v6 = vunpack.c.h.s8.bf16 %v2458_v25  ;;  %v2625_v9 = vunpack.c.h.s8.bf16 %v2457_v50 }
 0x384   : > { %v2213_v16 = vpop.f32.mrf.mxu1  ;;  %v2264_v20 = vmul.f32 %v2245_v8, %v2210_v12  ;;  %v2212_v21 = vadd.f32 %v2211_v10, %v2171_v56  ;;  %3060 = vmatpush1.bf16.msra.mxu0 %v2701_v26  ;;  %v2738_v8 = vunpack.c.h.s8.bf16 %v2514_v4  ;;  %v2513_v26 = vld [vmem:[%s4310_s16 + $0x2f0] sm:$0xff]  ;;  %v2454_v12 = vld [vmem:[%s4310_s16 + $0x118] sm:$0xff] }
 0x385   : > { %v2173_v14 = vpop.f32.mrf.mxu0  ;;  %3061 = vmatprep.subr.bf16.mxu0 %v2698_v60  ;;  %v2737_v10 = vunpack.c.h.s8.bf16 %v2513_v26  ;;  %v2622_v60 = vunpack.c.l.s8.bf16 %v2458_v25  ;;  %v2733_v56 = vunpack.c.l.s8.bf16 %v2513_v26  ;;  %v2453_v13 = vld [vmem:[%s4310_s16 + $0x110] sm:$0xff]  ;;  %v2730_v16 = vunpack.c.h.s8.bf16 %v2510_v15 }
 0x386   : > { %v2214_v36 = vpop.f32.mrf.mxu1  ;;  %v2314_v38 = vadd.f32 %v2295_v58, %v2264_v20  ;;  %v2265_v39 = vmul.f32 %v2249_v41, %v2212_v21  ;;  %v2621_v58 = vunpack.c.l.s8.bf16 %v2457_v50  ;;  %v2618_v41 = vunpack.c.h.s8.bf16 %v2454_v12  ;;  %v2509_v20 = vld [vmem:[%s4310_s16 + $0x2d0] sm:$0xff] }
 0x387   : > { %v2617_v21 = vunpack.c.h.s8.bf16 %v2453_v13  ;;  %v2726_v14 = vunpack.c.l.s8.bf16 %v2510_v15  ;;  %v2482_v36 = vld [vmem:[%s4310_s16 + $0x1f8] sm:$0xff]  ;;  %v2473_v25 = vld [vmem:[%s4310_s16 + $0x1b0] sm:$0xff] }
 0x388   : > { %v2315_v34 = vadd.f32 %v2299_v7, %v2265_v39  ;;  %3062 = vmatpush1.bf16.msra.mxu0 %v2697_v23  ;;  %v2322_v51 = vmax.f32 %v2314_v38, 0.0  ;;  %v2729_v7 = vunpack.c.h.s8.bf16 %v2509_v20  ;;  %v2614_v23 = vunpack.c.l.s8.bf16 %v2454_v12 }
 0x389   : > { %3063 = vmatprep.subr.bf16.mxu0 %v2694_v29  ;;  %v2506_v29 = vld [vmem:[%s4310_s16 + $0x2b8] sm:$0xff]  ;;  %v2613_v38 = vunpack.c.l.s8.bf16 %v2453_v13  ;;  %v2725_v39 = vunpack.c.l.s8.bf16 %v2509_v20  ;;  %v2674_v33 = vunpack.c.h.s8.bf16 %v2482_v36  ;;  %v2657_v4 = vunpack.c.h.s8.bf16 %v2473_v25 }
 0x38a   : > { %v2323_v46 = vmax.f32 %v2315_v34, 0.0  ;;  %v4893_v47 = vpack.c.bf16 %v2322_v51, %v2322_v51  ;;  %v2481_v34 = vld [vmem:[%s4310_s16 + $0x1f0] sm:$0xff]  ;;  %v2718_v42 = vunpack.c.l.s8.bf16 %v2506_v29 }
 0x38b   : > { %v2505_v51 = vld [vmem:[%s4310_s16 + $0x2b0] sm:$0xff]  ;;  %v2673_v52 = vunpack.c.h.s8.bf16 %v2481_v34 }
 0x38c   : > { %3064 = vmatpush1.bf16.msra.mxu0 %v2693_v37  ;;  %v4891_v44 = vpack.c.bf16 %v2323_v46, %v2323_v46  ;;  %v2722_v37 = vunpack.c.h.s8.bf16 %v2506_v29  ;;  %v2670_v46 = vunpack.c.l.s8.bf16 %v2482_v36  ;;  %v2526_v36 = vld [vmem:[%s4310_s16 + $0x358] sm:$0xff] }
 0x38d   : > { %3065 = vmatprep.subr.bf16.mxu0 %v2690_v18  ;;  %v2721_v18 = vunpack.c.h.s8.bf16 %v2505_v51 }
 0x38e   : > { %2966 = vmatprep.mubr.bf16.mxu1 %v4891_v44 }
 0x38f   : > { %2967 = vmatmul.mubr.bf16.vlgmr.msra.gmra.mxu1 %v4893_v47 }
 0x390   : > { %3017 = vmatpush1.bf16.msra.mxu1 %v2641_v45  ;;  %3048 = vmatprep.mubr.bf16.mxu1 %v4718_v22  ;;  %v2678_v22 = vunpack.c.l.s8.bf16 %v2486_v19  ;;  %v2478_v45 = vld [vmem:[%s4310_s16 + $0x1d8] sm:$0xff]  ;;  %v2477_v19 = vld [vmem:[%s4310_s16 + $0x1d0] sm:$0xff] }
 0x391   : > { %3066 = vmatpush1.bf16.msra.mxu0 %v2689_v48  ;;  %3018 = vmatprep.subr.bf16.mxu1 %v2638_v49  ;;  %v2502_v48 = vld [vmem:[%s4310_s16 + $0x298] sm:$0xff]  ;;  %v2669_v49 = vunpack.c.l.s8.bf16 %v2481_v34  ;;  %v2666_v17 = vunpack.c.h.s8.bf16 %v2478_v45  ;;  %v2758_v34 = vunpack.c.l.s8.bf16 %v2526_v36 }
 0x392   : > { %3067 = vmatprep.subr.bf16.mxu0 %v2686_v53  ;;  %v2717_v53 = vunpack.c.l.s8.bf16 %v2505_v51  ;;  %v2710_v62 = vunpack.c.l.s8.bf16 %v2502_v48 }
 0x394   : > { %3019 = vmatpush1.bf16.msra.mxu1 %v2637_v54  ;;  %v2714_v54 = vunpack.c.h.s8.bf16 %v2502_v48  ;;  %v2517_v48 = vld [vmem:[%s4310_s16 + $0x310] sm:$0xff] }
 0x395   : > { %3068 = vmatpush1.bf16.msra.mxu0 %v2685_v55  ;;  %3020 = vmatprep.subr.bf16.mxu1 %v2634_v57  ;;  %v2501_v55 = vld [vmem:[%s4310_s16 + $0x290] sm:$0xff]  ;;  %v2665_v57 = vunpack.c.h.s8.bf16 %v2477_v19 }
 0x396   : > { %3069 = vmatprep.subr.bf16.mxu0 %v2682_v40  ;;  %v2713_v61 = vunpack.c.h.s8.bf16 %v2501_v55  ;;  %v2662_v40 = vunpack.c.l.s8.bf16 %v2478_v45 }
 0x398   : > { %3021 = vmatpush1.bf16.msra.mxu1 %v2633_v63  ;;  %v2474_v63 = vld [vmem:[%s4310_s16 + $0x1b8] sm:$0xff] }
 0x399   : > { %3070 = vmatpush1.bf16.msra.mxu0 %v2681_v0  ;;  %3022 = vmatprep.subr.bf16.mxu1 %v2630_v1  ;;  %v2661_v0 = vunpack.c.l.s8.bf16 %v2477_v19  ;;  %v2709_v1 = vunpack.c.l.s8.bf16 %v2501_v55  ;;  %v2741_v19 = vunpack.c.l.s8.bf16 %v2517_v48  ;;  %v2545_v55 = vld [vmem:[%s4310_s16 + $0x3f0] sm:$0xff] }
 0x39a   : > { %3071 = vmatprep.subr.bf16.mxu0 %v2678_v22  ;;  %v2658_v22 = vunpack.c.h.s8.bf16 %v2474_v63 }
 0x39c   : > { %3023 = vmatpush1.bf16.msra.mxu1 %v2629_v11  ;;  %v2654_v11 = vunpack.c.l.s8.bf16 %v2474_v63 }
 0x39d   : > { %3072 = vmatpush1.bf16.msra.mxu0 %v2677_v5  ;;  %3024 = vmatprep.subr.bf16.mxu1 %v2626_v6  ;;  %v2470_v5 = vld [vmem:[%s4310_s16 + $0x198] sm:$0xff] }
 0x39e   : > { %3073 = vmatprep.subr.bf16.mxu0 %v2738_v8  ;;  %v2653_v8 = vunpack.c.l.s8.bf16 %v2473_v25  ;;  %v2538_v25 = vld [vmem:[%s4310_s16 + $0x3b8] sm:$0xff] }
 0x3a0   : > { %3025 = vmatpush1.bf16.msra.mxu1 %v2625_v9 }
 0x3a1   : > { %3074 = vmatpush2.bf16.msra.mxu0 %v2737_v10  ;;  %3026 = vmatprep.subr.bf16.mxu1 %v2622_v60  ;;  %v2650_v10 = vunpack.c.h.s8.bf16 %v2470_v5  ;;  %v2469_v60 = vld [vmem:[%s4310_s16 + $0x190] sm:$0xff] }
 0x3a2   : > { %3075 = vmatprep.subr.bf16.mxu0 %v2734_v59  ;;  %v2645_v20 = vunpack.c.l.s8.bf16 %v2469_v60 }
 0x3a4   : > { %3027 = vmatpush1.bf16.msra.mxu1 %v2621_v58 }
 0x3a5   : > { %3076 = vmatpush2.bf16.msra.mxu0 %v2733_v56  ;;  %3028 = vmatprep.subr.bf16.mxu1 %v2618_v41  ;;  %v2649_v56 = vunpack.c.h.s8.bf16 %v2469_v60 }
 0x3a6   : > { %3077 = vmatprep.subr.bf16.mxu0 %v2730_v16  ;;  %v2530_v16 = vld [vmem:[%s4310_s16 + $0x378] sm:$0xff] }
 0x3a8   : > { %3029 = vmatpush1.bf16.msra.mxu1 %v2617_v21  ;;  %v2770_v21 = vunpack.c.h.s8.bf16 %v2530_v16 }
 0x3a9   : > { %3078 = vmatpush2.bf16.msra.mxu0 %v2729_v7  ;;  %3030 = vmatprep.subr.bf16.mxu1 %v2614_v23  ;;  %v2529_v7 = vld [vmem:[%s4310_s16 + $0x370] sm:$0xff] }
 0x3aa   : > { %3079 = vmatprep.subr.bf16.mxu0 %v2726_v14  ;;  %v2769_v23 = vunpack.c.h.s8.bf16 %v2529_v7  ;;  %v2766_v14 = vunpack.c.l.s8.bf16 %v2530_v16  ;;  %v2765_v29 = vunpack.c.l.s8.bf16 %v2529_v7  ;;  %v4955_v7 = vld [vmem:[%s617_s25] sm:$0xff] }
 0x3ac   : > { %3031 = vmatpush1.bf16.msra.mxu1 %v2613_v38  ;;  %v2762_v38 = vunpack.c.h.s8.bf16 %v2526_v36  ;;  %v2378_v36 = vrot.slane %v4955_v7, %v4680_v27 }
 0x3ad   : > { %3080 = vmatpush2.bf16.msra.mxu0 %v2725_v39  ;;  %3032 = vmatprep.subr.bf16.mxu1 %v2674_v33  ;;  %v2525_v39 = vld [vmem:[%s4310_s16 + $0x350] sm:$0xff] }
 0x3ae   : > { %3081 = vmatprep.subr.bf16.mxu0 %v2722_v37  ;;  %v2761_v33 = vunpack.c.h.s8.bf16 %v2525_v39  ;;  %v2522_v37 = vld [vmem:[%s4310_s16 + $0x338] sm:$0xff]  ;;  %v2757_v51 = vunpack.c.l.s8.bf16 %v2525_v39 }
 0x3b0   : > { %3033 = vmatpush2.bf16.msra.mxu1 %v2673_v52  ;;  %v2754_v52 = vunpack.c.h.s8.bf16 %v2522_v37 }
 0x3b1   : > { %3082 = vmatpush2.bf16.msra.mxu0 %v2721_v18  ;;  %3034 = vmatprep.subr.bf16.mxu1 %v2670_v46  ;;  %v2518_v46 = vld [vmem:[%s4310_s16 + $0x318] sm:$0xff] }
 0x3b2   : > { %3083 = vmatprep.subr.bf16.mxu0 %v2718_v42  ;;  %v2746_v45 = vunpack.c.h.s8.bf16 %v2518_v46 }
 0x3b4   : > { %3035 = vmatpush2.bf16.msra.mxu1 %v2669_v49  ;;  %v2745_v49 = vunpack.c.h.s8.bf16 %v2517_v48  ;;  %v4985_v48 = vld [vmem:[%s626_s17] sm:$0xf] }
 0x3b5   : > { %3084 = vmatpush2.bf16.msra.mxu0 %v2717_v53  ;;  %3036 = vmatprep.subr.bf16.mxu1 %v2666_v17  ;;  %v2742_v53 = vunpack.c.l.s8.bf16 %v2518_v46  ;;  %v2546_v17 = vld [vmem:[%s4310_s16 + $0x3f8] sm:$0xff] }
 0x3b6   : > { %3085 = vmatprep.subr.bf16.mxu0 %v2714_v54  ;;  %v2802_v54 = vunpack.c.h.s8.bf16 %v2546_v17 }
 0x3b8   : > { %3037 = vmatpush2.bf16.msra.mxu1 %v2665_v57  ;;  %v2801_v57 = vunpack.c.h.s8.bf16 %v2545_v55 }
 0x3b9   : > { %3086 = vmatpush2.bf16.msra.mxu0 %v2713_v61  ;;  %3038 = vmatprep.subr.bf16.mxu1 %v2662_v40  ;;  %v2798_v61 = vunpack.c.l.s8.bf16 %v2546_v17  ;;  %v2542_v40 = vld [vmem:[%s4310_s16 + $0x3d8] sm:$0xff] }
 0x3ba   : > { %3087 = vmatprep.subr.bf16.mxu0 %v2710_v62  ;;  %v2797_v62 = vunpack.c.l.s8.bf16 %v2545_v55  ;;  %v2794_v63 = vunpack.c.h.s8.bf16 %v2542_v40 }
 0x3bc   : > { %3039 = vmatpush2.bf16.msra.mxu1 %v2661_v0  ;;  %v2541_v0 = vld [vmem:[%s4310_s16 + $0x3d0] sm:$0xff] }
 0x3bd   : > { %3088 = vmatpush2.bf16.msra.mxu0 %v2709_v1  ;;  %3040 = vmatprep.subr.bf16.mxu1 %v2658_v22  ;;  %v2793_v1 = vunpack.c.h.s8.bf16 %v2541_v0  ;;  %v2790_v22 = vunpack.c.l.s8.bf16 %v2542_v40 }
 0x3bf   : > { %v2845_v6 = vpop.f32.mrf.mxu0 }
 0x3c0   : > { %v2886_v50 = vpop.f32.mrf.mxu1  ;;  %3041 = vmatpush2.bf16.msra.mxu1 %v2657_v4  ;;  %3090 = vmatmul.mubr.bf16.vlgmr.msra.gmra.mxu0 %v4841_v24  ;;  %v2646_v24 = vunpack.c.l.s8.bf16 %v2470_v5  ;;  %v2789_v4 = vunpack.c.l.s8.bf16 %v2541_v0  ;;  %v2537_v5 = vld [vmem:[%s4310_s16 + $0x3b0] sm:$0xff] }
 0x3c1   : > { %v4923_v26 = vadd.f32 %v2886_v50, %v2845_v6  ;;  %v2847_v9 = vpop.f32.mrf.mxu0  ;;  %3042 = vmatprep.subr.bf16.mxu1 %v2654_v11  ;;  %v2786_v11 = vunpack.c.h.s8.bf16 %v2538_v25  ;;  %v2785_v6 = vunpack.c.h.s8.bf16 %v2537_v5  ;;  %v2782_v50 = vunpack.c.l.s8.bf16 %v2538_v25 }
 0x3c2   : > { %v2888_v59 = vpop.f32.mrf.mxu1  ;;  %v2781_v60 = vunpack.c.l.s8.bf16 %v2537_v5 }
 0x3c3   : > { %v4926_v12 = vadd.f32 %v2888_v59, %v2847_v9  ;;  %v2849_v15 = vpop.f32.mrf.mxu0 }
 0x3c4   : > { %v2890_v58 = vpop.f32.mrf.mxu1  ;;  %3043 = vmatpush2.bf16.msra.mxu1 %v2653_v8  ;;  %v2534_v8 = vld [vmem:[%s4310_s16 + $0x398] sm:$0xff] }
 0x3c5   : > { %v2850_v41 = vpop.f32.mrf.mxu0  ;;  %3044 = vmatprep.subr.bf16.mxu1 %v2650_v10  ;;  %v2778_v15 = vunpack.c.h.s8.bf16 %v2534_v8  ;;  %v2533_v58 = vld [vmem:[%s4310_s16 + $0x390] sm:$0xff]  ;;  %v2774_v16 = vunpack.c.l.s8.bf16 %v2534_v8 }
 0x3c6   : > { %v2891_v13 = vpop.f32.mrf.mxu1 }
 0x3c8   : > { %3045 = vmatpush2.bf16.msra.mxu1 %v2649_v56 }
 0x3c9   : > { %3046 = vmatprep.subr.bf16.mxu1 %v2646_v24  ;;  %v2777_v24 = vunpack.c.h.s8.bf16 %v2533_v58 }
 0x3cc   : > { %3047 = vmatpush2.bf16.msra.mxu1 %v2645_v20  ;;  %v2773_v20 = vunpack.c.l.s8.bf16 %v2533_v58 }
 0x3cd   : > { %3098 = vmatprep.subr.bf16.mxu1 %v2770_v21 }
 0x3cf   : > { %3049 = vmatmul.mubr.bf16.vlgmr.msra.gmra.mxu1 %v4777_v31  ;;  %v2521_v31 = vld [vmem:[%s4310_s16 + $0x330] sm:$0xff] }
 0x3d0   : > { %3099 = vmatpush1.bf16.msra.mxu1 %v2769_v23  ;;  %3130 = vmatprep.mubr.bf16.mxu1 %v4891_v44  ;;  %v2753_v18 = vunpack.c.h.s8.bf16 %v2521_v31  ;;  %v2750_v44 = vunpack.c.l.s8.bf16 %v2522_v37  ;;  %v2749_v42 = vunpack.c.l.s8.bf16 %v2521_v31  ;;  %v4957_v23 = vpop.permute.xlu0 %2327 }
 0x3d1   : > { %3100 = vmatprep.subr.bf16.mxu1 %v2766_v14  ;;  %v2334_v14 = vrot.slane %v4955_v7, %v4750_v28 }
 0x3d3   : > { %v2354_v39 = vrot.slane %v2334_v14, %v4750_v28  ;;  %v2342_v14 = vrot.slane %v4955_v7, %v4822_v3 }
 0x3d4   : > { %3101 = vmatpush1.bf16.msra.mxu1 %v2765_v29 }
 0x3d5   : > { %3102 = vmatprep.subr.bf16.mxu1 %v2762_v38  ;;  %v2382_v38 = vrot.slane %v4955_v7, %v4685_v35  ;;  %v2367_v31 = vmul.f32 %v2354_v39, %v4957_v23 }
 0x3d8   : > { %3103 = vmatpush1.bf16.msra.mxu1 %v2761_v33  ;;  %v2398_v33 = vrot.slane %v2378_v36, %v4680_v27  ;;  %v2386_v36 = vrot.slane %v4955_v7, %v4780_v32 }
 0x3d9   : > { %3104 = vmatprep.subr.bf16.mxu1 %v2758_v34  ;;  %v4969_v34 = vpop.permute.xlu0 %2372 }
 0x3da   : > { %v2406_v39 = vrot.slane %v2386_v36, %v4680_v27 }
 0x3dc   : > { %3105 = vmatpush1.bf16.msra.mxu1 %v2757_v51  ;;  %v2402_v51 = vrot.slane %v2382_v38, %v4680_v27  ;;  %v2362_v38 = vrot.slane %v2342_v14, %v4750_v28 }
 0x3dd   : > { %3106 = vmatprep.subr.bf16.mxu1 %v2754_v52  ;;  %v4975_v52 = vld [vmem:[%s608_s0] sm:$0xf] }
 0x3de   : > { %v2412_v46 = vmul.f32 %v2402_v51, %v4969_v34  ;;  %v3148_v17 = vrot.slane %v4975_v52, %v4680_v27  ;;  %v2369_v32 = vmul.f32 %v2362_v38, %v4957_v23 }
 0x3e0   : > { %3107 = vmatpush1.bf16.msra.mxu1 %v2753_v18  ;;  %v2411_v18 = vmul.f32 %v2398_v33, %v4969_v34 }
 0x3e1   : > { %3108 = vmatprep.subr.bf16.mxu1 %v2750_v44 }
 0x3e4   : > { %3109 = vmatpush1.bf16.msra.mxu1 %v2749_v42  ;;  %v3144_v42 = vrot.slane %v4975_v52, %v4750_v28 }
 0x3e5   : > { %3110 = vmatprep.subr.bf16.mxu1 %v2746_v45 }
 0x3e8   : > { %3111 = vmatpush1.bf16.msra.mxu1 %v2745_v49  ;;  %v2415_v49 = vadd.f32 %v2411_v18, %v2367_v31  ;;  %v2413_v31 = vmul.f32 %v2406_v39, %v4969_v34 }
 0x3e9   : > { %3112 = vmatprep.subr.bf16.mxu1 %v2742_v53 }
 0x3ec   : > { %3113 = vmatpush1.bf16.msra.mxu1 %v2741_v19 }
 0x3ed   : > { %3114 = vmatprep.subr.bf16.mxu1 %v2802_v54 }
 0x3f0   : > { %3115 = vmatpush2.bf16.msra.mxu1 %v2801_v57  ;;  %v3174_v57 = vrot.slane %v4985_v48, %v4750_v28 }
 0x3f1   : > { %3116 = vmatprep.subr.bf16.mxu1 %v2798_v61 }
 0x3f4   : > { %3117 = vmatpush2.bf16.msra.mxu1 %v2797_v62  ;;  %v4992_v62 = vld [vmem:[%s635_s3] sm:$0xf] }
 0x3f5   : > { %3118 = vmatprep.subr.bf16.mxu1 %v2794_v63 }
 0x3f8   : > { %3119 = vmatpush2.bf16.msra.mxu1 %v2793_v1  ;;  %v3178_v1 = vrot.slane %v4985_v48, %v4680_v27 }
 0x3f9   : > { %3120 = vmatprep.subr.bf16.mxu1 %v2790_v22 }
 0x3fc   : > { %3121 = vmatpush2.bf16.msra.mxu1 %v2789_v4 }
 0x3fd   : > { %3122 = vmatprep.subr.bf16.mxu1 %v2786_v11  ;;  %v3204_v11 = vrot.slane %v4992_v62, %v4750_v28 }
 0x3ff   : > { %v2927_v9 = vpop.f32.mrf.mxu0 }
 0x400   : > { %v2928_v10 = vadd.f32 %v2927_v9, %v4923_v26  ;;  %3123 = vmatpush2.bf16.msra.mxu1 %v2785_v6 }
 0x401   : > { %v2929_v59 = vpop.f32.mrf.mxu0  ;;  %3124 = vmatprep.subr.bf16.mxu1 %v2782_v50  ;;  %v3208_v50 = vrot.slane %v4992_v62, %v4680_v27 }
 0x402   : > { %v2930_v56 = vadd.f32 %v2929_v59, %v4926_v12 }
 0x403   : > { %v2931_v41 = vpop.f32.mrf.mxu0 }
 0x404   : > { %3125 = vmatpush2.bf16.msra.mxu1 %v2781_v60 }
 0x405   : > { %v2932_v13 = vpop.f32.mrf.mxu0  ;;  %3126 = vmatprep.subr.bf16.mxu1 %v2778_v15 }
 0x408   : > { %3127 = vmatpush2.bf16.msra.mxu1 %v2777_v24 }
 0x409   : > { %3128 = vmatprep.subr.bf16.mxu1 %v2774_v16 }
 0x40c   : > { %3129 = vmatpush2.bf16.msra.mxu1 %v2773_v20 }
 0x40f   : > { %3131 = vmatmul.mubr.bf16.vlgmr.msra.gmra.mxu1 %v4893_v47  ;;  %v2338_v47 = vrot.slane %v4955_v7, %v4754_v43 }
 0x411   : > { %v2358_v37 = vrot.slane %v2338_v47, %v4750_v28  ;;  %v2390_v47 = vrot.slane %v4955_v7, %v4871_v2  ;;  %v3152_v2 = vrot.slane %v4975_v52, %v4754_v43 }
 0x413   : > { %v2368_v44 = vmul.f32 %v2358_v37, %v4957_v23  ;;  %v2410_v51 = vrot.slane %v2390_v47, %v4680_v27  ;;  %v3156_v27 = vrot.slane %v4975_v52, %v4685_v35  ;;  %v3212_v52 = vrot.slane %v4992_v62, %v4754_v43 }
 0x415   : > { %v2416_v54 = vadd.f32 %v2412_v46, %v2368_v44  ;;  %v2414_v44 = vmul.f32 %v2410_v51, %v4969_v34 }
 0x43f   : > { %v4949_v26 = vpop.f32.mrf.mxu0 }
 0x441   : > { %v4951_v21 = vpop.f32.mrf.mxu0 }
 0x443   : > { %v3013_v12 = vpop.f32.mrf.mxu0 }
 0x445   : > { %v3014_v29 = vpop.f32.mrf.mxu0 }
 0x446   : > { %v2346_v29 = vrot.slane %v4955_v7, %v4868_v30 }
 0x448   : > { %v2366_v37 = vrot.slane %v2346_v29, %v4750_v28 }
 0x44a   : > { %v2370_v7 = vmul.f32 %v2366_v37, %v4957_v23  ;;  %v3186_v23 = vrot.slane %v4985_v48, %v4685_v35 }
 0x44f   : > { %v2968_v45 = vpop.f32.mrf.mxu1 }
 0x450   : > { %v2969_v53 = vadd.f32 %v2968_v45, %v2928_v10  ;;  %v3182_v45 = vrot.slane %v4985_v48, %v4754_v43  ;;  %v3556_v43 = vld [vmem:[%s724_s24] ss:$0 sm:$0xff] }
 0x451   : > { %v2970_v19 = vpop.f32.mrf.mxu1 }
 0x452   : > { %v3161_v55 = vmul.f32 %v3144_v42, %v2969_v53  ;;  %v2971_v61 = vadd.f32 %v2970_v19, %v2930_v56 }
 0x453   : > { %v2972_v40 = vpop.f32.mrf.mxu1 }
 0x454   : > { %v3165_v63 = vadd.f32 %v3161_v55, %v2415_v49  ;;  %v3162_v0 = vmul.f32 %v3148_v17, %v2971_v61  ;;  %v2418_v17 = vadd.f32 %v2414_v44, %v2370_v7 }
 0x455   : > { %v2973_v22 = vpop.f32.mrf.mxu1 }
 0x456   : > { %v3191_v25 = vadd.f32 %v3174_v57, %v3165_v63  ;;  %v3166_v4 = vadd.f32 %v3162_v0, %v2416_v54  ;;  %v3216_v63 = vrot.slane %v4992_v62, %v4685_v35 }
 0x458   : > { %v3195_v5 = vmax.f32 %v3191_v25, 0.0  ;;  %v3192_v6 = vadd.f32 %v3178_v1, %v3166_v4 }
 0x45a   : > { %v3196_v8 = vmax.f32 %v3192_v6, 0.0  ;;  %v3221_v9 = vmul.f32 %v3204_v11, %v3195_v5 }
 0x45c   : > { %v3222_v10 = vmul.f32 %v3208_v50, %v3196_v8  ;;  %v3226_v60 = vsel %vm3225_vm0, %v3221_v9, 0.0 }
 0x45e   : > { %v3227_v59 = vsel %vm3225_vm0, %v3222_v10, 0.0 }
 0x45f   : > { %v3228_v15 = vadd.f32 %v3227_v59, %v3226_v60 }
 0x480   : > { %v3091_v58 = vpop.f32.mrf.mxu0 }
 0x482   : > { %v3093_v56 = vpop.f32.mrf.mxu0 }
 0x484   : > { %v3095_v41 = vpop.f32.mrf.mxu0 }
 0x486   : > { %v3096_v24 = vpop.f32.mrf.mxu0 }
 0x48f   : > { %v3050_v13 = vpop.f32.mrf.mxu1 }
 0x490   : > { %v3051_v33 = vadd.f32 %v3050_v13, %v4949_v26 }
 0x491   : > { %v3052_v16 = vpop.f32.mrf.mxu1 }
 0x492   : > { %v3053_v3 = vadd.f32 %v3052_v16, %v4951_v21  ;;  %v3092_v30 = vadd.f32 %v3091_v58, %v3051_v33  ;;  %v2417_v21 = vadd.f32 %v2413_v31, %v2369_v32 }
 0x493   : > { %v3054_v20 = vpop.f32.mrf.mxu1 }
 0x494   : > { %v3094_v46 = vadd.f32 %v3093_v56, %v3053_v3 }
 0x495   : > { %v3055_v12 = vpop.f32.mrf.mxu1 }
 0x4cf   : > { %v3132_v18 = vpop.f32.mrf.mxu1 }
 0x4d0   : > { %v3133_v26 = vadd.f32 %v3132_v18, %v3092_v30 }
 0x4d1   : > { %v3134_v28 = vpop.f32.mrf.mxu1 }
 0x4d2   : > { %v3163_v42 = vmul.f32 %v3152_v2, %v3133_v26  ;;  %v3135_v49 = vadd.f32 %v3134_v28, %v3094_v46 }
 0x4d3   : > { %v3136_v53 = vpop.f32.mrf.mxu1 }
 0x4d4   : > { %v3167_v19 = vadd.f32 %v3163_v42, %v2417_v21  ;;  %v3164_v54 = vmul.f32 %v3156_v27, %v3135_v49 }
 0x4d5   : > { %v3137_v34 = vpop.f32.mrf.mxu1 }
 0x4d6   : > { %v3193_v55 = vadd.f32 %v3182_v45, %v3167_v19  ;;  %v3168_v57 = vadd.f32 %v3164_v54, %v2418_v17 }
 0x4d8   : > { %v3194_v61 = vadd.f32 %v3186_v23, %v3168_v57  ;;  %v3197_v40 = vmax.f32 %v3193_v55, 0.0 }
 0x4da   : > { %v3198_v0 = vmax.f32 %v3194_v61, 0.0  ;;  %v3223_v1 = vmul.f32 %v3212_v52, %v3197_v40 }
 0x4dc   : > { %v3224_v22 = vmul.f32 %v3216_v63, %v3198_v0  ;;  %v3229_v25 = vsel %vm3225_vm0, %v3223_v1, 0.0 }
 0x4dd   : > { %v3230_v4 = vadd.f32 %v3229_v25, %v3228_v15 }
 0x4de   : > { %v3231_v48 = vsel %vm3225_vm0, %v3224_v22, 0.0 }
 0x4df   : > { %v3232_v11 = vadd.f32 %v3231_v48, %v3230_v4 }
 0x4e1   : > { %3233 = vadd.xlane.f32.xlu1 %v3232_v11 }
 0x56a   : > { %v3234_v35 = vpop.xlane.xlu1 %3233 }
 0x56b   : > { %v3242_v62 = vadd.f32 %v3556_v43, %v3234_v35 }
 0x56d   : > { %3244 = vst.msk [vmem:[%s731_s14] sm:$0x3] %vm3243_vm1, %v3242_v62 }
 0x56e PF: > { %s34_s22 = sadd.s32 1, %s3996_s22   ;;  %s5124_s1 = sld [smem:[#allocation21_spill]] }
 0x56f   : > { %p31_p12 = scmp.ge.s32.totalorder %s34_s22, 4   ;;  %s5125_s19 = sld [smem:[#allocation24_spill]] }
 0x570   : > { %s5126_s2 = sld [smem:[#allocation23_spill]]  ;;  %s5127_s17 = smov %s3980_s18 }
 0x571   : > { %s5129_s20 = smov %s3992_s21 }
 0x572   :  { %33 = sbr.rel (!%p31_p12) target bundleno = 23 (0x17), region = 199 }
 0x574   : > { %s5128_s18 = smov %s5124_s1 }
 0x576   : > { %s5130_s21 = smov %s5126_s2 }
 0x577   :  { %3270 = vsyncpa [#allocation3], 1 }
 0x578   :  { %3272 = vsyncpa [#allocation3 + $0x1], 1 }
 0x579   :  { %3273 = vsyncpa [#allocation5], 1 }
 0x57a   :  { %3275 = vsyncpa [#allocation5 + $0x1], 1 }
 0x57b   :  { %3276 = vsyncpa [#allocation8], 1 }
 0x57c   :  { %3278 = vsyncpa [#allocation8 + $0x1], 1 }
 0x57d   :  { %3279 = vsyncpa [#allocation11], 1 }
 0x57e   :  { %3281 = vsyncpa [#allocation11 + $0x1], 1 }
 0x57f   :  { %3282 = vsyncpa [#allocation14], 1 }
 0x580   :  { %3284 = vsyncpa [#allocation14 + $0x1], 1 }

</bundles_post_ra>
